<compile_context>
chip_gen: v7x
topology: tpu7x:2x2x1
jax: 0.10.0
libtpu: 0.0.40
codegen_flags: <defaults>
</compile_context>

<pallas_src>
import functools
import math

import jax
import jax.numpy as jnp
from jax.experimental import pallas as pl
from jax.experimental.pallas import tpu as pltpu

BN_EPS = 1e-5
ACT_DTYPE = jnp.bfloat16       # dtype of intermediate activations stored in HBM


def _round_up(x, m):
    return ((x + m - 1) // m) * m


def _pick_tile(dim, candidates):
    for c in candidates:
        if dim % c == 0:
            return c
    return candidates[-1]


# ----------------------------- Pallas kernels -----------------------------

def _mm_kernel(x_ref, w_ref, bias_ref, o_ref, acc_ref, *, relu):
    # K-accumulating matmul; folded-BN bias (+ ReLU) applied at k == last.
    @pl.when(pl.program_id(2) == 0)
    def _init():
        acc_ref[...] = jnp.zeros_like(acc_ref)

    acc_ref[...] += jnp.dot(x_ref[...], w_ref[...],
                            preferred_element_type=jnp.float32)

    @pl.when(pl.program_id(2) == pl.num_programs(2) - 1)
    def _finalize():
        acc = acc_ref[...] + bias_ref[...]
        if relu:
            acc = jnp.maximum(acc, 0.0)
        o_ref[...] = acc.astype(o_ref.dtype)


def _mm_res_kernel(x_ref, w_ref, bias_ref, res_ref, o_ref, acc_ref, *, relu):
    @pl.when(pl.program_id(2) == 0)
    def _init():
        acc_ref[...] = jnp.zeros_like(acc_ref)

    acc_ref[...] += jnp.dot(x_ref[...], w_ref[...],
                            preferred_element_type=jnp.float32)

    @pl.when(pl.program_id(2) == pl.num_programs(2) - 1)
    def _finalize():
        acc = acc_ref[...] + bias_ref[...] + res_ref[...].astype(jnp.float32)
        if relu:
            acc = jnp.maximum(acc, 0.0)
        o_ref[...] = acc.astype(o_ref.dtype)


def _max_reduce_kernel(x_ref, o_ref):
    # x_ref: (9, tr, 128) -> max over the 9 pooling taps (f32 math, bf16 store)
    o_ref[...] = jnp.max(x_ref[...].astype(jnp.float32), axis=0).astype(o_ref.dtype)


def _mean_reduce_kernel(x_ref, o_ref):
    # x_ref: (N, HW, C) -> mean over the spatial axis, f32 output
    o_ref[...] = jnp.mean(x_ref[...].astype(jnp.float32), axis=1)


# ----------------------------- tiled fused matmul -----------------------------

def matmul_bias(x, w, bias, residual=None, relu=False, out_dtype=ACT_DTYPE):
    """out = [relu]( x @ w + bias [+ residual] ) with a tiled, pipelined Pallas
    matmul (bf16 MXU inputs, f32 accumulation)."""
    M, K = x.shape
    K2, N = w.shape
    assert K == K2

    Mp = _round_up(M, 8)
    Kp = _round_up(K, 128)
    Np = _round_up(N, 128)           # lane-dense (>=128) output stores
    tm = _pick_tile(Mp, (512, 256, 128, 64, 32, 16, 8))
    tk = _pick_tile(Kp, (1024, 512, 256, 128))
    tn = _pick_tile(Np, (512, 256, 128))

    xb = jnp.pad(x.astype(jnp.bfloat16), ((0, Mp - M), (0, Kp - K)))
    wb = jnp.pad(w.astype(jnp.bfloat16), ((0, Kp - K), (0, Np - N)))
    bb = jnp.pad(bias.astype(jnp.float32).reshape(1, N), ((0, 0), (0, Np - N)))

    args = [xb, wb, bb]
    in_specs = [
        pl.BlockSpec((tm, tk), lambda i, j, k: (i, k)),
        pl.BlockSpec((tk, tn), lambda i, j, k: (k, j)),
        pl.BlockSpec((1, tn), lambda i, j, k: (0, j)),
    ]
    io_aliases = {}
    out_bytes = Mp * Np * jnp.dtype(out_dtype).itemsize
    bytes_accessed = 2 * Mp * Kp + 2 * Kp * Np + out_bytes + 4 * Np

    if residual is None:
        kern = functools.partial(_mm_kernel, relu=relu)
    else:
        rb = jnp.pad(residual.astype(out_dtype), ((0, Mp - M), (0, Np - N)))
        args.append(rb)
        in_specs.append(pl.BlockSpec((tm, tn), lambda i, j, k: (i, j)))
        kern = functools.partial(_mm_res_kernel, relu=relu)
        io_aliases = {3: 0}          # residual buffer re-used as the output
        bytes_accessed += out_bytes

    out = pl.pallas_call(
        kern,
        out_shape=jax.ShapeDtypeStruct((Mp, Np), out_dtype),
        grid=(Mp // tm, Np // tn, Kp // tk),
        in_specs=in_specs,
        out_specs=pl.BlockSpec((tm, tn), lambda i, j, k: (i, j)),
        scratch_shapes=[pltpu.VMEM((tm, tn), jnp.float32)],
        compiler_params=pltpu.CompilerParams(
            dimension_semantics=("parallel", "parallel", "arbitrary"),
            vmem_limit_bytes=32 * 1024 * 1024),
        cost_estimate=pl.CostEstimate(
            flops=2 * Mp * Np * Kp,
            transcendentals=0,
            bytes_accessed=bytes_accessed),
        input_output_aliases=io_aliases,
    )(*args)

    if Mp != M or Np != N:
        out = out[:M, :N]
    return out


# ----------------------------- glue (plain JAX) -----------------------------

def im2col(x, kh, kw, stride, padding, pad_value=0.0):
    """x: NHWC -> (N*OH*OW, kh*kw*C) patches (taps outer, channels inner)."""
    N, H, W, C = x.shape
    xp = jnp.pad(x, ((0, 0), (padding, padding), (padding, padding), (0, 0)),
                 constant_values=pad_value)
    OH = (H + 2 * padding - kh) // stride + 1
    OW = (W + 2 * padding - kw) // stride + 1
    cols = []
    for i in range(kh):
        for j in range(kw):
            cols.append(xp[:, i:i + stride * OH:stride, j:j + stride * OW:stride, :])
    patches = jnp.stack(cols, axis=3)  # (N, OH, OW, kh*kw, C)
    return patches.reshape(N * OH * OW, kh * kw * C), N, OH, OW


def bn_fold(bn):
    scale = bn['gamma'] / jnp.sqrt(bn['var'] + BN_EPS)
    bias = bn['beta'] - bn['mean'] * scale
    return scale, bias


def conv_bn(x, w, bn, stride, padding, relu, residual=None):
    """Conv2d(bias=False) + BatchNorm (+ residual) (+ ReLU). x: NHWC, w: (Cout,Cin,KH,KW)."""
    cout, cin, kh, kw = w.shape
    patches, N, OH, OW = im2col(x, kh, kw, stride, padding, pad_value=0.0)
    scale, bias = bn_fold(bn)
    wmat = jnp.transpose(w, (2, 3, 1, 0)).reshape(kh * kw * cin, cout)
    wmat = wmat * scale[None, :]          # fold BN scale into the weights
    res2d = None
    if residual is not None:
        res2d = residual.reshape(N * OH * OW, cout)
    out = matmul_bias(patches, wmat, bias, residual=res2d, relu=relu,
                      out_dtype=ACT_DTYPE)
    return out.reshape(N, OH, OW, cout)


def maxpool_3x3_s2(x):
    N, H, W, C = x.shape
    xp = jnp.pad(x, ((0, 0), (1, 1), (1, 1), (0, 0)), constant_values=-jnp.inf)
    OH = (H + 2 - 3) // 2 + 1
    OW = (W + 2 - 3) // 2 + 1
    taps = [xp[:, i:i + 2 * OH:2, j:j + 2 * OW:2, :]
            for i in range(3) for j in range(3)]
    # Flatten to a 128-lane-dense layout; the 9-tap max is purely elementwise,
    # so reshaping (M, C) -> (L/128, 128) is valid and keeps loads/stores unmasked.
    L = N * OH * OW * C
    p = jnp.stack(taps, axis=0).reshape(9, L)
    Lp = _round_up(L, 8 * 128)
    if Lp != L:
        p = jnp.pad(p, ((0, 0), (0, Lp - L)))
    R = Lp // 128
    p = p.reshape(9, R, 128)
    tr = _pick_tile(R, (1024, 512, 256, 128, 64, 32, 16, 8))
    out = pl.pallas_call(
        _max_reduce_kernel,
        out_shape=jax.ShapeDtypeStruct((R, 128), x.dtype),
        grid=(R // tr,),
        in_specs=[pl.BlockSpec((9, tr, 128), lambda i: (0, i, 0))],
        out_specs=pl.BlockSpec((tr, 128), lambda i: (i, 0)),
        compiler_params=pltpu.CompilerParams(dimension_semantics=("parallel",)),
    )(p)
    return out.reshape(-1)[:L].reshape(N, OH, OW, C)


def global_avgpool(x):
    N, H, W, C = x.shape
    p = x.reshape(N, H * W, C)
    return pl.pallas_call(
        _mean_reduce_kernel,
        out_shape=jax.ShapeDtypeStruct((N, C), jnp.float32),
        in_specs=[pl.BlockSpec((N, H * W, C), lambda: (0, 0, 0))],
        out_specs=pl.BlockSpec((N, C), lambda: (0, 0)),
    )(p)


# ----------------------------- parameter init -----------------------------

def conv_init(key, cout, cin, kh, kw):
    fan_out = cout * kh * kw               # kaiming_normal_, mode='fan_out', relu
    std = math.sqrt(2.0 / fan_out)
    return std * jax.random.normal(key, (cout, cin, kh, kw), jnp.float32)


def make_bn(c):
    return dict(gamma=jnp.ones((c,), jnp.float32), beta=jnp.zeros((c,), jnp.float32),
                mean=jnp.zeros((c,), jnp.float32), var=jnp.ones((c,), jnp.float32))


def init_resnet(key, block='basic', layers=(1, 1, 1, 1), num_classes=10):
    expansion = 1 if block == 'basic' else 4
    keys = iter(jax.random.split(key, 128))
    params = {'conv1': conv_init(next(keys), 64, 3, 7, 7), 'bn1': make_bn(64)}
    inplanes = 64

    def make_layer(planes, blocks, stride):
        nonlocal inplanes
        layer = []
        for b in range(blocks):
            s = stride if b == 0 else 1
            blk = {'stride': s, 'downsample': None}
            if b == 0 and (s != 1 or inplanes != planes * expansion):
                blk['downsample'] = dict(
                    conv=conv_init(next(keys), planes * expansion, inplanes, 1, 1),
                    bn=make_bn(planes * expansion))
            if block == 'basic':
                blk['conv1'] = conv_init(next(keys), planes, inplanes, 3, 3)
                blk['bn1'] = make_bn(planes)
                blk['conv2'] = conv_init(next(keys), planes, planes, 3, 3)
                blk['bn2'] = make_bn(planes)
            else:  # bottleneck (groups=1, base_width=64 -> width=planes)
                width = planes
                blk['conv1'] = conv_init(next(keys), width, inplanes, 1, 1)
                blk['bn1'] = make_bn(width)
                blk['conv2'] = conv_init(next(keys), width, width, 3, 3)
                blk['bn2'] = make_bn(width)
                blk['conv3'] = conv_init(next(keys), planes * expansion, width, 1, 1)
                blk['bn3'] = make_bn(planes * expansion)
            layer.append(blk)
            inplanes = planes * expansion
        return layer

    params['layer1'] = make_layer(64, layers[0], 1)
    params['layer2'] = make_layer(128, layers[1], 2)
    params['layer3'] = make_layer(256, layers[2], 2)
    params['layer4'] = make_layer(512, layers[3], 2)
    fc_in = 512 * expansion
    params['fc_w'] = 0.01 * jax.random.normal(next(keys), (fc_in, num_classes), jnp.float32)
    params['fc_b'] = jnp.zeros((num_classes,), jnp.float32)
    return params


# ----------------------------- forward -----------------------------

def basic_block_fwd(x, blk):
    identity = x
    out = conv_bn(x, blk['conv1'], blk['bn1'], stride=blk['stride'], padding=1, relu=True)
    if blk['downsample'] is not None:
        identity = conv_bn(x, blk['downsample']['conv'], blk['downsample']['bn'],
                           stride=blk['stride'], padding=0, relu=False)
    # conv2 + bn2 + residual add + relu fused in one Pallas call
    out = conv_bn(out, blk['conv2'], blk['bn2'], stride=1, padding=1, relu=True,
                  residual=identity)
    return out


def bottleneck_fwd(x, blk):
    identity = x
    out = conv_bn(x, blk['conv1'], blk['bn1'], stride=1, padding=0, relu=True)
    out = conv_bn(out, blk['conv2'], blk['bn2'], stride=blk['stride'], padding=1, relu=True)
    if blk['downsample'] is not None:
        identity = conv_bn(x, blk['downsample']['conv'], blk['downsample']['bn'],
                           stride=blk['stride'], padding=0, relu=False)
    out = conv_bn(out, blk['conv3'], blk['bn3'], stride=1, padding=0, relu=True,
                  residual=identity)
    return out


def resnet_forward(params, x_nchw, block='basic'):
    x = jnp.transpose(x_nchw, (0, 2, 3, 1)).astype(ACT_DTYPE)  # NCHW -> NHWC, bf16
    x = conv_bn(x, params['conv1'], params['bn1'], stride=2, padding=3, relu=True)
    x = maxpool_3x3_s2(x)
    blk_fwd = basic_block_fwd if block == 'basic' else bottleneck_fwd
    for lname in ('layer1', 'layer2', 'layer3', 'layer4'):
        for blk in params[lname]:
            x = blk_fwd(x, blk)
    embeddings = global_avgpool(x)  # (N, 512*expansion) == torch.flatten(avgpool(x), 1)
    logits = matmul_bias(embeddings, params['fc_w'], params['fc_b'],
                         relu=False, out_dtype=jnp.float32)
    return embeddings, logits


if __name__ == "__main__":
    key = jax.random.PRNGKey(0)
    pkey, xkey = jax.random.split(key)
    block = 'basic'
    params = init_resnet(pkey, block=block, layers=(1, 1, 1, 1), num_classes=10)
    # PyTorch-style NCHW input
    x = jax.random.normal(xkey, (2, 3, 32, 32), jnp.float32)

    fwd = jax.jit(lambda inp: resnet_forward(params, inp, block=block))
    embeddings, logits = fwd(x)
    jax.block_until_ready((embeddings, logits))

    assert embeddings.shape == (2, 512), embeddings.shape
    assert logits.shape == (2, 10), logits.shape
    assert bool(jnp.all(jnp.isfinite(embeddings))) and bool(jnp.all(jnp.isfinite(logits)))
    print("KERNEL_OK")
</pallas_src>

<mosaic_0001>
module attributes {stable_mosaic.version = 11 : i64} {
  func.func @_mm_kernel(%arg0: i32, %arg1: i32, %arg2: i32, %arg3: memref<512x256xbf16, #tpu.memory_space<vmem>>, %arg4: memref<256x128xbf16, #tpu.memory_space<vmem>>, %arg5: memref<1x128xf32, #tpu.memory_space<vmem>>, %arg6: memref<512x128xbf16, #tpu.memory_space<vmem>>, %arg7: memref<512x128xf32, #tpu.memory_space<vmem>>) attributes {dimension_semantics = [#tpu.dimension_semantics<parallel>, #tpu.dimension_semantics<parallel>, #tpu.dimension_semantics<arbitrary>], iteration_bounds = array<i64: 1, 1, 1>, scalar_prefetch = 0 : i64, scratch_operands = 1 : i64, tpu.core_type = #tpu.core_type<tc>, window_params = [{transform_indices = @transform_0, window_bounds = array<i64: 512, 256>}, {transform_indices = @transform_1, window_bounds = array<i64: 256, 128>}, {transform_indices = @transform_2, window_bounds = array<i64: 1, 128>}, {transform_indices = @transform_3, window_bounds = array<i64: 512, 128>}]} {
    %c0_i32 = arith.constant 0 : i32
    %0 = arith.cmpi eq, %arg2, %c0_i32 : i32
    %1 = arith.extui %0 : i1 to i32
    %c0_i32_0 = arith.constant 0 : i32
    %2 = arith.cmpi ne, %1, %c0_i32_0 : i32
    scf.if %2 {
      %cst_10 = arith.constant 0.000000e+00 : f32
      %12 = vector.broadcast %cst_10 : f32 to vector<512x128xf32>
      %c0_11 = arith.constant 0 : index
      %c0_12 = arith.constant 0 : index
      %13 = vector.load %arg7[%c0_11, %c0_12] : memref<512x128xf32, #tpu.memory_space<vmem>>, vector<512x128xf32>
      tpu.vector_store %arg7[%c0_11, %c0_12], %12 {strides = array<i32>} : memref<512x128xf32, #tpu.memory_space<vmem>>, vector<512x128xf32>,
    } else {
    }
    %c0 = arith.constant 0 : index
    %c0_1 = arith.constant 0 : index
    %3 = vector.load %arg7[%c0, %c0_1] : memref<512x128xf32, #tpu.memory_space<vmem>>, vector<512x128xf32>
    %c0_2 = arith.constant 0 : index
    %c0_3 = arith.constant 0 : index
    %4 = vector.load %arg3[%c0_2, %c0_3] : memref<512x256xbf16, #tpu.memory_space<vmem>>, vector<512x256xbf16>
    %c0_4 = arith.constant 0 : index
    %c0_5 = arith.constant 0 : index
    %5 = vector.load %arg4[%c0_4, %c0_5] : memref<256x128xbf16, #tpu.memory_space<vmem>>, vector<256x128xbf16>
    %cst = arith.constant dense<0.000000e+00> : vector<512x128xf32>
    %6 = tpu.matmul %4, %5, %cst {dimension_numbers = #tpu.dot_dimension_numbers<[1], [0], [0], [1], [0, 0, 1, 1], [], []>} : vector<512x256xbf16>, vector<256x128xbf16>, vector<512x128xf32> -> vector<512x128xf32>
    %7 = arith.addf %3, %6 : vector<512x128xf32>
    %c0_6 = arith.constant 0 : index
    %c0_7 = arith.constant 0 : index
    %8 = vector.load %arg7[%c0_6, %c0_7] : memref<512x128xf32, #tpu.memory_space<vmem>>, vector<512x128xf32>
    tpu.vector_store %arg7[%c0_6, %c0_7], %7 {strides = array<i32>} : memref<512x128xf32, #tpu.memory_space<vmem>>, vector<512x128xf32>,
    %c0_i32_8 = arith.constant 0 : i32
    %9 = arith.cmpi eq, %arg2, %c0_i32_8 : i32
    %10 = arith.extui %9 : i1 to i32
    %c0_i32_9 = arith.constant 0 : i32
    %11 = arith.cmpi ne, %10, %c0_i32_9 : i32
    scf.if %11 {
      %c0_10 = arith.constant 0 : index
      %c0_11 = arith.constant 0 : index
      %12 = vector.load %arg7[%c0_10, %c0_11] : memref<512x128xf32, #tpu.memory_space<vmem>>, vector<512x128xf32>
      %c0_12 = arith.constant 0 : index
      %c0_13 = arith.constant 0 : index
      %13 = vector.load %arg5[%c0_12, %c0_13] : memref<1x128xf32, #tpu.memory_space<vmem>>, vector<1x128xf32>
      %14 = vector.broadcast %13 : vector<1x128xf32> to vector<512x128xf32>
      %15 = arith.addf %12, %14 : vector<512x128xf32>
      %cst_14 = arith.constant 0.000000e+00 : f32
      %16 = vector.broadcast %cst_14 : f32 to vector<512x128xf32>
      %17 = arith.maximumf %15, %16 : vector<512x128xf32>
      %18 = arith.truncf %17 : vector<512x128xf32> to vector<512x128xbf16>
      %c0_15 = arith.constant 0 : index
      %c0_16 = arith.constant 0 : index
      %19 = vector.load %arg6[%c0_15, %c0_16] : memref<512x128xbf16, #tpu.memory_space<vmem>>, vector<512x128xbf16>
      tpu.vector_store %arg6[%c0_15, %c0_16], %18 {strides = array<i32>} : memref<512x128xbf16, #tpu.memory_space<vmem>>, vector<512x128xbf16>,
    } else {
    }
    return
  }
  func.func @transform_0(%arg0: i32, %arg1: i32, %arg2: i32) -> (i32, i32) {
    %c0_i32 = arith.constant 0 : i32
    return %arg0, %arg2 : i32, i32
  }
  func.func @transform_1(%arg0: i32, %arg1: i32, %arg2: i32) -> (i32, i32) {
    %c0_i32 = arith.constant 0 : i32
    return %arg2, %arg1 : i32, i32
  }
  func.func @transform_2(%arg0: i32, %arg1: i32, %arg2: i32) -> (i32, i32) {
    %c0_i32 = arith.constant 0 : i32
    %c0_i32_0 = arith.constant 0 : i32
    return %c0_i32, %arg1 : i32, i32
  }
  func.func @transform_3(%arg0: i32, %arg1: i32, %arg2: i32) -> (i32, i32) {
    %c0_i32 = arith.constant 0 : i32
    return %arg0, %arg1 : i32, i32
  }
}

module attributes {stable_mosaic.version = 11 : i64} {
  func.func @_max_reduce_kernel(%arg0: i32, %arg1: memref<9x64x128xbf16, #tpu.memory_space<vmem>>, %arg2: memref<64x128xbf16, #tpu.memory_space<vmem>>) attributes {dimension_semantics = [#tpu.dimension_semantics<parallel>], iteration_bounds = array<i64: 1>, scalar_prefetch = 0 : i64, scratch_operands = 0 : i64, tpu.core_type = #tpu.core_type<tc>, window_params = [{transform_indices = @transform_0, window_bounds = array<i64: 9, 64, 128>}, {transform_indices = @transform_1, window_bounds = array<i64: 64, 128>}]} {
    %c0 = arith.constant 0 : index
    %c0_0 = arith.constant 0 : index
    %c0_1 = arith.constant 0 : index
    %0 = vector.load %arg1[%c0, %c0_0, %c0_1] : memref<9x64x128xbf16, #tpu.memory_space<vmem>>, vector<9x64x128xbf16>
    %1 = arith.extf %0 : vector<9x64x128xbf16> to vector<9x64x128xf32>
    %cst = arith.constant dense<0xFF800000> : vector<64x128xf32>
    %2 = vector.multi_reduction <maximumf>, %1, %cst [0] : vector<9x64x128xf32> to vector<64x128xf32>
    %3 = arith.truncf %2 : vector<64x128xf32> to vector<64x128xbf16>
    %c0_2 = arith.constant 0 : index
    %c0_3 = arith.constant 0 : index
    %4 = vector.load %arg2[%c0_2, %c0_3] : memref<64x128xbf16, #tpu.memory_space<vmem>>, vector<64x128xbf16>
    tpu.vector_store %arg2[%c0_2, %c0_3], %3 {strides = array<i32>} : memref<64x128xbf16, #tpu.memory_space<vmem>>, vector<64x128xbf16>,
    return
  }
  func.func @transform_0(%arg0: i32) -> (i32, i32, i32) {
    %c0_i32 = arith.constant 0 : i32
    %c0_i32_0 = arith.constant 0 : i32
    %c0_i32_1 = arith.constant 0 : i32
    return %c0_i32, %arg0, %c0_i32_0 : i32, i32, i32
  }
  func.func @transform_1(%arg0: i32) -> (i32, i32) {
    %c0_i32 = arith.constant 0 : i32
    %c0_i32_0 = arith.constant 0 : i32
    return %arg0, %c0_i32 : i32, i32
  }
}

module attributes {stable_mosaic.version = 11 : i64} {
  func.func @_mm_kernel(%arg0: i32, %arg1: i32, %arg2: i32, %arg3: memref<128x128xbf16, #tpu.memory_space<vmem>>, %arg4: memref<128x128xbf16, #tpu.memory_space<vmem>>, %arg5: memref<1x128xf32, #tpu.memory_space<vmem>>, %arg6: memref<128x128xbf16, #tpu.memory_space<vmem>>, %arg7: memref<128x128xf32, #tpu.memory_space<vmem>>) attributes {dimension_semantics = [#tpu.dimension_semantics<parallel>, #tpu.dimension_semantics<parallel>, #tpu.dimension_semantics<arbitrary>], iteration_bounds = array<i64: 1, 1, 5>, scalar_prefetch = 0 : i64, scratch_operands = 1 : i64, tpu.core_type = #tpu.core_type<tc>, window_params = [{transform_indices = @transform_0, window_bounds = array<i64: 128, 128>}, {transform_indices = @transform_1, window_bounds = array<i64: 128, 128>}, {transform_indices = @transform_2, window_bounds = array<i64: 1, 128>}, {transform_indices = @transform_3, window_bounds = array<i64: 128, 128>}]} {
    %c0_i32 = arith.constant 0 : i32
    %0 = arith.cmpi eq, %arg2, %c0_i32 : i32
    %1 = arith.extui %0 : i1 to i32
    %c0_i32_0 = arith.constant 0 : i32
    %2 = arith.cmpi ne, %1, %c0_i32_0 : i32
    scf.if %2 {
      %cst_9 = arith.constant 0.000000e+00 : f32
      %12 = vector.broadcast %cst_9 : f32 to vector<128x128xf32>
      %c0_10 = arith.constant 0 : index
      %c0_11 = arith.constant 0 : index
      %13 = vector.load %arg7[%c0_10, %c0_11] : memref<128x128xf32, #tpu.memory_space<vmem>>, vector<128x128xf32>
      tpu.vector_store %arg7[%c0_10, %c0_11], %12 {strides = array<i32>} : memref<128x128xf32, #tpu.memory_space<vmem>>, vector<128x128xf32>,
    } else {
    }
    %c0 = arith.constant 0 : index
    %c0_1 = arith.constant 0 : index
    %3 = vector.load %arg7[%c0, %c0_1] : memref<128x128xf32, #tpu.memory_space<vmem>>, vector<128x128xf32>
    %c0_2 = arith.constant 0 : index
    %c0_3 = arith.constant 0 : index
    %4 = vector.load %arg3[%c0_2, %c0_3] : memref<128x128xbf16, #tpu.memory_space<vmem>>, vector<128x128xbf16>
    %c0_4 = arith.constant 0 : index
    %c0_5 = arith.constant 0 : index
    %5 = vector.load %arg4[%c0_4, %c0_5] : memref<128x128xbf16, #tpu.memory_space<vmem>>, vector<128x128xbf16>
    %cst = arith.constant dense<0.000000e+00> : vector<128x128xf32>
    %6 = tpu.matmul %4, %5, %cst {dimension_numbers = #tpu.dot_dimension_numbers<[1], [0], [0], [1], [0, 0, 1, 1], [], []>} : vector<128x128xbf16>, vector<128x128xbf16>, vector<128x128xf32> -> vector<128x128xf32>
    %7 = arith.addf %3, %6 : vector<128x128xf32>
    %c0_6 = arith.constant 0 : index
    %c0_7 = arith.constant 0 : index
    %8 = vector.load %arg7[%c0_6, %c0_7] : memref<128x128xf32, #tpu.memory_space<vmem>>, vector<128x128xf32>
    tpu.vector_store %arg7[%c0_6, %c0_7], %7 {strides = array<i32>} : memref<128x128xf32, #tpu.memory_space<vmem>>, vector<128x128xf32>,
    %c4_i32 = arith.constant 4 : i32
    %9 = arith.cmpi eq, %arg2, %c4_i32 : i32
    %10 = arith.extui %9 : i1 to i32
    %c0_i32_8 = arith.constant 0 : i32
    %11 = arith.cmpi ne, %10, %c0_i32_8 : i32
    scf.if %11 {
      %c0_9 = arith.constant 0 : index
      %c0_10 = arith.constant 0 : index
      %12 = vector.load %arg7[%c0_9, %c0_10] : memref<128x128xf32, #tpu.memory_space<vmem>>, vector<128x128xf32>
      %c0_11 = arith.constant 0 : index
      %c0_12 = arith.constant 0 : index
      %13 = vector.load %arg5[%c0_11, %c0_12] : memref<1x128xf32, #tpu.memory_space<vmem>>, vector<1x128xf32>
      %14 = vector.broadcast %13 : vector<1x128xf32> to vector<128x128xf32>
      %15 = arith.addf %12, %14 : vector<128x128xf32>
      %cst_13 = arith.constant 0.000000e+00 : f32
      %16 = vector.broadcast %cst_13 : f32 to vector<128x128xf32>
      %17 = arith.maximumf %15, %16 : vector<128x128xf32>
      %18 = arith.truncf %17 : vector<128x128xf32> to vector<128x128xbf16>
      %c0_14 = arith.constant 0 : index
      %c0_15 = arith.constant 0 : index
      %19 = vector.load %arg6[%c0_14, %c0_15] : memref<128x128xbf16, #tpu.memory_space<vmem>>, vector<128x128xbf16>
      tpu.vector_store %arg6[%c0_14, %c0_15], %18 {strides = array<i32>} : memref<128x128xbf16, #tpu.memory_space<vmem>>, vector<128x128xbf16>,
    } else {
    }
    return
  }
  func.func @transform_0(%arg0: i32, %arg1: i32, %arg2: i32) -> (i32, i32) {
    %c0_i32 = arith.constant 0 : i32
    return %arg0, %arg2 : i32, i32
  }
  func.func @transform_1(%arg0: i32, %arg1: i32, %arg2: i32) -> (i32, i32) {
    %c0_i32 = arith.constant 0 : i32
    return %arg2, %arg1 : i32, i32
  }
  func.func @transform_2(%arg0: i32, %arg1: i32, %arg2: i32) -> (i32, i32) {
    %c0_i32 = arith.constant 0 : i32
    %c0_i32_0 = arith.constant 0 : i32
    return %c0_i32, %arg1 : i32, i32
  }
  func.func @transform_3(%arg0: i32, %arg1: i32, %arg2: i32) -> (i32, i32) {
    %c0_i32 = arith.constant 0 : i32
    return %arg0, %arg1 : i32, i32
  }
}

module attributes {stable_mosaic.version = 11 : i64} {
  func.func @_mm_res_kernel(%arg0: i32, %arg1: i32, %arg2: i32, %arg3: memref<128x128xbf16, #tpu.memory_space<vmem>>, %arg4: memref<128x128xbf16, #tpu.memory_space<vmem>>, %arg5: memref<1x128xf32, #tpu.memory_space<vmem>>, %arg6: memref<128x128xbf16, #tpu.memory_space<vmem>>, %arg7: memref<128x128xbf16, #tpu.memory_space<vmem>>, %arg8: memref<128x128xf32, #tpu.memory_space<vmem>>) attributes {dimension_semantics = [#tpu.dimension_semantics<parallel>, #tpu.dimension_semantics<parallel>, #tpu.dimension_semantics<arbitrary>], iteration_bounds = array<i64: 1, 1, 5>, scalar_prefetch = 0 : i64, scratch_operands = 1 : i64, tpu.core_type = #tpu.core_type<tc>, window_params = [{transform_indices = @transform_0, window_bounds = array<i64: 128, 128>}, {transform_indices = @transform_1, window_bounds = array<i64: 128, 128>}, {transform_indices = @transform_2, window_bounds = array<i64: 1, 128>}, {transform_indices = @transform_3, window_bounds = array<i64: 128, 128>}, {transform_indices = @transform_4, window_bounds = array<i64: 128, 128>}]} {
    %c0_i32 = arith.constant 0 : i32
    %0 = arith.cmpi eq, %arg2, %c0_i32 : i32
    %1 = arith.extui %0 : i1 to i32
    %c0_i32_0 = arith.constant 0 : i32
    %2 = arith.cmpi ne, %1, %c0_i32_0 : i32
    scf.if %2 {
      %cst_9 = arith.constant 0.000000e+00 : f32
      %12 = vector.broadcast %cst_9 : f32 to vector<128x128xf32>
      %c0_10 = arith.constant 0 : index
      %c0_11 = arith.constant 0 : index
      %13 = vector.load %arg8[%c0_10, %c0_11] : memref<128x128xf32, #tpu.memory_space<vmem>>, vector<128x128xf32>
      tpu.vector_store %arg8[%c0_10, %c0_11], %12 {strides = array<i32>} : memref<128x128xf32, #tpu.memory_space<vmem>>, vector<128x128xf32>,
    } else {
    }
    %c0 = arith.constant 0 : index
    %c0_1 = arith.constant 0 : index
    %3 = vector.load %arg8[%c0, %c0_1] : memref<128x128xf32, #tpu.memory_space<vmem>>, vector<128x128xf32>
    %c0_2 = arith.constant 0 : index
    %c0_3 = arith.constant 0 : index
    %4 = vector.load %arg3[%c0_2, %c0_3] : memref<128x128xbf16, #tpu.memory_space<vmem>>, vector<128x128xbf16>
    %c0_4 = arith.constant 0 : index
    %c0_5 = arith.constant 0 : index
    %5 = vector.load %arg4[%c0_4, %c0_5] : memref<128x128xbf16, #tpu.memory_space<vmem>>, vector<128x128xbf16>
    %cst = arith.constant dense<0.000000e+00> : vector<128x128xf32>
    %6 = tpu.matmul %4, %5, %cst {dimension_numbers = #tpu.dot_dimension_numbers<[1], [0], [0], [1], [0, 0, 1, 1], [], []>} : vector<128x128xbf16>, vector<128x128xbf16>, vector<128x128xf32> -> vector<128x128xf32>
    %7 = arith.addf %3, %6 : vector<128x128xf32>
    %c0_6 = arith.constant 0 : index
    %c0_7 = arith.constant 0 : index
    %8 = vector.load %arg8[%c0_6, %c0_7] : memref<128x128xf32, #tpu.memory_space<vmem>>, vector<128x128xf32>
    tpu.vector_store %arg8[%c0_6, %c0_7], %7 {strides = array<i32>} : memref<128x128xf32, #tpu.memory_space<vmem>>, vector<128x128xf32>,
    %c4_i32 = arith.constant 4 : i32
    %9 = arith.cmpi eq, %arg2, %c4_i32 : i32
    %10 = arith.extui %9 : i1 to i32
    %c0_i32_8 = arith.constant 0 : i32
    %11 = arith.cmpi ne, %10, %c0_i32_8 : i32
    scf.if %11 {
      %c0_9 = arith.constant 0 : index
      %c0_10 = arith.constant 0 : index
      %12 = vector.load %arg8[%c0_9, %c0_10] : memref<128x128xf32, #tpu.memory_space<vmem>>, vector<128x128xf32>
      %c0_11 = arith.constant 0 : index
      %c0_12 = arith.constant 0 : index
      %13 = vector.load %arg5[%c0_11, %c0_12] : memref<1x128xf32, #tpu.memory_space<vmem>>, vector<1x128xf32>
      %14 = vector.broadcast %13 : vector<1x128xf32> to vector<128x128xf32>
      %15 = arith.addf %12, %14 : vector<128x128xf32>
      %c0_13 = arith.constant 0 : index
      %c0_14 = arith.constant 0 : index
      %16 = vector.load %arg6[%c0_13, %c0_14] : memref<128x128xbf16, #tpu.memory_space<vmem>>, vector<128x128xbf16>
      %17 = arith.extf %16 : vector<128x128xbf16> to vector<128x128xf32>
      %18 = arith.addf %15, %17 : vector<128x128xf32>
      %cst_15 = arith.constant 0.000000e+00 : f32
      %19 = vector.broadcast %cst_15 : f32 to vector<128x128xf32>
      %20 = arith.maximumf %18, %19 : vector<128x128xf32>
      %21 = arith.truncf %20 : vector<128x128xf32> to vector<128x128xbf16>
      %c0_16 = arith.constant 0 : index
      %c0_17 = arith.constant 0 : index
      %22 = vector.load %arg7[%c0_16, %c0_17] : memref<128x128xbf16, #tpu.memory_space<vmem>>, vector<128x128xbf16>
      tpu.vector_store %arg7[%c0_16, %c0_17], %21 {strides = array<i32>} : memref<128x128xbf16, #tpu.memory_space<vmem>>, vector<128x128xbf16>,
    } else {
    }
    return
  }
  func.func @transform_0(%arg0: i32, %arg1: i32, %arg2: i32) -> (i32, i32) {
    %c0_i32 = arith.constant 0 : i32
    return %arg0, %arg2 : i32, i32
  }
  func.func @transform_1(%arg0: i32, %arg1: i32, %arg2: i32) -> (i32, i32) {
    %c0_i32 = arith.constant 0 : i32
    return %arg2, %arg1 : i32, i32
  }
  func.func @transform_2(%arg0: i32, %arg1: i32, %arg2: i32) -> (i32, i32) {
    %c0_i32 = arith.constant 0 : i32
    %c0_i32_0 = arith.constant 0 : i32
    return %c0_i32, %arg1 : i32, i32
  }
  func.func @transform_3(%arg0: i32, %arg1: i32, %arg2: i32) -> (i32, i32) {
    %c0_i32 = arith.constant 0 : i32
    return %arg0, %arg1 : i32, i32
  }
  func.func @transform_4(%arg0: i32, %arg1: i32, %arg2: i32) -> (i32, i32) {
    %c0_i32 = arith.constant 0 : i32
    return %arg0, %arg1 : i32, i32
  }
}

module attributes {stable_mosaic.version = 11 : i64} {
  func.func @_mm_kernel(%arg0: i32, %arg1: i32, %arg2: i32, %arg3: memref<32x128xbf16, #tpu.memory_space<vmem>>, %arg4: memref<128x128xbf16, #tpu.memory_space<vmem>>, %arg5: memref<1x128xf32, #tpu.memory_space<vmem>>, %arg6: memref<32x128xbf16, #tpu.memory_space<vmem>>, %arg7: memref<32x128xf32, #tpu.memory_space<vmem>>) attributes {dimension_semantics = [#tpu.dimension_semantics<parallel>, #tpu.dimension_semantics<parallel>, #tpu.dimension_semantics<arbitrary>], iteration_bounds = array<i64: 1, 1, 5>, scalar_prefetch = 0 : i64, scratch_operands = 1 : i64, tpu.core_type = #tpu.core_type<tc>, window_params = [{transform_indices = @transform_0, window_bounds = array<i64: 32, 128>}, {transform_indices = @transform_1, window_bounds = array<i64: 128, 128>}, {transform_indices = @transform_2, window_bounds = array<i64: 1, 128>}, {transform_indices = @transform_3, window_bounds = array<i64: 32, 128>}]} {
    %c0_i32 = arith.constant 0 : i32
    %0 = arith.cmpi eq, %arg2, %c0_i32 : i32
    %1 = arith.extui %0 : i1 to i32
    %c0_i32_0 = arith.constant 0 : i32
    %2 = arith.cmpi ne, %1, %c0_i32_0 : i32
    scf.if %2 {
      %cst_9 = arith.constant 0.000000e+00 : f32
      %12 = vector.broadcast %cst_9 : f32 to vector<32x128xf32>
      %c0_10 = arith.constant 0 : index
      %c0_11 = arith.constant 0 : index
      %13 = vector.load %arg7[%c0_10, %c0_11] : memref<32x128xf32, #tpu.memory_space<vmem>>, vector<32x128xf32>
      tpu.vector_store %arg7[%c0_10, %c0_11], %12 {strides = array<i32>} : memref<32x128xf32, #tpu.memory_space<vmem>>, vector<32x128xf32>,
    } else {
    }
    %c0 = arith.constant 0 : index
    %c0_1 = arith.constant 0 : index
    %3 = vector.load %arg7[%c0, %c0_1] : memref<32x128xf32, #tpu.memory_space<vmem>>, vector<32x128xf32>
    %c0_2 = arith.constant 0 : index
    %c0_3 = arith.constant 0 : index
    %4 = vector.load %arg3[%c0_2, %c0_3] : memref<32x128xbf16, #tpu.memory_space<vmem>>, vector<32x128xbf16>
    %c0_4 = arith.constant 0 : index
    %c0_5 = arith.constant 0 : index
    %5 = vector.load %arg4[%c0_4, %c0_5] : memref<128x128xbf16, #tpu.memory_space<vmem>>, vector<128x128xbf16>
    %cst = arith.constant dense<0.000000e+00> : vector<32x128xf32>
    %6 = tpu.matmul %4, %5, %cst {dimension_numbers = #tpu.dot_dimension_numbers<[1], [0], [0], [1], [0, 0, 1, 1], [], []>} : vector<32x128xbf16>, vector<128x128xbf16>, vector<32x128xf32> -> vector<32x128xf32>
    %7 = arith.addf %3, %6 : vector<32x128xf32>
    %c0_6 = arith.constant 0 : index
    %c0_7 = arith.constant 0 : index
    %8 = vector.load %arg7[%c0_6, %c0_7] : memref<32x128xf32, #tpu.memory_space<vmem>>, vector<32x128xf32>
    tpu.vector_store %arg7[%c0_6, %c0_7], %7 {strides = array<i32>} : memref<32x128xf32, #tpu.memory_space<vmem>>, vector<32x128xf32>,
    %c4_i32 = arith.constant 4 : i32
    %9 = arith.cmpi eq, %arg2, %c4_i32 : i32
    %10 = arith.extui %9 : i1 to i32
    %c0_i32_8 = arith.constant 0 : i32
    %11 = arith.cmpi ne, %10, %c0_i32_8 : i32
    scf.if %11 {
      %c0_9 = arith.constant 0 : index
      %c0_10 = arith.constant 0 : index
      %12 = vector.load %arg7[%c0_9, %c0_10] : memref<32x128xf32, #tpu.memory_space<vmem>>, vector<32x128xf32>
      %c0_11 = arith.constant 0 : index
      %c0_12 = arith.constant 0 : index
      %13 = vector.load %arg5[%c0_11, %c0_12] : memref<1x128xf32, #tpu.memory_space<vmem>>, vector<1x128xf32>
      %14 = vector.broadcast %13 : vector<1x128xf32> to vector<32x128xf32>
      %15 = arith.addf %12, %14 : vector<32x128xf32>
      %cst_13 = arith.constant 0.000000e+00 : f32
      %16 = vector.broadcast %cst_13 : f32 to vector<32x128xf32>
      %17 = arith.maximumf %15, %16 : vector<32x128xf32>
      %18 = arith.truncf %17 : vector<32x128xf32> to vector<32x128xbf16>
      %c0_14 = arith.constant 0 : index
      %c0_15 = arith.constant 0 : index
      %19 = vector.load %arg6[%c0_14, %c0_15] : memref<32x128xbf16, #tpu.memory_space<vmem>>, vector<32x128xbf16>
      tpu.vector_store %arg6[%c0_14, %c0_15], %18 {strides = array<i32>} : memref<32x128xbf16, #tpu.memory_space<vmem>>, vector<32x128xbf16>,
    } else {
    }
    return
  }
  func.func @transform_0(%arg0: i32, %arg1: i32, %arg2: i32) -> (i32, i32) {
    %c0_i32 = arith.constant 0 : i32
    return %arg0, %arg2 : i32, i32
  }
  func.func @transform_1(%arg0: i32, %arg1: i32, %arg2: i32) -> (i32, i32) {
    %c0_i32 = arith.constant 0 : i32
    return %arg2, %arg1 : i32, i32
  }
  func.func @transform_2(%arg0: i32, %arg1: i32, %arg2: i32) -> (i32, i32) {
    %c0_i32 = arith.constant 0 : i32
    %c0_i32_0 = arith.constant 0 : i32
    return %c0_i32, %arg1 : i32, i32
  }
  func.func @transform_3(%arg0: i32, %arg1: i32, %arg2: i32) -> (i32, i32) {
    %c0_i32 = arith.constant 0 : i32
    return %arg0, %arg1 : i32, i32
  }
}

module attributes {stable_mosaic.version = 11 : i64} {
  func.func @_mm_kernel(%arg0: i32, %arg1: i32, %arg2: i32, %arg3: memref<32x128xbf16, #tpu.memory_space<vmem>>, %arg4: memref<128x128xbf16, #tpu.memory_space<vmem>>, %arg5: memref<1x128xf32, #tpu.memory_space<vmem>>, %arg6: memref<32x128xbf16, #tpu.memory_space<vmem>>, %arg7: memref<32x128xf32, #tpu.memory_space<vmem>>) attributes {dimension_semantics = [#tpu.dimension_semantics<parallel>, #tpu.dimension_semantics<parallel>, #tpu.dimension_semantics<arbitrary>], iteration_bounds = array<i64: 1, 1, 1>, scalar_prefetch = 0 : i64, scratch_operands = 1 : i64, tpu.core_type = #tpu.core_type<tc>, window_params = [{transform_indices = @transform_0, window_bounds = array<i64: 32, 128>}, {transform_indices = @transform_1, window_bounds = array<i64: 128, 128>}, {transform_indices = @transform_2, window_bounds = array<i64: 1, 128>}, {transform_indices = @transform_3, window_bounds = array<i64: 32, 128>}]} {
    %c0_i32 = arith.constant 0 : i32
    %0 = arith.cmpi eq, %arg2, %c0_i32 : i32
    %1 = arith.extui %0 : i1 to i32
    %c0_i32_0 = arith.constant 0 : i32
    %2 = arith.cmpi ne, %1, %c0_i32_0 : i32
    scf.if %2 {
      %cst_10 = arith.constant 0.000000e+00 : f32
      %12 = vector.broadcast %cst_10 : f32 to vector<32x128xf32>
      %c0_11 = arith.constant 0 : index
      %c0_12 = arith.constant 0 : index
      %13 = vector.load %arg7[%c0_11, %c0_12] : memref<32x128xf32, #tpu.memory_space<vmem>>, vector<32x128xf32>
      tpu.vector_store %arg7[%c0_11, %c0_12], %12 {strides = array<i32>} : memref<32x128xf32, #tpu.memory_space<vmem>>, vector<32x128xf32>,
    } else {
    }
    %c0 = arith.constant 0 : index
    %c0_1 = arith.constant 0 : index
    %3 = vector.load %arg7[%c0, %c0_1] : memref<32x128xf32, #tpu.memory_space<vmem>>, vector<32x128xf32>
    %c0_2 = arith.constant 0 : index
    %c0_3 = arith.constant 0 : index
    %4 = vector.load %arg3[%c0_2, %c0_3] : memref<32x128xbf16, #tpu.memory_space<vmem>>, vector<32x128xbf16>
    %c0_4 = arith.constant 0 : index
    %c0_5 = arith.constant 0 : index
    %5 = vector.load %arg4[%c0_4, %c0_5] : memref<128x128xbf16, #tpu.memory_space<vmem>>, vector<128x128xbf16>
    %cst = arith.constant dense<0.000000e+00> : vector<32x128xf32>
    %6 = tpu.matmul %4, %5, %cst {dimension_numbers = #tpu.dot_dimension_numbers<[1], [0], [0], [1], [0, 0, 1, 1], [], []>} : vector<32x128xbf16>, vector<128x128xbf16>, vector<32x128xf32> -> vector<32x128xf32>
    %7 = arith.addf %3, %6 : vector<32x128xf32>
    %c0_6 = arith.constant 0 : index
    %c0_7 = arith.constant 0 : index
    %8 = vector.load %arg7[%c0_6, %c0_7] : memref<32x128xf32, #tpu.memory_space<vmem>>, vector<32x128xf32>
    tpu.vector_store %arg7[%c0_6, %c0_7], %7 {strides = array<i32>} : memref<32x128xf32, #tpu.memory_space<vmem>>, vector<32x128xf32>,
    %c0_i32_8 = arith.constant 0 : i32
    %9 = arith.cmpi eq, %arg2, %c0_i32_8 : i32
    %10 = arith.extui %9 : i1 to i32
    %c0_i32_9 = arith.constant 0 : i32
    %11 = arith.cmpi ne, %10, %c0_i32_9 : i32
    scf.if %11 {
      %c0_10 = arith.constant 0 : index
      %c0_11 = arith.constant 0 : index
      %12 = vector.load %arg7[%c0_10, %c0_11] : memref<32x128xf32, #tpu.memory_space<vmem>>, vector<32x128xf32>
      %c0_12 = arith.constant 0 : index
      %c0_13 = arith.constant 0 : index
      %13 = vector.load %arg5[%c0_12, %c0_13] : memref<1x128xf32, #tpu.memory_space<vmem>>, vector<1x128xf32>
      %14 = vector.broadcast %13 : vector<1x128xf32> to vector<32x128xf32>
      %15 = arith.addf %12, %14 : vector<32x128xf32>
      %16 = arith.truncf %15 : vector<32x128xf32> to vector<32x128xbf16>
      %c0_14 = arith.constant 0 : index
      %c0_15 = arith.constant 0 : index
      %17 = vector.load %arg6[%c0_14, %c0_15] : memref<32x128xbf16, #tpu.memory_space<vmem>>, vector<32x128xbf16>
      tpu.vector_store %arg6[%c0_14, %c0_15], %16 {strides = array<i32>} : memref<32x128xbf16, #tpu.memory_space<vmem>>, vector<32x128xbf16>,
    } else {
    }
    return
  }
  func.func @transform_0(%arg0: i32, %arg1: i32, %arg2: i32) -> (i32, i32) {
    %c0_i32 = arith.constant 0 : i32
    return %arg0, %arg2 : i32, i32
  }
  func.func @transform_1(%arg0: i32, %arg1: i32, %arg2: i32) -> (i32, i32) {
    %c0_i32 = arith.constant 0 : i32
    return %arg2, %arg1 : i32, i32
  }
  func.func @transform_2(%arg0: i32, %arg1: i32, %arg2: i32) -> (i32, i32) {
    %c0_i32 = arith.constant 0 : i32
    %c0_i32_0 = arith.constant 0 : i32
    return %c0_i32, %arg1 : i32, i32
  }
  func.func @transform_3(%arg0: i32, %arg1: i32, %arg2: i32) -> (i32, i32) {
    %c0_i32 = arith.constant 0 : i32
    return %arg0, %arg1 : i32, i32
  }
}

module attributes {stable_mosaic.version = 11 : i64} {
  func.func @_mm_res_kernel(%arg0: i32, %arg1: i32, %arg2: i32, %arg3: memref<32x128xbf16, #tpu.memory_space<vmem>>, %arg4: memref<128x128xbf16, #tpu.memory_space<vmem>>, %arg5: memref<1x128xf32, #tpu.memory_space<vmem>>, %arg6: memref<32x128xbf16, #tpu.memory_space<vmem>>, %arg7: memref<32x128xbf16, #tpu.memory_space<vmem>>, %arg8: memref<32x128xf32, #tpu.memory_space<vmem>>) attributes {dimension_semantics = [#tpu.dimension_semantics<parallel>, #tpu.dimension_semantics<parallel>, #tpu.dimension_semantics<arbitrary>], iteration_bounds = array<i64: 1, 1, 9>, scalar_prefetch = 0 : i64, scratch_operands = 1 : i64, tpu.core_type = #tpu.core_type<tc>, window_params = [{transform_indices = @transform_0, window_bounds = array<i64: 32, 128>}, {transform_indices = @transform_1, window_bounds = array<i64: 128, 128>}, {transform_indices = @transform_2, window_bounds = array<i64: 1, 128>}, {transform_indices = @transform_3, window_bounds = array<i64: 32, 128>}, {transform_indices = @transform_4, window_bounds = array<i64: 32, 128>}]} {
    %c0_i32 = arith.constant 0 : i32
    %0 = arith.cmpi eq, %arg2, %c0_i32 : i32
    %1 = arith.extui %0 : i1 to i32
    %c0_i32_0 = arith.constant 0 : i32
    %2 = arith.cmpi ne, %1, %c0_i32_0 : i32
    scf.if %2 {
      %cst_9 = arith.constant 0.000000e+00 : f32
      %12 = vector.broadcast %cst_9 : f32 to vector<32x128xf32>
      %c0_10 = arith.constant 0 : index
      %c0_11 = arith.constant 0 : index
      %13 = vector.load %arg8[%c0_10, %c0_11] : memref<32x128xf32, #tpu.memory_space<vmem>>, vector<32x128xf32>
      tpu.vector_store %arg8[%c0_10, %c0_11], %12 {strides = array<i32>} : memref<32x128xf32, #tpu.memory_space<vmem>>, vector<32x128xf32>,
    } else {
    }
    %c0 = arith.constant 0 : index
    %c0_1 = arith.constant 0 : index
    %3 = vector.load %arg8[%c0, %c0_1] : memref<32x128xf32, #tpu.memory_space<vmem>>, vector<32x128xf32>
    %c0_2 = arith.constant 0 : index
    %c0_3 = arith.constant 0 : index
    %4 = vector.load %arg3[%c0_2, %c0_3] : memref<32x128xbf16, #tpu.memory_space<vmem>>, vector<32x128xbf16>
    %c0_4 = arith.constant 0 : index
    %c0_5 = arith.constant 0 : index
    %5 = vector.load %arg4[%c0_4, %c0_5] : memref<128x128xbf16, #tpu.memory_space<vmem>>, vector<128x128xbf16>
    %cst = arith.constant dense<0.000000e+00> : vector<32x128xf32>
    %6 = tpu.matmul %4, %5, %cst {dimension_numbers = #tpu.dot_dimension_numbers<[1], [0], [0], [1], [0, 0, 1, 1], [], []>} : vector<32x128xbf16>, vector<128x128xbf16>, vector<32x128xf32> -> vector<32x128xf32>
    %7 = arith.addf %3, %6 : vector<32x128xf32>
    %c0_6 = arith.constant 0 : index
    %c0_7 = arith.constant 0 : index
    %8 = vector.load %arg8[%c0_6, %c0_7] : memref<32x128xf32, #tpu.memory_space<vmem>>, vector<32x128xf32>
    tpu.vector_store %arg8[%c0_6, %c0_7], %7 {strides = array<i32>} : memref<32x128xf32, #tpu.memory_space<vmem>>, vector<32x128xf32>,
    %c8_i32 = arith.constant 8 : i32
    %9 = arith.cmpi eq, %arg2, %c8_i32 : i32
    %10 = arith.extui %9 : i1 to i32
    %c0_i32_8 = arith.constant 0 : i32
    %11 = arith.cmpi ne, %10, %c0_i32_8 : i32
    scf.if %11 {
      %c0_9 = arith.constant 0 : index
      %c0_10 = arith.constant 0 : index
      %12 = vector.load %arg8[%c0_9, %c0_10] : memref<32x128xf32, #tpu.memory_space<vmem>>, vector<32x128xf32>
      %c0_11 = arith.constant 0 : index
      %c0_12 = arith.constant 0 : index
      %13 = vector.load %arg5[%c0_11, %c0_12] : memref<1x128xf32, #tpu.memory_space<vmem>>, vector<1x128xf32>
      %14 = vector.broadcast %13 : vector<1x128xf32> to vector<32x128xf32>
      %15 = arith.addf %12, %14 : vector<32x128xf32>
      %c0_13 = arith.constant 0 : index
      %c0_14 = arith.constant 0 : index
      %16 = vector.load %arg6[%c0_13, %c0_14] : memref<32x128xbf16, #tpu.memory_space<vmem>>, vector<32x128xbf16>
      %17 = arith.extf %16 : vector<32x128xbf16> to vector<32x128xf32>
      %18 = arith.addf %15, %17 : vector<32x128xf32>
      %cst_15 = arith.constant 0.000000e+00 : f32
      %19 = vector.broadcast %cst_15 : f32 to vector<32x128xf32>
      %20 = arith.maximumf %18, %19 : vector<32x128xf32>
      %21 = arith.truncf %20 : vector<32x128xf32> to vector<32x128xbf16>
      %c0_16 = arith.constant 0 : index
      %c0_17 = arith.constant 0 : index
      %22 = vector.load %arg7[%c0_16, %c0_17] : memref<32x128xbf16, #tpu.memory_space<vmem>>, vector<32x128xbf16>
      tpu.vector_store %arg7[%c0_16, %c0_17], %21 {strides = array<i32>} : memref<32x128xbf16, #tpu.memory_space<vmem>>, vector<32x128xbf16>,
    } else {
    }
    return
  }
  func.func @transform_0(%arg0: i32, %arg1: i32, %arg2: i32) -> (i32, i32) {
    %c0_i32 = arith.constant 0 : i32
    return %arg0, %arg2 : i32, i32
  }
  func.func @transform_1(%arg0: i32, %arg1: i32, %arg2: i32) -> (i32, i32) {
    %c0_i32 = arith.constant 0 : i32
    return %arg2, %arg1 : i32, i32
  }
  func.func @transform_2(%arg0: i32, %arg1: i32, %arg2: i32) -> (i32, i32) {
    %c0_i32 = arith.constant 0 : i32
    %c0_i32_0 = arith.constant 0 : i32
    return %c0_i32, %arg1 : i32, i32
  }
  func.func @transform_3(%arg0: i32, %arg1: i32, %arg2: i32) -> (i32, i32) {
    %c0_i32 = arith.constant 0 : i32
    return %arg0, %arg1 : i32, i32
  }
  func.func @transform_4(%arg0: i32, %arg1: i32, %arg2: i32) -> (i32, i32) {
    %c0_i32 = arith.constant 0 : i32
    return %arg0, %arg1 : i32, i32
  }
}

module attributes {stable_mosaic.version = 11 : i64} {
  func.func @_mm_kernel(%arg0: i32, %arg1: i32, %arg2: i32, %arg3: memref<8x128xbf16, #tpu.memory_space<vmem>>, %arg4: memref<128x256xbf16, #tpu.memory_space<vmem>>, %arg5: memref<1x256xf32, #tpu.memory_space<vmem>>, %arg6: memref<8x256xbf16, #tpu.memory_space<vmem>>, %arg7: memref<8x256xf32, #tpu.memory_space<vmem>>) attributes {dimension_semantics = [#tpu.dimension_semantics<parallel>, #tpu.dimension_semantics<parallel>, #tpu.dimension_semantics<arbitrary>], iteration_bounds = array<i64: 1, 1, 9>, scalar_prefetch = 0 : i64, scratch_operands = 1 : i64, tpu.core_type = #tpu.core_type<tc>, window_params = [{transform_indices = @transform_0, window_bounds = array<i64: 8, 128>}, {transform_indices = @transform_1, window_bounds = array<i64: 128, 256>}, {transform_indices = @transform_2, window_bounds = array<i64: 1, 256>}, {transform_indices = @transform_3, window_bounds = array<i64: 8, 256>}]} {
    %c0_i32 = arith.constant 0 : i32
    %0 = arith.cmpi eq, %arg2, %c0_i32 : i32
    %1 = arith.extui %0 : i1 to i32
    %c0_i32_0 = arith.constant 0 : i32
    %2 = arith.cmpi ne, %1, %c0_i32_0 : i32
    scf.if %2 {
      %cst_9 = arith.constant 0.000000e+00 : f32
      %12 = vector.broadcast %cst_9 : f32 to vector<8x256xf32>
      %c0_10 = arith.constant 0 : index
      %c0_11 = arith.constant 0 : index
      %13 = vector.load %arg7[%c0_10, %c0_11] : memref<8x256xf32, #tpu.memory_space<vmem>>, vector<8x256xf32>
      tpu.vector_store %arg7[%c0_10, %c0_11], %12 {strides = array<i32>} : memref<8x256xf32, #tpu.memory_space<vmem>>, vector<8x256xf32>,
    } else {
    }
    %c0 = arith.constant 0 : index
    %c0_1 = arith.constant 0 : index
    %3 = vector.load %arg7[%c0, %c0_1] : memref<8x256xf32, #tpu.memory_space<vmem>>, vector<8x256xf32>
    %c0_2 = arith.constant 0 : index
    %c0_3 = arith.constant 0 : index
    %4 = vector.load %arg3[%c0_2, %c0_3] : memref<8x128xbf16, #tpu.memory_space<vmem>>, vector<8x128xbf16>
    %c0_4 = arith.constant 0 : index
    %c0_5 = arith.constant 0 : index
    %5 = vector.load %arg4[%c0_4, %c0_5] : memref<128x256xbf16, #tpu.memory_space<vmem>>, vector<128x256xbf16>
    %cst = arith.constant dense<0.000000e+00> : vector<8x256xf32>
    %6 = tpu.matmul %4, %5, %cst {dimension_numbers = #tpu.dot_dimension_numbers<[1], [0], [0], [1], [0, 0, 1, 1], [], []>} : vector<8x128xbf16>, vector<128x256xbf16>, vector<8x256xf32> -> vector<8x256xf32>
    %7 = arith.addf %3, %6 : vector<8x256xf32>
    %c0_6 = arith.constant 0 : index
    %c0_7 = arith.constant 0 : index
    %8 = vector.load %arg7[%c0_6, %c0_7] : memref<8x256xf32, #tpu.memory_space<vmem>>, vector<8x256xf32>
    tpu.vector_store %arg7[%c0_6, %c0_7], %7 {strides = array<i32>} : memref<8x256xf32, #tpu.memory_space<vmem>>, vector<8x256xf32>,
    %c8_i32 = arith.constant 8 : i32
    %9 = arith.cmpi eq, %arg2, %c8_i32 : i32
    %10 = arith.extui %9 : i1 to i32
    %c0_i32_8 = arith.constant 0 : i32
    %11 = arith.cmpi ne, %10, %c0_i32_8 : i32
    scf.if %11 {
      %c0_9 = arith.constant 0 : index
      %c0_10 = arith.constant 0 : index
      %12 = vector.load %arg7[%c0_9, %c0_10] : memref<8x256xf32, #tpu.memory_space<vmem>>, vector<8x256xf32>
      %c0_11 = arith.constant 0 : index
      %c0_12 = arith.constant 0 : index
      %13 = vector.load %arg5[%c0_11, %c0_12] : memref<1x256xf32, #tpu.memory_space<vmem>>, vector<1x256xf32>
      %14 = vector.broadcast %13 : vector<1x256xf32> to vector<8x256xf32>
      %15 = arith.addf %12, %14 : vector<8x256xf32>
      %cst_13 = arith.constant 0.000000e+00 : f32
      %16 = vector.broadcast %cst_13 : f32 to vector<8x256xf32>
      %17 = arith.maximumf %15, %16 : vector<8x256xf32>
      %18 = arith.truncf %17 : vector<8x256xf32> to vector<8x256xbf16>
      %c0_14 = arith.constant 0 : index
      %c0_15 = arith.constant 0 : index
      %19 = vector.load %arg6[%c0_14, %c0_15] : memref<8x256xbf16, #tpu.memory_space<vmem>>, vector<8x256xbf16>
      tpu.vector_store %arg6[%c0_14, %c0_15], %18 {strides = array<i32>} : memref<8x256xbf16, #tpu.memory_space<vmem>>, vector<8x256xbf16>,
    } else {
    }
    return
  }
  func.func @transform_0(%arg0: i32, %arg1: i32, %arg2: i32) -> (i32, i32) {
    %c0_i32 = arith.constant 0 : i32
    return %arg0, %arg2 : i32, i32
  }
  func.func @transform_1(%arg0: i32, %arg1: i32, %arg2: i32) -> (i32, i32) {
    %c0_i32 = arith.constant 0 : i32
    return %arg2, %arg1 : i32, i32
  }
  func.func @transform_2(%arg0: i32, %arg1: i32, %arg2: i32) -> (i32, i32) {
    %c0_i32 = arith.constant 0 : i32
    %c0_i32_0 = arith.constant 0 : i32
    return %c0_i32, %arg1 : i32, i32
  }
  func.func @transform_3(%arg0: i32, %arg1: i32, %arg2: i32) -> (i32, i32) {
    %c0_i32 = arith.constant 0 : i32
    return %arg0, %arg1 : i32, i32
  }
}

module attributes {stable_mosaic.version = 11 : i64} {
  func.func @_mm_kernel(%arg0: i32, %arg1: i32, %arg2: i32, %arg3: memref<8x128xbf16, #tpu.memory_space<vmem>>, %arg4: memref<128x256xbf16, #tpu.memory_space<vmem>>, %arg5: memref<1x256xf32, #tpu.memory_space<vmem>>, %arg6: memref<8x256xbf16, #tpu.memory_space<vmem>>, %arg7: memref<8x256xf32, #tpu.memory_space<vmem>>) attributes {dimension_semantics = [#tpu.dimension_semantics<parallel>, #tpu.dimension_semantics<parallel>, #tpu.dimension_semantics<arbitrary>], iteration_bounds = array<i64: 1, 1, 1>, scalar_prefetch = 0 : i64, scratch_operands = 1 : i64, tpu.core_type = #tpu.core_type<tc>, window_params = [{transform_indices = @transform_0, window_bounds = array<i64: 8, 128>}, {transform_indices = @transform_1, window_bounds = array<i64: 128, 256>}, {transform_indices = @transform_2, window_bounds = array<i64: 1, 256>}, {transform_indices = @transform_3, window_bounds = array<i64: 8, 256>}]} {
    %c0_i32 = arith.constant 0 : i32
    %0 = arith.cmpi eq, %arg2, %c0_i32 : i32
    %1 = arith.extui %0 : i1 to i32
    %c0_i32_0 = arith.constant 0 : i32
    %2 = arith.cmpi ne, %1, %c0_i32_0 : i32
    scf.if %2 {
      %cst_10 = arith.constant 0.000000e+00 : f32
      %12 = vector.broadcast %cst_10 : f32 to vector<8x256xf32>
      %c0_11 = arith.constant 0 : index
      %c0_12 = arith.constant 0 : index
      %13 = vector.load %arg7[%c0_11, %c0_12] : memref<8x256xf32, #tpu.memory_space<vmem>>, vector<8x256xf32>
      tpu.vector_store %arg7[%c0_11, %c0_12], %12 {strides = array<i32>} : memref<8x256xf32, #tpu.memory_space<vmem>>, vector<8x256xf32>,
    } else {
    }
    %c0 = arith.constant 0 : index
    %c0_1 = arith.constant 0 : index
    %3 = vector.load %arg7[%c0, %c0_1] : memref<8x256xf32, #tpu.memory_space<vmem>>, vector<8x256xf32>
    %c0_2 = arith.constant 0 : index
    %c0_3 = arith.constant 0 : index
    %4 = vector.load %arg3[%c0_2, %c0_3] : memref<8x128xbf16, #tpu.memory_space<vmem>>, vector<8x128xbf16>
    %c0_4 = arith.constant 0 : index
    %c0_5 = arith.constant 0 : index
    %5 = vector.load %arg4[%c0_4, %c0_5] : memref<128x256xbf16, #tpu.memory_space<vmem>>, vector<128x256xbf16>
    %cst = arith.constant dense<0.000000e+00> : vector<8x256xf32>
    %6 = tpu.matmul %4, %5, %cst {dimension_numbers = #tpu.dot_dimension_numbers<[1], [0], [0], [1], [0, 0, 1, 1], [], []>} : vector<8x128xbf16>, vector<128x256xbf16>, vector<8x256xf32> -> vector<8x256xf32>
    %7 = arith.addf %3, %6 : vector<8x256xf32>
    %c0_6 = arith.constant 0 : index
    %c0_7 = arith.constant 0 : index
    %8 = vector.load %arg7[%c0_6, %c0_7] : memref<8x256xf32, #tpu.memory_space<vmem>>, vector<8x256xf32>
    tpu.vector_store %arg7[%c0_6, %c0_7], %7 {strides = array<i32>} : memref<8x256xf32, #tpu.memory_space<vmem>>, vector<8x256xf32>,
    %c0_i32_8 = arith.constant 0 : i32
    %9 = arith.cmpi eq, %arg2, %c0_i32_8 : i32
    %10 = arith.extui %9 : i1 to i32
    %c0_i32_9 = arith.constant 0 : i32
    %11 = arith.cmpi ne, %10, %c0_i32_9 : i32
    scf.if %11 {
      %c0_10 = arith.constant 0 : index
      %c0_11 = arith.constant 0 : index
      %12 = vector.load %arg7[%c0_10, %c0_11] : memref<8x256xf32, #tpu.memory_space<vmem>>, vector<8x256xf32>
      %c0_12 = arith.constant 0 : index
      %c0_13 = arith.constant 0 : index
      %13 = vector.load %arg5[%c0_12, %c0_13] : memref<1x256xf32, #tpu.memory_space<vmem>>, vector<1x256xf32>
      %14 = vector.broadcast %13 : vector<1x256xf32> to vector<8x256xf32>
      %15 = arith.addf %12, %14 : vector<8x256xf32>
      %16 = arith.truncf %15 : vector<8x256xf32> to vector<8x256xbf16>
      %c0_14 = arith.constant 0 : index
      %c0_15 = arith.constant 0 : index
      %17 = vector.load %arg6[%c0_14, %c0_15] : memref<8x256xbf16, #tpu.memory_space<vmem>>, vector<8x256xbf16>
      tpu.vector_store %arg6[%c0_14, %c0_15], %16 {strides = array<i32>} : memref<8x256xbf16, #tpu.memory_space<vmem>>, vector<8x256xbf16>,
    } else {
    }
    return
  }
  func.func @transform_0(%arg0: i32, %arg1: i32, %arg2: i32) -> (i32, i32) {
    %c0_i32 = arith.constant 0 : i32
    return %arg0, %arg2 : i32, i32
  }
  func.func @transform_1(%arg0: i32, %arg1: i32, %arg2: i32) -> (i32, i32) {
    %c0_i32 = arith.constant 0 : i32
    return %arg2, %arg1 : i32, i32
  }
  func.func @transform_2(%arg0: i32, %arg1: i32, %arg2: i32) -> (i32, i32) {
    %c0_i32 = arith.constant 0 : i32
    %c0_i32_0 = arith.constant 0 : i32
    return %c0_i32, %arg1 : i32, i32
  }
  func.func @transform_3(%arg0: i32, %arg1: i32, %arg2: i32) -> (i32, i32) {
    %c0_i32 = arith.constant 0 : i32
    return %arg0, %arg1 : i32, i32
  }
}

module attributes {stable_mosaic.version = 11 : i64} {
  func.func @_mm_res_kernel(%arg0: i32, %arg1: i32, %arg2: i32, %arg3: memref<8x256xbf16, #tpu.memory_space<vmem>>, %arg4: memref<256x256xbf16, #tpu.memory_space<vmem>>, %arg5: memref<1x256xf32, #tpu.memory_space<vmem>>, %arg6: memref<8x256xbf16, #tpu.memory_space<vmem>>, %arg7: memref<8x256xbf16, #tpu.memory_space<vmem>>, %arg8: memref<8x256xf32, #tpu.memory_space<vmem>>) attributes {dimension_semantics = [#tpu.dimension_semantics<parallel>, #tpu.dimension_semantics<parallel>, #tpu.dimension_semantics<arbitrary>], iteration_bounds = array<i64: 1, 1, 9>, scalar_prefetch = 0 : i64, scratch_operands = 1 : i64, tpu.core_type = #tpu.core_type<tc>, window_params = [{transform_indices = @transform_0, window_bounds = array<i64: 8, 256>}, {transform_indices = @transform_1, window_bounds = array<i64: 256, 256>}, {transform_indices = @transform_2, window_bounds = array<i64: 1, 256>}, {transform_indices = @transform_3, window_bounds = array<i64: 8, 256>}, {transform_indices = @transform_4, window_bounds = array<i64: 8, 256>}]} {
    %c0_i32 = arith.constant 0 : i32
    %0 = arith.cmpi eq, %arg2, %c0_i32 : i32
    %1 = arith.extui %0 : i1 to i32
    %c0_i32_0 = arith.constant 0 : i32
    %2 = arith.cmpi ne, %1, %c0_i32_0 : i32
    scf.if %2 {
      %cst_9 = arith.constant 0.000000e+00 : f32
      %12 = vector.broadcast %cst_9 : f32 to vector<8x256xf32>
      %c0_10 = arith.constant 0 : index
      %c0_11 = arith.constant 0 : index
      %13 = vector.load %arg8[%c0_10, %c0_11] : memref<8x256xf32, #tpu.memory_space<vmem>>, vector<8x256xf32>
      tpu.vector_store %arg8[%c0_10, %c0_11], %12 {strides = array<i32>} : memref<8x256xf32, #tpu.memory_space<vmem>>, vector<8x256xf32>,
    } else {
    }
    %c0 = arith.constant 0 : index
    %c0_1 = arith.constant 0 : index
    %3 = vector.load %arg8[%c0, %c0_1] : memref<8x256xf32, #tpu.memory_space<vmem>>, vector<8x256xf32>
    %c0_2 = arith.constant 0 : index
    %c0_3 = arith.constant 0 : index
    %4 = vector.load %arg3[%c0_2, %c0_3] : memref<8x256xbf16, #tpu.memory_space<vmem>>, vector<8x256xbf16>
    %c0_4 = arith.constant 0 : index
    %c0_5 = arith.constant 0 : index
    %5 = vector.load %arg4[%c0_4, %c0_5] : memref<256x256xbf16, #tpu.memory_space<vmem>>, vector<256x256xbf16>
    %cst = arith.constant dense<0.000000e+00> : vector<8x256xf32>
    %6 = tpu.matmul %4, %5, %cst {dimension_numbers = #tpu.dot_dimension_numbers<[1], [0], [0], [1], [0, 0, 1, 1], [], []>} : vector<8x256xbf16>, vector<256x256xbf16>, vector<8x256xf32> -> vector<8x256xf32>
    %7 = arith.addf %3, %6 : vector<8x256xf32>
    %c0_6 = arith.constant 0 : index
    %c0_7 = arith.constant 0 : index
    %8 = vector.load %arg8[%c0_6, %c0_7] : memref<8x256xf32, #tpu.memory_space<vmem>>, vector<8x256xf32>
    tpu.vector_store %arg8[%c0_6, %c0_7], %7 {strides = array<i32>} : memref<8x256xf32, #tpu.memory_space<vmem>>, vector<8x256xf32>,
    %c8_i32 = arith.constant 8 : i32
    %9 = arith.cmpi eq, %arg2, %c8_i32 : i32
    %10 = arith.extui %9 : i1 to i32
    %c0_i32_8 = arith.constant 0 : i32
    %11 = arith.cmpi ne, %10, %c0_i32_8 : i32
    scf.if %11 {
      %c0_9 = arith.constant 0 : index
      %c0_10 = arith.constant 0 : index
      %12 = vector.load %arg8[%c0_9, %c0_10] : memref<8x256xf32, #tpu.memory_space<vmem>>, vector<8x256xf32>
      %c0_11 = arith.constant 0 : index
      %c0_12 = arith.constant 0 : index
      %13 = vector.load %arg5[%c0_11, %c0_12] : memref<1x256xf32, #tpu.memory_space<vmem>>, vector<1x256xf32>
      %14 = vector.broadcast %13 : vector<1x256xf32> to vector<8x256xf32>
      %15 = arith.addf %12, %14 : vector<8x256xf32>
      %c0_13 = arith.constant 0 : index
      %c0_14 = arith.constant 0 : index
      %16 = vector.load %arg6[%c0_13, %c0_14] : memref<8x256xbf16, #tpu.memory_space<vmem>>, vector<8x256xbf16>
      %17 = arith.extf %16 : vector<8x256xbf16> to vector<8x256xf32>
      %18 = arith.addf %15, %17 : vector<8x256xf32>
      %cst_15 = arith.constant 0.000000e+00 : f32
      %19 = vector.broadcast %cst_15 : f32 to vector<8x256xf32>
      %20 = arith.maximumf %18, %19 : vector<8x256xf32>
      %21 = arith.truncf %20 : vector<8x256xf32> to vector<8x256xbf16>
      %c0_16 = arith.constant 0 : index
      %c0_17 = arith.constant 0 : index
      %22 = vector.load %arg7[%c0_16, %c0_17] : memref<8x256xbf16, #tpu.memory_space<vmem>>, vector<8x256xbf16>
      tpu.vector_store %arg7[%c0_16, %c0_17], %21 {strides = array<i32>} : memref<8x256xbf16, #tpu.memory_space<vmem>>, vector<8x256xbf16>,
    } else {
    }
    return
  }
  func.func @transform_0(%arg0: i32, %arg1: i32, %arg2: i32) -> (i32, i32) {
    %c0_i32 = arith.constant 0 : i32
    return %arg0, %arg2 : i32, i32
  }
  func.func @transform_1(%arg0: i32, %arg1: i32, %arg2: i32) -> (i32, i32) {
    %c0_i32 = arith.constant 0 : i32
    return %arg2, %arg1 : i32, i32
  }
  func.func @transform_2(%arg0: i32, %arg1: i32, %arg2: i32) -> (i32, i32) {
    %c0_i32 = arith.constant 0 : i32
    %c0_i32_0 = arith.constant 0 : i32
    return %c0_i32, %arg1 : i32, i32
  }
  func.func @transform_3(%arg0: i32, %arg1: i32, %arg2: i32) -> (i32, i32) {
    %c0_i32 = arith.constant 0 : i32
    return %arg0, %arg1 : i32, i32
  }
  func.func @transform_4(%arg0: i32, %arg1: i32, %arg2: i32) -> (i32, i32) {
    %c0_i32 = arith.constant 0 : i32
    return %arg0, %arg1 : i32, i32
  }
}

module attributes {stable_mosaic.version = 11 : i64} {
  func.func @_mm_kernel(%arg0: i32, %arg1: i32, %arg2: i32, %arg3: memref<8x256xbf16, #tpu.memory_space<vmem>>, %arg4: memref<256x512xbf16, #tpu.memory_space<vmem>>, %arg5: memref<1x512xf32, #tpu.memory_space<vmem>>, %arg6: memref<8x512xbf16, #tpu.memory_space<vmem>>, %arg7: memref<8x512xf32, #tpu.memory_space<vmem>>) attributes {dimension_semantics = [#tpu.dimension_semantics<parallel>, #tpu.dimension_semantics<parallel>, #tpu.dimension_semantics<arbitrary>], iteration_bounds = array<i64: 1, 1, 9>, scalar_prefetch = 0 : i64, scratch_operands = 1 : i64, tpu.core_type = #tpu.core_type<tc>, window_params = [{transform_indices = @transform_0, window_bounds = array<i64: 8, 256>}, {transform_indices = @transform_1, window_bounds = array<i64: 256, 512>}, {transform_indices = @transform_2, window_bounds = array<i64: 1, 512>}, {transform_indices = @transform_3, window_bounds = array<i64: 8, 512>}]} {
    %c0_i32 = arith.constant 0 : i32
    %0 = arith.cmpi eq, %arg2, %c0_i32 : i32
    %1 = arith.extui %0 : i1 to i32
    %c0_i32_0 = arith.constant 0 : i32
    %2 = arith.cmpi ne, %1, %c0_i32_0 : i32
    scf.if %2 {
      %cst_9 = arith.constant 0.000000e+00 : f32
      %12 = vector.broadcast %cst_9 : f32 to vector<8x512xf32>
      %c0_10 = arith.constant 0 : index
      %c0_11 = arith.constant 0 : index
      %13 = vector.load %arg7[%c0_10, %c0_11] : memref<8x512xf32, #tpu.memory_space<vmem>>, vector<8x512xf32>
      tpu.vector_store %arg7[%c0_10, %c0_11], %12 {strides = array<i32>} : memref<8x512xf32, #tpu.memory_space<vmem>>, vector<8x512xf32>,
    } else {
    }
    %c0 = arith.constant 0 : index
    %c0_1 = arith.constant 0 : index
    %3 = vector.load %arg7[%c0, %c0_1] : memref<8x512xf32, #tpu.memory_space<vmem>>, vector<8x512xf32>
    %c0_2 = arith.constant 0 : index
    %c0_3 = arith.constant 0 : index
    %4 = vector.load %arg3[%c0_2, %c0_3] : memref<8x256xbf16, #tpu.memory_space<vmem>>, vector<8x256xbf16>
    %c0_4 = arith.constant 0 : index
    %c0_5 = arith.constant 0 : index
    %5 = vector.load %arg4[%c0_4, %c0_5] : memref<256x512xbf16, #tpu.memory_space<vmem>>, vector<256x512xbf16>
    %cst = arith.constant dense<0.000000e+00> : vector<8x512xf32>
    %6 = tpu.matmul %4, %5, %cst {dimension_numbers = #tpu.dot_dimension_numbers<[1], [0], [0], [1], [0, 0, 1, 1], [], []>} : vector<8x256xbf16>, vector<256x512xbf16>, vector<8x512xf32> -> vector<8x512xf32>
    %7 = arith.addf %3, %6 : vector<8x512xf32>
    %c0_6 = arith.constant 0 : index
    %c0_7 = arith.constant 0 : index
    %8 = vector.load %arg7[%c0_6, %c0_7] : memref<8x512xf32, #tpu.memory_space<vmem>>, vector<8x512xf32>
    tpu.vector_store %arg7[%c0_6, %c0_7], %7 {strides = array<i32>} : memref<8x512xf32, #tpu.memory_space<vmem>>, vector<8x512xf32>,
    %c8_i32 = arith.constant 8 : i32
    %9 = arith.cmpi eq, %arg2, %c8_i32 : i32
    %10 = arith.extui %9 : i1 to i32
    %c0_i32_8 = arith.constant 0 : i32
    %11 = arith.cmpi ne, %10, %c0_i32_8 : i32
    scf.if %11 {
      %c0_9 = arith.constant 0 : index
      %c0_10 = arith.constant 0 : index
      %12 = vector.load %arg7[%c0_9, %c0_10] : memref<8x512xf32, #tpu.memory_space<vmem>>, vector<8x512xf32>
      %c0_11 = arith.constant 0 : index
      %c0_12 = arith.constant 0 : index
      %13 = vector.load %arg5[%c0_11, %c0_12] : memref<1x512xf32, #tpu.memory_space<vmem>>, vector<1x512xf32>
      %14 = vector.broadcast %13 : vector<1x512xf32> to vector<8x512xf32>
      %15 = arith.addf %12, %14 : vector<8x512xf32>
      %cst_13 = arith.constant 0.000000e+00 : f32
      %16 = vector.broadcast %cst_13 : f32 to vector<8x512xf32>
      %17 = arith.maximumf %15, %16 : vector<8x512xf32>
      %18 = arith.truncf %17 : vector<8x512xf32> to vector<8x512xbf16>
      %c0_14 = arith.constant 0 : index
      %c0_15 = arith.constant 0 : index
      %19 = vector.load %arg6[%c0_14, %c0_15] : memref<8x512xbf16, #tpu.memory_space<vmem>>, vector<8x512xbf16>
      tpu.vector_store %arg6[%c0_14, %c0_15], %18 {strides = array<i32>} : memref<8x512xbf16, #tpu.memory_space<vmem>>, vector<8x512xbf16>,
    } else {
    }
    return
  }
  func.func @transform_0(%arg0: i32, %arg1: i32, %arg2: i32) -> (i32, i32) {
    %c0_i32 = arith.constant 0 : i32
    return %arg0, %arg2 : i32, i32
  }
  func.func @transform_1(%arg0: i32, %arg1: i32, %arg2: i32) -> (i32, i32) {
    %c0_i32 = arith.constant 0 : i32
    return %arg2, %arg1 : i32, i32
  }
  func.func @transform_2(%arg0: i32, %arg1: i32, %arg2: i32) -> (i32, i32) {
    %c0_i32 = arith.constant 0 : i32
    %c0_i32_0 = arith.constant 0 : i32
    return %c0_i32, %arg1 : i32, i32
  }
  func.func @transform_3(%arg0: i32, %arg1: i32, %arg2: i32) -> (i32, i32) {
    %c0_i32 = arith.constant 0 : i32
    return %arg0, %arg1 : i32, i32
  }
}

module attributes {stable_mosaic.version = 11 : i64} {
  func.func @_mm_kernel(%arg0: i32, %arg1: i32, %arg2: i32, %arg3: memref<8x256xbf16, #tpu.memory_space<vmem>>, %arg4: memref<256x512xbf16, #tpu.memory_space<vmem>>, %arg5: memref<1x512xf32, #tpu.memory_space<vmem>>, %arg6: memref<8x512xbf16, #tpu.memory_space<vmem>>, %arg7: memref<8x512xf32, #tpu.memory_space<vmem>>) attributes {dimension_semantics = [#tpu.dimension_semantics<parallel>, #tpu.dimension_semantics<parallel>, #tpu.dimension_semantics<arbitrary>], iteration_bounds = array<i64: 1, 1, 1>, scalar_prefetch = 0 : i64, scratch_operands = 1 : i64, tpu.core_type = #tpu.core_type<tc>, window_params = [{transform_indices = @transform_0, window_bounds = array<i64: 8, 256>}, {transform_indices = @transform_1, window_bounds = array<i64: 256, 512>}, {transform_indices = @transform_2, window_bounds = array<i64: 1, 512>}, {transform_indices = @transform_3, window_bounds = array<i64: 8, 512>}]} {
    %c0_i32 = arith.constant 0 : i32
    %0 = arith.cmpi eq, %arg2, %c0_i32 : i32
    %1 = arith.extui %0 : i1 to i32
    %c0_i32_0 = arith.constant 0 : i32
    %2 = arith.cmpi ne, %1, %c0_i32_0 : i32
    scf.if %2 {
      %cst_10 = arith.constant 0.000000e+00 : f32
      %12 = vector.broadcast %cst_10 : f32 to vector<8x512xf32>
      %c0_11 = arith.constant 0 : index
      %c0_12 = arith.constant 0 : index
      %13 = vector.load %arg7[%c0_11, %c0_12] : memref<8x512xf32, #tpu.memory_space<vmem>>, vector<8x512xf32>
      tpu.vector_store %arg7[%c0_11, %c0_12], %12 {strides = array<i32>} : memref<8x512xf32, #tpu.memory_space<vmem>>, vector<8x512xf32>,
    } else {
    }
    %c0 = arith.constant 0 : index
    %c0_1 = arith.constant 0 : index
    %3 = vector.load %arg7[%c0, %c0_1] : memref<8x512xf32, #tpu.memory_space<vmem>>, vector<8x512xf32>
    %c0_2 = arith.constant 0 : index
    %c0_3 = arith.constant 0 : index
    %4 = vector.load %arg3[%c0_2, %c0_3] : memref<8x256xbf16, #tpu.memory_space<vmem>>, vector<8x256xbf16>
    %c0_4 = arith.constant 0 : index
    %c0_5 = arith.constant 0 : index
    %5 = vector.load %arg4[%c0_4, %c0_5] : memref<256x512xbf16, #tpu.memory_space<vmem>>, vector<256x512xbf16>
    %cst = arith.constant dense<0.000000e+00> : vector<8x512xf32>
    %6 = tpu.matmul %4, %5, %cst {dimension_numbers = #tpu.dot_dimension_numbers<[1], [0], [0], [1], [0, 0, 1, 1], [], []>} : vector<8x256xbf16>, vector<256x512xbf16>, vector<8x512xf32> -> vector<8x512xf32>
    %7 = arith.addf %3, %6 : vector<8x512xf32>
    %c0_6 = arith.constant 0 : index
    %c0_7 = arith.constant 0 : index
    %8 = vector.load %arg7[%c0_6, %c0_7] : memref<8x512xf32, #tpu.memory_space<vmem>>, vector<8x512xf32>
    tpu.vector_store %arg7[%c0_6, %c0_7], %7 {strides = array<i32>} : memref<8x512xf32, #tpu.memory_space<vmem>>, vector<8x512xf32>,
    %c0_i32_8 = arith.constant 0 : i32
    %9 = arith.cmpi eq, %arg2, %c0_i32_8 : i32
    %10 = arith.extui %9 : i1 to i32
    %c0_i32_9 = arith.constant 0 : i32
    %11 = arith.cmpi ne, %10, %c0_i32_9 : i32
    scf.if %11 {
      %c0_10 = arith.constant 0 : index
      %c0_11 = arith.constant 0 : index
      %12 = vector.load %arg7[%c0_10, %c0_11] : memref<8x512xf32, #tpu.memory_space<vmem>>, vector<8x512xf32>
      %c0_12 = arith.constant 0 : index
      %c0_13 = arith.constant 0 : index
      %13 = vector.load %arg5[%c0_12, %c0_13] : memref<1x512xf32, #tpu.memory_space<vmem>>, vector<1x512xf32>
      %14 = vector.broadcast %13 : vector<1x512xf32> to vector<8x512xf32>
      %15 = arith.addf %12, %14 : vector<8x512xf32>
      %16 = arith.truncf %15 : vector<8x512xf32> to vector<8x512xbf16>
      %c0_14 = arith.constant 0 : index
      %c0_15 = arith.constant 0 : index
      %17 = vector.load %arg6[%c0_14, %c0_15] : memref<8x512xbf16, #tpu.memory_space<vmem>>, vector<8x512xbf16>
      tpu.vector_store %arg6[%c0_14, %c0_15], %16 {strides = array<i32>} : memref<8x512xbf16, #tpu.memory_space<vmem>>, vector<8x512xbf16>,
    } else {
    }
    return
  }
  func.func @transform_0(%arg0: i32, %arg1: i32, %arg2: i32) -> (i32, i32) {
    %c0_i32 = arith.constant 0 : i32
    return %arg0, %arg2 : i32, i32
  }
  func.func @transform_1(%arg0: i32, %arg1: i32, %arg2: i32) -> (i32, i32) {
    %c0_i32 = arith.constant 0 : i32
    return %arg2, %arg1 : i32, i32
  }
  func.func @transform_2(%arg0: i32, %arg1: i32, %arg2: i32) -> (i32, i32) {
    %c0_i32 = arith.constant 0 : i32
    %c0_i32_0 = arith.constant 0 : i32
    return %c0_i32, %arg1 : i32, i32
  }
  func.func @transform_3(%arg0: i32, %arg1: i32, %arg2: i32) -> (i32, i32) {
    %c0_i32 = arith.constant 0 : i32
    return %arg0, %arg1 : i32, i32
  }
}

module attributes {stable_mosaic.version = 11 : i64} {
  func.func @_mm_res_kernel(%arg0: i32, %arg1: i32, %arg2: i32, %arg3: memref<8x512xbf16, #tpu.memory_space<vmem>>, %arg4: memref<512x512xbf16, #tpu.memory_space<vmem>>, %arg5: memref<1x512xf32, #tpu.memory_space<vmem>>, %arg6: memref<8x512xbf16, #tpu.memory_space<vmem>>, %arg7: memref<8x512xbf16, #tpu.memory_space<vmem>>, %arg8: memref<8x512xf32, #tpu.memory_space<vmem>>) attributes {dimension_semantics = [#tpu.dimension_semantics<parallel>, #tpu.dimension_semantics<parallel>, #tpu.dimension_semantics<arbitrary>], iteration_bounds = array<i64: 1, 1, 9>, scalar_prefetch = 0 : i64, scratch_operands = 1 : i64, tpu.core_type = #tpu.core_type<tc>, window_params = [{transform_indices = @transform_0, window_bounds = array<i64: 8, 512>}, {transform_indices = @transform_1, window_bounds = array<i64: 512, 512>}, {transform_indices = @transform_2, window_bounds = array<i64: 1, 512>}, {transform_indices = @transform_3, window_bounds = array<i64: 8, 512>}, {transform_indices = @transform_4, window_bounds = array<i64: 8, 512>}]} {
    %c0_i32 = arith.constant 0 : i32
    %0 = arith.cmpi eq, %arg2, %c0_i32 : i32
    %1 = arith.extui %0 : i1 to i32
    %c0_i32_0 = arith.constant 0 : i32
    %2 = arith.cmpi ne, %1, %c0_i32_0 : i32
    scf.if %2 {
      %cst_9 = arith.constant 0.000000e+00 : f32
      %12 = vector.broadcast %cst_9 : f32 to vector<8x512xf32>
      %c0_10 = arith.constant 0 : index
      %c0_11 = arith.constant 0 : index
      %13 = vector.load %arg8[%c0_10, %c0_11] : memref<8x512xf32, #tpu.memory_space<vmem>>, vector<8x512xf32>
      tpu.vector_store %arg8[%c0_10, %c0_11], %12 {strides = array<i32>} : memref<8x512xf32, #tpu.memory_space<vmem>>, vector<8x512xf32>,
    } else {
    }
    %c0 = arith.constant 0 : index
    %c0_1 = arith.constant 0 : index
    %3 = vector.load %arg8[%c0, %c0_1] : memref<8x512xf32, #tpu.memory_space<vmem>>, vector<8x512xf32>
    %c0_2 = arith.constant 0 : index
    %c0_3 = arith.constant 0 : index
    %4 = vector.load %arg3[%c0_2, %c0_3] : memref<8x512xbf16, #tpu.memory_space<vmem>>, vector<8x512xbf16>
    %c0_4 = arith.constant 0 : index
    %c0_5 = arith.constant 0 : index
    %5 = vector.load %arg4[%c0_4, %c0_5] : memref<512x512xbf16, #tpu.memory_space<vmem>>, vector<512x512xbf16>
    %cst = arith.constant dense<0.000000e+00> : vector<8x512xf32>
    %6 = tpu.matmul %4, %5, %cst {dimension_numbers = #tpu.dot_dimension_numbers<[1], [0], [0], [1], [0, 0, 1, 1], [], []>} : vector<8x512xbf16>, vector<512x512xbf16>, vector<8x512xf32> -> vector<8x512xf32>
    %7 = arith.addf %3, %6 : vector<8x512xf32>
    %c0_6 = arith.constant 0 : index
    %c0_7 = arith.constant 0 : index
    %8 = vector.load %arg8[%c0_6, %c0_7] : memref<8x512xf32, #tpu.memory_space<vmem>>, vector<8x512xf32>
    tpu.vector_store %arg8[%c0_6, %c0_7], %7 {strides = array<i32>} : memref<8x512xf32, #tpu.memory_space<vmem>>, vector<8x512xf32>,
    %c8_i32 = arith.constant 8 : i32
    %9 = arith.cmpi eq, %arg2, %c8_i32 : i32
    %10 = arith.extui %9 : i1 to i32
    %c0_i32_8 = arith.constant 0 : i32
    %11 = arith.cmpi ne, %10, %c0_i32_8 : i32
    scf.if %11 {
      %c0_9 = arith.constant 0 : index
      %c0_10 = arith.constant 0 : index
      %12 = vector.load %arg8[%c0_9, %c0_10] : memref<8x512xf32, #tpu.memory_space<vmem>>, vector<8x512xf32>
      %c0_11 = arith.constant 0 : index
      %c0_12 = arith.constant 0 : index
      %13 = vector.load %arg5[%c0_11, %c0_12] : memref<1x512xf32, #tpu.memory_space<vmem>>, vector<1x512xf32>
      %14 = vector.broadcast %13 : vector<1x512xf32> to vector<8x512xf32>
      %15 = arith.addf %12, %14 : vector<8x512xf32>
      %c0_13 = arith.constant 0 : index
      %c0_14 = arith.constant 0 : index
      %16 = vector.load %arg6[%c0_13, %c0_14] : memref<8x512xbf16, #tpu.memory_space<vmem>>, vector<8x512xbf16>
      %17 = arith.extf %16 : vector<8x512xbf16> to vector<8x512xf32>
      %18 = arith.addf %15, %17 : vector<8x512xf32>
      %cst_15 = arith.constant 0.000000e+00 : f32
      %19 = vector.broadcast %cst_15 : f32 to vector<8x512xf32>
      %20 = arith.maximumf %18, %19 : vector<8x512xf32>
      %21 = arith.truncf %20 : vector<8x512xf32> to vector<8x512xbf16>
      %c0_16 = arith.constant 0 : index
      %c0_17 = arith.constant 0 : index
      %22 = vector.load %arg7[%c0_16, %c0_17] : memref<8x512xbf16, #tpu.memory_space<vmem>>, vector<8x512xbf16>
      tpu.vector_store %arg7[%c0_16, %c0_17], %21 {strides = array<i32>} : memref<8x512xbf16, #tpu.memory_space<vmem>>, vector<8x512xbf16>,
    } else {
    }
    return
  }
  func.func @transform_0(%arg0: i32, %arg1: i32, %arg2: i32) -> (i32, i32) {
    %c0_i32 = arith.constant 0 : i32
    return %arg0, %arg2 : i32, i32
  }
  func.func @transform_1(%arg0: i32, %arg1: i32, %arg2: i32) -> (i32, i32) {
    %c0_i32 = arith.constant 0 : i32
    return %arg2, %arg1 : i32, i32
  }
  func.func @transform_2(%arg0: i32, %arg1: i32, %arg2: i32) -> (i32, i32) {
    %c0_i32 = arith.constant 0 : i32
    %c0_i32_0 = arith.constant 0 : i32
    return %c0_i32, %arg1 : i32, i32
  }
  func.func @transform_3(%arg0: i32, %arg1: i32, %arg2: i32) -> (i32, i32) {
    %c0_i32 = arith.constant 0 : i32
    return %arg0, %arg1 : i32, i32
  }
  func.func @transform_4(%arg0: i32, %arg1: i32, %arg2: i32) -> (i32, i32) {
    %c0_i32 = arith.constant 0 : i32
    return %arg0, %arg1 : i32, i32
  }
}

module attributes {stable_mosaic.version = 11 : i64} {
  func.func @_mean_reduce_kernel(%arg0: memref<2x1x512xbf16, #tpu.memory_space<vmem>>, %arg1: memref<2x512xf32, #tpu.memory_space<vmem>>) attributes {dimension_semantics = [], scalar_prefetch = 0 : i64, scratch_operands = 0 : i64, tpu.core_type = #tpu.core_type<tc>} {
    %c0 = arith.constant 0 : index
    %c0_0 = arith.constant 0 : index
    %c0_1 = arith.constant 0 : index
    %0 = vector.load %arg0[%c0, %c0_0, %c0_1] : memref<2x1x512xbf16, #tpu.memory_space<vmem>>, vector<2x1x512xbf16>
    %1 = arith.extf %0 : vector<2x1x512xbf16> to vector<2x1x512xf32>
    %cst = arith.constant dense<0.000000e+00> : vector<2x512xf32>
    %2 = vector.multi_reduction <add>, %1, %cst [1] : vector<2x1x512xf32> to vector<2x512xf32>
    %cst_2 = arith.constant 1.000000e+00 : f32
    %3 = vector.broadcast %cst_2 : f32 to vector<2x512xf32>
    %4 = arith.divf %2, %3 : vector<2x512xf32>
    %c0_3 = arith.constant 0 : index
    %c0_4 = arith.constant 0 : index
    %5 = vector.load %arg1[%c0_3, %c0_4] : memref<2x512xf32, #tpu.memory_space<vmem>>, vector<2x512xf32>
    tpu.vector_store %arg1[%c0_3, %c0_4], %4 {strides = array<i32>} : memref<2x512xf32, #tpu.memory_space<vmem>>, vector<2x512xf32>,
    return
  }
}

module attributes {stable_mosaic.version = 11 : i64} {
  func.func @_mm_kernel(%arg0: i32, %arg1: i32, %arg2: i32, %arg3: memref<8x512xbf16, #tpu.memory_space<vmem>>, %arg4: memref<512x128xbf16, #tpu.memory_space<vmem>>, %arg5: memref<1x128xf32, #tpu.memory_space<vmem>>, %arg6: memref<8x128xf32, #tpu.memory_space<vmem>>, %arg7: memref<8x128xf32, #tpu.memory_space<vmem>>) attributes {dimension_semantics = [#tpu.dimension_semantics<parallel>, #tpu.dimension_semantics<parallel>, #tpu.dimension_semantics<arbitrary>], iteration_bounds = array<i64: 1, 1, 1>, scalar_prefetch = 0 : i64, scratch_operands = 1 : i64, tpu.core_type = #tpu.core_type<tc>, window_params = [{transform_indices = @transform_0, window_bounds = array<i64: 8, 512>}, {transform_indices = @transform_1, window_bounds = array<i64: 512, 128>}, {transform_indices = @transform_2, window_bounds = array<i64: 1, 128>}, {transform_indices = @transform_3, window_bounds = array<i64: 8, 128>}]} {
    %c0_i32 = arith.constant 0 : i32
    %0 = arith.cmpi eq, %arg2, %c0_i32 : i32
    %1 = arith.extui %0 : i1 to i32
    %c0_i32_0 = arith.constant 0 : i32
    %2 = arith.cmpi ne, %1, %c0_i32_0 : i32
    scf.if %2 {
      %cst_10 = arith.constant 0.000000e+00 : f32
      %12 = vector.broadcast %cst_10 : f32 to vector<8x128xf32>
      %c0_11 = arith.constant 0 : index
      %c0_12 = arith.constant 0 : index
      %13 = vector.load %arg7[%c0_11, %c0_12] : memref<8x128xf32, #tpu.memory_space<vmem>>, vector<8x128xf32>
      tpu.vector_store %arg7[%c0_11, %c0_12], %12 {strides = array<i32>} : memref<8x128xf32, #tpu.memory_space<vmem>>, vector<8x128xf32>,
    } else {
    }
    %c0 = arith.constant 0 : index
    %c0_1 = arith.constant 0 : index
    %3 = vector.load %arg7[%c0, %c0_1] : memref<8x128xf32, #tpu.memory_space<vmem>>, vector<8x128xf32>
    %c0_2 = arith.constant 0 : index
    %c0_3 = arith.constant 0 : index
    %4 = vector.load %arg3[%c0_2, %c0_3] : memref<8x512xbf16, #tpu.memory_space<vmem>>, vector<8x512xbf16>
    %c0_4 = arith.constant 0 : index
    %c0_5 = arith.constant 0 : index
    %5 = vector.load %arg4[%c0_4, %c0_5] : memref<512x128xbf16, #tpu.memory_space<vmem>>, vector<512x128xbf16>
    %cst = arith.constant dense<0.000000e+00> : vector<8x128xf32>
    %6 = tpu.matmul %4, %5, %cst {dimension_numbers = #tpu.dot_dimension_numbers<[1], [0], [0], [1], [0, 0, 1, 1], [], []>} : vector<8x512xbf16>, vector<512x128xbf16>, vector<8x128xf32> -> vector<8x128xf32>
    %7 = arith.addf %3, %6 : vector<8x128xf32>
    %c0_6 = arith.constant 0 : index
    %c0_7 = arith.constant 0 : index
    %8 = vector.load %arg7[%c0_6, %c0_7] : memref<8x128xf32, #tpu.memory_space<vmem>>, vector<8x128xf32>
    tpu.vector_store %arg7[%c0_6, %c0_7], %7 {strides = array<i32>} : memref<8x128xf32, #tpu.memory_space<vmem>>, vector<8x128xf32>,
    %c0_i32_8 = arith.constant 0 : i32
    %9 = arith.cmpi eq, %arg2, %c0_i32_8 : i32
    %10 = arith.extui %9 : i1 to i32
    %c0_i32_9 = arith.constant 0 : i32
    %11 = arith.cmpi ne, %10, %c0_i32_9 : i32
    scf.if %11 {
      %c0_10 = arith.constant 0 : index
      %c0_11 = arith.constant 0 : index
      %12 = vector.load %arg7[%c0_10, %c0_11] : memref<8x128xf32, #tpu.memory_space<vmem>>, vector<8x128xf32>
      %c0_12 = arith.constant 0 : index
      %c0_13 = arith.constant 0 : index
      %13 = vector.load %arg5[%c0_12, %c0_13] : memref<1x128xf32, #tpu.memory_space<vmem>>, vector<1x128xf32>
      %14 = vector.broadcast %13 : vector<1x128xf32> to vector<8x128xf32>
      %15 = arith.addf %12, %14 : vector<8x128xf32>
      %c0_14 = arith.constant 0 : index
      %c0_15 = arith.constant 0 : index
      %16 = vector.load %arg6[%c0_14, %c0_15] : memref<8x128xf32, #tpu.memory_space<vmem>>, vector<8x128xf32>
      tpu.vector_store %arg6[%c0_14, %c0_15], %15 {strides = array<i32>} : memref<8x128xf32, #tpu.memory_space<vmem>>, vector<8x128xf32>,
    } else {
    }
    return
  }
  func.func @transform_0(%arg0: i32, %arg1: i32, %arg2: i32) -> (i32, i32) {
    %c0_i32 = arith.constant 0 : i32
    return %arg0, %arg2 : i32, i32
  }
  func.func @transform_1(%arg0: i32, %arg1: i32, %arg2: i32) -> (i32, i32) {
    %c0_i32 = arith.constant 0 : i32
    return %arg2, %arg1 : i32, i32
  }
  func.func @transform_2(%arg0: i32, %arg1: i32, %arg2: i32) -> (i32, i32) {
    %c0_i32 = arith.constant 0 : i32
    %c0_i32_0 = arith.constant 0 : i32
    return %c0_i32, %arg1 : i32, i32
  }
  func.func @transform_3(%arg0: i32, %arg1: i32, %arg2: i32) -> (i32, i32) {
    %c0_i32 = arith.constant 0 : i32
    return %arg0, %arg1 : i32, i32
  }
}

</mosaic_0001>

<bundles_post_ra>
// kernel: _lambda_.15
= control target key start
LH: loop header
LB: loop body
LE: loop exit
PB: predicated region body
PF: predicated region fallthrough
CT: control target
= control target key end

     0   :  { %v2147_v0 = vmov 0   ;;  %s2605_s1 = inlined_call_operand.vmem [shape: bf16[256,128], index: 1, kind: input, shape index: {}]   ;;  %s2606_s0 = inlined_call_operand.vmem [shape: bf16[512,256], index: 0, kind: input, shape index: {}]   ;;  %s2607_s2 = inlined_call_operand.vmem [shape: f32[1,128], index: 2, kind: input, shape index: {}]   ;;  %s2608_s3 = inlined_call_operand.vmem [shape: bf16[512,128], index: 3, kind: output, shape index: {}]  }
   0x1   :  { %659 = vmatprep.subr.bf16.mxu0 %v2147_v0  ;;  %2002 = vmatprep.subr.bf16.mxu1 %v2147_v0  ;;  %v2035_v1 = vld [vmem:[%s2605_s1] sm:$0xff]   ;;  %v2036_v2 = vld [vmem:[%s2605_s1 + $0x8] sm:$0xff]   ;;  %v2037_v3 = vld [vmem:[%s2605_s1 + $0x10] sm:$0xff]  }
   0x2   :  { %660 = vmatpush1.bf16.msra.mxu0 %v2035_v1  ;;  %2018 = vmatpush1.bf16.msra.mxu1 %v2035_v1  ;;  %v2038_v4 = vld [vmem:[%s2605_s1 + $0x18] sm:$0xff]   ;;  %v2039_v5 = vld [vmem:[%s2605_s1 + $0x20] sm:$0xff]   ;;  %v2040_v7 = vld [vmem:[%s2605_s1 + $0x28] sm:$0xff]  }
   0x3   :  { %661 = vmatprep.subr.bf16.mxu0 %v2147_v0  ;;  %2003 = vmatprep.subr.bf16.mxu1 %v2147_v0  ;;  %v2053_v6 = vld [vmem:[%s2606_s0 + $0x4] ss:$8 sps:$4 sm:$0xff]   ;;  %v2041_v9 = vld [vmem:[%s2605_s1 + $0x30] sm:$0xff]   ;;  %v2042_v10 = vld [vmem:[%s2605_s1 + $0x38] sm:$0xff]  }
   0x4   :  { %v2056_v8 = vld [vmem:[%s2606_s0 + $0x104] ss:$8 sps:$4 sm:$0xff]   ;;  %691 = vmatprep.mubr.bf16.mxu0 %v2053_v6  ;;  %v2045_v13 = vld [vmem:[%s2605_s1 + $0x50] sm:$0xff]   ;;  %v2046_v14 = vld [vmem:[%s2605_s1 + $0x58] sm:$0xff]  }
   0x5   :  { %819 = vmatprep.mubr.bf16.mxu1 %v2056_v8  ;;  %v2043_v11 = vld [vmem:[%s2605_s1 + $0x40] sm:$0xff]   ;;  %v2044_v12 = vld [vmem:[%s2605_s1 + $0x48] sm:$0xff]   ;;  %v2049_v17 = vld [vmem:[%s2605_s1 + $0x70] sm:$0xff]  }
   0x6   :  { %662 = vmatpush1.bf16.msra.mxu0 %v2036_v2  ;;  %2019 = vmatpush1.bf16.msra.mxu1 %v2036_v2  ;;  %v2047_v15 = vld [vmem:[%s2605_s1 + $0x60] sm:$0xff]   ;;  %v2048_v16 = vld [vmem:[%s2605_s1 + $0x68] sm:$0xff]   ;;  %v2050_v18 = vld [vmem:[%s2605_s1 + $0x78] sm:$0xff]  }
   0x7   :  { %663 = vmatprep.subr.bf16.mxu0 %v2147_v0  ;;  %2004 = vmatprep.subr.bf16.mxu1 %v2147_v0  ;;  %v2051_v19 = vld [vmem:[%s2606_s0] ss:$8 sps:$4 sm:$0xff]   ;;  %v2057_v21 = vld [vmem:[%s2606_s0 + $0x14] ss:$8 sps:$4 sm:$0xff]   ;;  %v2061_v23 = vld [vmem:[%s2606_s0 + $0x10] ss:$8 sps:$4 sm:$0xff]  }
   0x8   :  { %v2054_v20 = vld [vmem:[%s2606_s0 + $0x100] ss:$8 sps:$4 sm:$0xff]   ;;  %v2059_v22 = vld [vmem:[%s2606_s0 + $0x114] ss:$8 sps:$4 sm:$0xff]   ;;  %v2062_v24 = vld [vmem:[%s2606_s0 + $0x110] ss:$8 sps:$4 sm:$0xff]  }
   0x9   :  { %v2063_v25 = vld [vmem:[%s2606_s0 + $0x24] ss:$8 sps:$4 sm:$0xff]   ;;  %v2067_v27 = vld [vmem:[%s2606_s0 + $0x20] ss:$8 sps:$4 sm:$0xff]   ;;  %v2069_v29 = vld [vmem:[%s2606_s0 + $0x34] ss:$8 sps:$4 sm:$0xff]  }
   0xa   :  { %664 = vmatpush1.bf16.msra.mxu0 %v2037_v3  ;;  %2020 = vmatpush1.bf16.msra.mxu1 %v2037_v3  ;;  %v2065_v26 = vld [vmem:[%s2606_s0 + $0x124] ss:$8 sps:$4 sm:$0xff]   ;;  %v2068_v28 = vld [vmem:[%s2606_s0 + $0x120] ss:$8 sps:$4 sm:$0xff]   ;;  %v2071_v30 = vld [vmem:[%s2606_s0 + $0x134] ss:$8 sps:$4 sm:$0xff]  }
   0xb   :  { %665 = vmatprep.subr.bf16.mxu0 %v2147_v0  ;;  %2005 = vmatprep.subr.bf16.mxu1 %v2147_v0  ;;  %v2073_v31 = vld [vmem:[%s2606_s0 + $0x30] ss:$8 sps:$4 sm:$0xff]   ;;  %v2075_v33 = vld [vmem:[%s2606_s0 + $0x44] ss:$8 sps:$4 sm:$0xff]   ;;  %v2079_v35 = vld [vmem:[%s2606_s0 + $0x40] ss:$8 sps:$4 sm:$0xff]  }
   0xc   :  { %v2074_v32 = vld [vmem:[%s2606_s0 + $0x130] ss:$8 sps:$4 sm:$0xff]   ;;  %v2077_v34 = vld [vmem:[%s2606_s0 + $0x144] ss:$8 sps:$4 sm:$0xff]   ;;  %v2080_v36 = vld [vmem:[%s2606_s0 + $0x140] ss:$8 sps:$4 sm:$0xff]  }
   0xd   :  { %v2081_v37 = vld [vmem:[%s2606_s0 + $0x54] ss:$8 sps:$4 sm:$0xff]   ;;  %v2085_v39 = vld [vmem:[%s2606_s0 + $0x50] ss:$8 sps:$4 sm:$0xff]   ;;  %v2087_v41 = vld [vmem:[%s2606_s0 + $0x64] ss:$8 sps:$4 sm:$0xff]  }
   0xe   :  { %666 = vmatpush1.bf16.msra.mxu0 %v2038_v4  ;;  %2021 = vmatpush1.bf16.msra.mxu1 %v2038_v4  ;;  %v2083_v38 = vld [vmem:[%s2606_s0 + $0x154] ss:$8 sps:$4 sm:$0xff]   ;;  %v2086_v40 = vld [vmem:[%s2606_s0 + $0x150] ss:$8 sps:$4 sm:$0xff]   ;;  %v2089_v42 = vld [vmem:[%s2606_s0 + $0x164] ss:$8 sps:$4 sm:$0xff]  }
   0xf   :  { %667 = vmatprep.subr.bf16.mxu0 %v2147_v0  ;;  %2006 = vmatprep.subr.bf16.mxu1 %v2147_v0  ;;  %v2091_v43 = vld [vmem:[%s2606_s0 + $0x60] ss:$8 sps:$4 sm:$0xff]   ;;  %v2093_v45 = vld [vmem:[%s2606_s0 + $0x74] ss:$8 sps:$4 sm:$0xff]   ;;  %v2097_v47 = vld [vmem:[%s2606_s0 + $0x70] ss:$8 sps:$4 sm:$0xff]  }
  0x10   :  { %v2092_v44 = vld [vmem:[%s2606_s0 + $0x160] ss:$8 sps:$4 sm:$0xff]   ;;  %v2095_v46 = vld [vmem:[%s2606_s0 + $0x174] ss:$8 sps:$4 sm:$0xff]   ;;  %v2098_v48 = vld [vmem:[%s2606_s0 + $0x170] ss:$8 sps:$4 sm:$0xff]  }
  0x11   :  { %v2099_v49 = vld [vmem:[%s2606_s0 + $0x84] ss:$8 sps:$4 sm:$0xff]   ;;  %v2103_v51 = vld [vmem:[%s2606_s0 + $0x80] ss:$8 sps:$4 sm:$0xff]   ;;  %v2105_v53 = vld [vmem:[%s2606_s0 + $0x94] ss:$8 sps:$4 sm:$0xff]  }
  0x12   :  { %668 = vmatpush1.bf16.msra.mxu0 %v2039_v5  ;;  %2022 = vmatpush1.bf16.msra.mxu1 %v2039_v5  ;;  %v2101_v50 = vld [vmem:[%s2606_s0 + $0x184] ss:$8 sps:$4 sm:$0xff]   ;;  %v2104_v52 = vld [vmem:[%s2606_s0 + $0x180] ss:$8 sps:$4 sm:$0xff]   ;;  %v2107_v54 = vld [vmem:[%s2606_s0 + $0x194] ss:$8 sps:$4 sm:$0xff]  }
  0x13   :  { %669 = vmatprep.subr.bf16.mxu0 %v2147_v0  ;;  %2007 = vmatprep.subr.bf16.mxu1 %v2147_v0  ;;  %v2109_v55 = vld [vmem:[%s2606_s0 + $0x90] ss:$8 sps:$4 sm:$0xff]   ;;  %v2111_v57 = vld [vmem:[%s2606_s0 + $0xa4] ss:$8 sps:$4 sm:$0xff]   ;;  %v2115_v59 = vld [vmem:[%s2606_s0 + $0xa0] ss:$8 sps:$4 sm:$0xff]  }
  0x14   :  { %v2110_v56 = vld [vmem:[%s2606_s0 + $0x190] ss:$8 sps:$4 sm:$0xff]   ;;  %v2113_v58 = vld [vmem:[%s2606_s0 + $0x1a4] ss:$8 sps:$4 sm:$0xff]   ;;  %v2116_v60 = vld [vmem:[%s2606_s0 + $0x1a0] ss:$8 sps:$4 sm:$0xff]  }
  0x15   :  { %v2117_v61 = vld [vmem:[%s2606_s0 + $0xb4] ss:$8 sps:$4 sm:$0xff]   ;;  %v2121_v63 = vld [vmem:[%s2606_s0 + $0xb0] ss:$8 sps:$4 sm:$0xff]   ;;  %v2123_v1 = vld [vmem:[%s2606_s0 + $0xc4] ss:$8 sps:$4 sm:$0xff]  }
  0x16   :  { %670 = vmatpush1.bf16.msra.mxu0 %v2040_v7  ;;  %2023 = vmatpush1.bf16.msra.mxu1 %v2040_v7  ;;  %v2119_v62 = vld [vmem:[%s2606_s0 + $0x1b4] ss:$8 sps:$4 sm:$0xff]   ;;  %v2125_v2 = vld [vmem:[%s2606_s0 + $0x1c4] ss:$8 sps:$4 sm:$0xff]   ;;  %v2127_v3 = vld [vmem:[%s2606_s0 + $0xc0] ss:$8 sps:$4 sm:$0xff]  }
  0x17   :  { %671 = vmatprep.subr.bf16.mxu0 %v2147_v0  ;;  %2008 = vmatprep.subr.bf16.mxu1 %v2147_v0  ;;  %v2128_v4 = vld [vmem:[%s2606_s0 + $0x1c0] ss:$8 sps:$4 sm:$0xff]   ;;  %v2129_v5 = vld [vmem:[%s2606_s0 + $0xd4] ss:$8 sps:$4 sm:$0xff]   ;;  %v2133_v7 = vld [vmem:[%s2606_s0 + $0xd0] ss:$8 sps:$4 sm:$0xff]  }
  0x18   :  { %v2131_v6 = vld [vmem:[%s2606_s0 + $0x1d4] ss:$8 sps:$4 sm:$0xff]   ;;  %v2134_v8 = vld [vmem:[%s2606_s0 + $0x1d0] ss:$8 sps:$4 sm:$0xff]  }
  0x1a   :  { %672 = vmatpush1.bf16.msra.mxu0 %v2041_v9  ;;  %2024 = vmatpush1.bf16.msra.mxu1 %v2041_v9  ;;  %v2135_v9 = vld [vmem:[%s2606_s0 + $0xe4] ss:$8 sps:$4 sm:$0xff]  }
  0x1b   :  { %673 = vmatprep.subr.bf16.mxu0 %v2147_v0  ;;  %2009 = vmatprep.subr.bf16.mxu1 %v2147_v0 }
  0x1e   :  { %674 = vmatpush1.bf16.msra.mxu0 %v2042_v10  ;;  %2025 = vmatpush1.bf16.msra.mxu1 %v2042_v10  ;;  %v2137_v10 = vld [vmem:[%s2606_s0 + $0x1e4] ss:$8 sps:$4 sm:$0xff]  }
  0x1f   :  { %675 = vmatprep.subr.bf16.mxu0 %v2147_v0  ;;  %2010 = vmatprep.subr.bf16.mxu1 %v2147_v0 }
  0x22   :  { %676 = vmatpush1.bf16.msra.mxu0 %v2043_v11  ;;  %2026 = vmatpush1.bf16.msra.mxu1 %v2043_v11  ;;  %v2139_v11 = vld [vmem:[%s2606_s0 + $0xe0] ss:$8 sps:$4 sm:$0xff]  }
  0x23   :  { %677 = vmatprep.subr.bf16.mxu0 %v2147_v0  ;;  %2011 = vmatprep.subr.bf16.mxu1 %v2147_v0 }
  0x26   :  { %678 = vmatpush1.bf16.msra.mxu0 %v2044_v12  ;;  %2027 = vmatpush1.bf16.msra.mxu1 %v2044_v12  ;;  %v2140_v12 = vld [vmem:[%s2606_s0 + $0x1e0] ss:$8 sps:$4 sm:$0xff]  }
  0x27   :  { %679 = vmatprep.subr.bf16.mxu0 %v2147_v0  ;;  %2012 = vmatprep.subr.bf16.mxu1 %v2147_v0 }
  0x2a   :  { %680 = vmatpush1.bf16.msra.mxu0 %v2045_v13  ;;  %2028 = vmatpush1.bf16.msra.mxu1 %v2045_v13  ;;  %v2141_v13 = vld [vmem:[%s2606_s0 + $0xf4] ss:$8 sps:$4 sm:$0xff]  }
  0x2b   :  { %681 = vmatprep.subr.bf16.mxu0 %v2147_v0  ;;  %2013 = vmatprep.subr.bf16.mxu1 %v2147_v0 }
  0x2e   :  { %682 = vmatpush1.bf16.msra.mxu0 %v2046_v14  ;;  %2029 = vmatpush1.bf16.msra.mxu1 %v2046_v14  ;;  %v2143_v14 = vld [vmem:[%s2606_s0 + $0x1f4] ss:$8 sps:$4 sm:$0xff]  }
  0x2f   :  { %683 = vmatprep.subr.bf16.mxu0 %v2147_v0  ;;  %2014 = vmatprep.subr.bf16.mxu1 %v2147_v0 }
  0x32   :  { %684 = vmatpush1.bf16.msra.mxu0 %v2047_v15  ;;  %2030 = vmatpush1.bf16.msra.mxu1 %v2047_v15  ;;  %v2145_v15 = vld [vmem:[%s2606_s0 + $0xf0] ss:$8 sps:$4 sm:$0xff]  }
  0x33   :  { %685 = vmatprep.subr.bf16.mxu0 %v2147_v0  ;;  %2015 = vmatprep.subr.bf16.mxu1 %v2147_v0 }
  0x36   :  { %686 = vmatpush1.bf16.msra.mxu0 %v2048_v16  ;;  %2031 = vmatpush1.bf16.msra.mxu1 %v2048_v16  ;;  %v2146_v16 = vld [vmem:[%s2606_s0 + $0x1f0] ss:$8 sps:$4 sm:$0xff]  }
  0x37   :  { %687 = vmatprep.subr.bf16.mxu0 %v2147_v0  ;;  %2016 = vmatprep.subr.bf16.mxu1 %v2147_v0 }
  0x3a   :  { %688 = vmatpush1.bf16.msra.mxu0 %v2049_v17  ;;  %2032 = vmatpush1.bf16.msra.mxu1 %v2049_v17  ;;  %v2443_v17 = vld [vmem:[%s2607_s2] ss:$0 sm:$0xff] }
  0x3b   :  { %689 = vmatprep.subr.bf16.mxu0 %v2147_v0  ;;  %2017 = vmatprep.subr.bf16.mxu1 %v2147_v0  ;;  %v2122_v0 = vld [vmem:[%s2606_s0 + $0x1b0] ss:$8 sps:$4 sm:$0xff]  }
  0x3e   :  { %690 = vmatpush1.bf16.msra.mxu0 %v2050_v18  ;;  %2033 = vmatpush1.bf16.msra.mxu1 %v2050_v18 }
  0x41   :  { %692 = vmatmul.mubr.bf16.vlgmr.msra.gmra.mrb[0].mxu0 %v2051_v19  ;;  %820 = vmatmul.mubr.bf16.vlgmr.msra.gmra.mrb[0].mxu1 %v2054_v20 }
  0x42   :  { %699 = vmatprep.mubr.bf16.mxu0 %v2057_v21  ;;  %827 = vmatprep.mubr.bf16.mxu1 %v2059_v22 }
  0x49   :  { %700 = vmatmul.mubr.bf16.gmra.mrb[4].mxu0 %v2061_v23  ;;  %828 = vmatmul.mubr.bf16.gmra.mrb[4].mxu1 %v2062_v24 }
  0x4a   :  { %707 = vmatprep.mubr.bf16.mxu0 %v2063_v25  ;;  %835 = vmatprep.mubr.bf16.mxu1 %v2065_v26 }
  0x51   :  { %708 = vmatmul.mubr.bf16.gmra.mrb[8].mxu0 %v2067_v27  ;;  %836 = vmatmul.mubr.bf16.gmra.mrb[8].mxu1 %v2068_v28 }
  0x52   :  { %715 = vmatprep.mubr.bf16.mxu0 %v2069_v29  ;;  %843 = vmatprep.mubr.bf16.mxu1 %v2071_v30 }
  0x59   :  { %716 = vmatmul.mubr.bf16.gmra.mrb[12].mxu0 %v2073_v31  ;;  %844 = vmatmul.mubr.bf16.gmra.mrb[12].mxu1 %v2074_v32 }
  0x5a   :  { %723 = vmatprep.mubr.bf16.mxu0 %v2075_v33  ;;  %851 = vmatprep.mubr.bf16.mxu1 %v2077_v34 }
  0x61   :  { %724 = vmatmul.mubr.bf16.gmra.mrb[16].mxu0 %v2079_v35  ;;  %852 = vmatmul.mubr.bf16.gmra.mrb[16].mxu1 %v2080_v36 }
  0x62   :  { %731 = vmatprep.mubr.bf16.mxu0 %v2081_v37  ;;  %859 = vmatprep.mubr.bf16.mxu1 %v2083_v38 }
  0x69   :  { %732 = vmatmul.mubr.bf16.gmra.mrb[20].mxu0 %v2085_v39  ;;  %860 = vmatmul.mubr.bf16.gmra.mrb[20].mxu1 %v2086_v40 }
  0x6a   :  { %739 = vmatprep.mubr.bf16.mxu0 %v2087_v41  ;;  %867 = vmatprep.mubr.bf16.mxu1 %v2089_v42 }
  0x71   :  { %740 = vmatmul.mubr.bf16.gmra.mrb[24].mxu0 %v2091_v43  ;;  %868 = vmatmul.mubr.bf16.gmra.mrb[24].mxu1 %v2092_v44 }
  0x72   :  { %747 = vmatprep.mubr.bf16.mxu0 %v2093_v45  ;;  %875 = vmatprep.mubr.bf16.mxu1 %v2095_v46 }
  0x79   :  { %748 = vmatmul.mubr.bf16.gmra.mrb[28].mxu0 %v2097_v47  ;;  %876 = vmatmul.mubr.bf16.gmra.mrb[28].mxu1 %v2098_v48 }
  0x7a   :  { %755 = vmatprep.mubr.bf16.mxu0 %v2099_v49  ;;  %883 = vmatprep.mubr.bf16.mxu1 %v2101_v50 }
  0x81   :  { %756 = vmatmul.mubr.bf16.gmra.mrb[32].mxu0 %v2103_v51  ;;  %884 = vmatmul.mubr.bf16.gmra.mrb[32].mxu1 %v2104_v52 }
  0x82   :  { %763 = vmatprep.mubr.bf16.mxu0 %v2105_v53  ;;  %891 = vmatprep.mubr.bf16.mxu1 %v2107_v54 }
  0x89   :  { %764 = vmatmul.mubr.bf16.gmra.mrb[36].mxu0 %v2109_v55  ;;  %892 = vmatmul.mubr.bf16.gmra.mrb[36].mxu1 %v2110_v56 }
  0x8a   :  { %771 = vmatprep.mubr.bf16.mxu0 %v2111_v57  ;;  %899 = vmatprep.mubr.bf16.mxu1 %v2113_v58 }
  0x91   :  { %772 = vmatmul.mubr.bf16.gmra.mrb[40].mxu0 %v2115_v59  ;;  %900 = vmatmul.mubr.bf16.gmra.mrb[40].mxu1 %v2116_v60 }
  0x92   :  { %779 = vmatprep.mubr.bf16.mxu0 %v2117_v61  ;;  %907 = vmatprep.mubr.bf16.mxu1 %v2119_v62 }
  0x99   :  { %780 = vmatmul.mubr.bf16.gmra.mrb[44].mxu0 %v2121_v63  ;;  %908 = vmatmul.mubr.bf16.gmra.mrb[44].mxu1 %v2122_v0 }
  0x9a   :  { %787 = vmatprep.mubr.bf16.mxu0 %v2123_v1  ;;  %915 = vmatprep.mubr.bf16.mxu1 %v2125_v2 }
  0xa1   :  { %788 = vmatmul.mubr.bf16.gmra.mrb[48].mxu0 %v2127_v3  ;;  %916 = vmatmul.mubr.bf16.gmra.mrb[48].mxu1 %v2128_v4 }
  0xa2   :  { %795 = vmatprep.mubr.bf16.mxu0 %v2129_v5  ;;  %923 = vmatprep.mubr.bf16.mxu1 %v2131_v6 }
  0xa9   :  { %796 = vmatmul.mubr.bf16.gmra.mrb[52].mxu0 %v2133_v7  ;;  %924 = vmatmul.mubr.bf16.gmra.mrb[52].mxu1 %v2134_v8 }
  0xaa   :  { %803 = vmatprep.mubr.bf16.mxu0 %v2135_v9  ;;  %931 = vmatprep.mubr.bf16.mxu1 %v2137_v10 }
  0xb1   :  { %804 = vmatmul.mubr.bf16.gmra.mrb[56].mxu0 %v2139_v11  ;;  %932 = vmatmul.mubr.bf16.gmra.mrb[56].mxu1 %v2140_v12 }
  0xb2   :  { %811 = vmatprep.mubr.bf16.mxu0 %v2141_v13  ;;  %939 = vmatprep.mubr.bf16.mxu1 %v2143_v14 }
  0xb9   :  { %812 = vmatmul.mubr.bf16.gmra.mrb[60].mxu0 %v2145_v15  ;;  %940 = vmatmul.mubr.bf16.gmra.mrb[60].mxu1 %v2146_v16 }
 0x114   :  { %v693_v18 = vpop.f32.mrb[0].mxu0  ;;  %v821_v19 = vpop.f32.mrb[0].mxu1 }
 0x115   :  { %v1150_v20 = vadd.f32 %v2443_v17, %v693_v18  ;;  %v1182_v21 = vadd.f32 %v2443_v17, %v821_v19  ;;  %v695_v22 = vpop.f32.mrb[1].mxu0  ;;  %v823_v23 = vpop.f32.mrb[1].mxu1 }
 0x116   :  { %v696_v24 = vpop.f32.mrb[2].mxu0  ;;  %v824_v25 = vpop.f32.mrb[2].mxu1 }
 0x117   :  { %v1151_v26 = vadd.f32 %v2443_v17, %v696_v24  ;;  %v1183_v27 = vadd.f32 %v2443_v17, %v824_v25  ;;  %v698_v28 = vpop.f32.mrb[3].mxu0  ;;  %v826_v29 = vpop.f32.mrb[3].mxu1  ;;  %v1214_v30 = vmax.f32 %v1150_v20, 0.0  ;;  %v1246_v31 = vmax.f32 %v1182_v21, 0.0 }
 0x119   :  { %v1215_v32 = vmax.f32 %v1151_v26, 0.0  ;;  %v1247_v33 = vmax.f32 %v1183_v27, 0.0 }
 0x11b   :  { %v1814_v34 = vpack.c.bf16 %v1215_v32, %v1214_v30  ;;  %v1894_v35 = vpack.c.bf16 %v1247_v33, %v1246_v31 }
 0x11c   :  { %v701_v36 = vpop.f32.mrb[4].mxu0  ;;  %v829_v37 = vpop.f32.mrb[4].mxu1 }
 0x11d   :  { %1815 = vst [vmem:[%s2608_s3] sm:$0xff] %v1814_v34   ;;  %1986 = vst [vmem:[%s2608_s3 + $0x80] sm:$0xff] %v1894_v35   ;;  %v1152_v38 = vadd.f32 %v2443_v17, %v701_v36  ;;  %v1184_v39 = vadd.f32 %v2443_v17, %v829_v37  ;;  %v703_v40 = vpop.f32.mrb[5].mxu0  ;;  %v831_v41 = vpop.f32.mrb[5].mxu1 }
 0x11e   :  { %v704_v42 = vpop.f32.mrb[6].mxu0  ;;  %v832_v43 = vpop.f32.mrb[6].mxu1 }
 0x11f   :  { %v1153_v44 = vadd.f32 %v2443_v17, %v704_v42  ;;  %v1185_v45 = vadd.f32 %v2443_v17, %v832_v43  ;;  %v706_v46 = vpop.f32.mrb[7].mxu0  ;;  %v834_v47 = vpop.f32.mrb[7].mxu1  ;;  %v1216_v48 = vmax.f32 %v1152_v38, 0.0  ;;  %v1248_v49 = vmax.f32 %v1184_v39, 0.0 }
 0x121   :  { %v1217_v50 = vmax.f32 %v1153_v44, 0.0  ;;  %v1249_v51 = vmax.f32 %v1185_v45, 0.0 }
 0x123   :  { %v1819_v52 = vpack.c.bf16 %v1217_v50, %v1216_v48  ;;  %v1899_v53 = vpack.c.bf16 %v1249_v51, %v1248_v49 }
 0x124   :  { %v709_v54 = vpop.f32.mrb[8].mxu0  ;;  %v837_v55 = vpop.f32.mrb[8].mxu1 }
 0x125   :  { %1971 = vst [vmem:[%s2608_s3 + $0x8] sm:$0xff] %v1819_v52   ;;  %1987 = vst [vmem:[%s2608_s3 + $0x88] sm:$0xff] %v1899_v53   ;;  %v1154_v56 = vadd.f32 %v2443_v17, %v709_v54  ;;  %v1186_v57 = vadd.f32 %v2443_v17, %v837_v55  ;;  %v711_v58 = vpop.f32.mrb[9].mxu0  ;;  %v839_v59 = vpop.f32.mrb[9].mxu1 }
 0x126   :  { %v712_v60 = vpop.f32.mrb[10].mxu0  ;;  %v840_v61 = vpop.f32.mrb[10].mxu1 }
 0x127   :  { %v1155_v62 = vadd.f32 %v2443_v17, %v712_v60  ;;  %v1187_v63 = vadd.f32 %v2443_v17, %v840_v61  ;;  %v714_v0 = vpop.f32.mrb[11].mxu0  ;;  %v842_v1 = vpop.f32.mrb[11].mxu1  ;;  %v1218_v2 = vmax.f32 %v1154_v56, 0.0  ;;  %v1250_v3 = vmax.f32 %v1186_v57, 0.0 }
 0x129   :  { %v1219_v4 = vmax.f32 %v1155_v62, 0.0  ;;  %v1251_v5 = vmax.f32 %v1187_v63, 0.0 }
 0x12b   :  { %v1824_v6 = vpack.c.bf16 %v1219_v4, %v1218_v2  ;;  %v1904_v7 = vpack.c.bf16 %v1251_v5, %v1250_v3 }
 0x12c   :  { %v717_v8 = vpop.f32.mrb[12].mxu0  ;;  %v845_v9 = vpop.f32.mrb[12].mxu1 }
 0x12d   :  { %1972 = vst [vmem:[%s2608_s3 + $0x10] sm:$0xff] %v1824_v6   ;;  %1988 = vst [vmem:[%s2608_s3 + $0x90] sm:$0xff] %v1904_v7   ;;  %v1156_v10 = vadd.f32 %v2443_v17, %v717_v8  ;;  %v1188_v11 = vadd.f32 %v2443_v17, %v845_v9  ;;  %v719_v12 = vpop.f32.mrb[13].mxu0  ;;  %v847_v13 = vpop.f32.mrb[13].mxu1 }
 0x12e   :  { %v720_v14 = vpop.f32.mrb[14].mxu0  ;;  %v848_v15 = vpop.f32.mrb[14].mxu1 }
 0x12f   :  { %v1157_v16 = vadd.f32 %v2443_v17, %v720_v14  ;;  %v1189_v18 = vadd.f32 %v2443_v17, %v848_v15  ;;  %v722_v19 = vpop.f32.mrb[15].mxu0  ;;  %v850_v20 = vpop.f32.mrb[15].mxu1  ;;  %v1220_v21 = vmax.f32 %v1156_v10, 0.0  ;;  %v1252_v22 = vmax.f32 %v1188_v11, 0.0 }
 0x131   :  { %v1221_v23 = vmax.f32 %v1157_v16, 0.0  ;;  %v1253_v24 = vmax.f32 %v1189_v18, 0.0 }
 0x133   :  { %v1829_v25 = vpack.c.bf16 %v1221_v23, %v1220_v21  ;;  %v1909_v26 = vpack.c.bf16 %v1253_v24, %v1252_v22 }
 0x134   :  { %v725_v27 = vpop.f32.mrb[16].mxu0  ;;  %v853_v28 = vpop.f32.mrb[16].mxu1 }
 0x135   :  { %1973 = vst [vmem:[%s2608_s3 + $0x18] sm:$0xff] %v1829_v25   ;;  %1989 = vst [vmem:[%s2608_s3 + $0x98] sm:$0xff] %v1909_v26   ;;  %v1158_v29 = vadd.f32 %v2443_v17, %v725_v27  ;;  %v1190_v30 = vadd.f32 %v2443_v17, %v853_v28  ;;  %v727_v31 = vpop.f32.mrb[17].mxu0  ;;  %v855_v32 = vpop.f32.mrb[17].mxu1 }
 0x136   :  { %v728_v33 = vpop.f32.mrb[18].mxu0  ;;  %v856_v34 = vpop.f32.mrb[18].mxu1 }
 0x137   :  { %v1159_v35 = vadd.f32 %v2443_v17, %v728_v33  ;;  %v1191_v36 = vadd.f32 %v2443_v17, %v856_v34  ;;  %v730_v37 = vpop.f32.mrb[19].mxu0  ;;  %v858_v38 = vpop.f32.mrb[19].mxu1  ;;  %v1222_v39 = vmax.f32 %v1158_v29, 0.0  ;;  %v1254_v40 = vmax.f32 %v1190_v30, 0.0 }
 0x139   :  { %v1223_v41 = vmax.f32 %v1159_v35, 0.0  ;;  %v1255_v42 = vmax.f32 %v1191_v36, 0.0 }
 0x13b   :  { %v1834_v43 = vpack.c.bf16 %v1223_v41, %v1222_v39  ;;  %v1914_v44 = vpack.c.bf16 %v1255_v42, %v1254_v40 }
 0x13c   :  { %v733_v45 = vpop.f32.mrb[20].mxu0  ;;  %v861_v46 = vpop.f32.mrb[20].mxu1 }
 0x13d   :  { %1974 = vst [vmem:[%s2608_s3 + $0x20] sm:$0xff] %v1834_v43   ;;  %1990 = vst [vmem:[%s2608_s3 + $0xa0] sm:$0xff] %v1914_v44   ;;  %v1160_v47 = vadd.f32 %v2443_v17, %v733_v45  ;;  %v1192_v48 = vadd.f32 %v2443_v17, %v861_v46  ;;  %v735_v49 = vpop.f32.mrb[21].mxu0  ;;  %v863_v50 = vpop.f32.mrb[21].mxu1 }
 0x13e   :  { %v736_v51 = vpop.f32.mrb[22].mxu0  ;;  %v864_v52 = vpop.f32.mrb[22].mxu1 }
 0x13f   :  { %v1161_v53 = vadd.f32 %v2443_v17, %v736_v51  ;;  %v1193_v54 = vadd.f32 %v2443_v17, %v864_v52  ;;  %v738_v55 = vpop.f32.mrb[23].mxu0  ;;  %v866_v56 = vpop.f32.mrb[23].mxu1  ;;  %v1224_v57 = vmax.f32 %v1160_v47, 0.0  ;;  %v1256_v58 = vmax.f32 %v1192_v48, 0.0 }
 0x141   :  { %v1225_v59 = vmax.f32 %v1161_v53, 0.0  ;;  %v1257_v60 = vmax.f32 %v1193_v54, 0.0 }
 0x143   :  { %v1839_v61 = vpack.c.bf16 %v1225_v59, %v1224_v57  ;;  %v1919_v62 = vpack.c.bf16 %v1257_v60, %v1256_v58 }
 0x144   :  { %v741_v63 = vpop.f32.mrb[24].mxu0  ;;  %v869_v0 = vpop.f32.mrb[24].mxu1 }
 0x145   :  { %1975 = vst [vmem:[%s2608_s3 + $0x28] sm:$0xff] %v1839_v61   ;;  %1991 = vst [vmem:[%s2608_s3 + $0xa8] sm:$0xff] %v1919_v62   ;;  %v1162_v1 = vadd.f32 %v2443_v17, %v741_v63  ;;  %v1194_v2 = vadd.f32 %v2443_v17, %v869_v0  ;;  %v743_v3 = vpop.f32.mrb[25].mxu0  ;;  %v871_v4 = vpop.f32.mrb[25].mxu1 }
 0x146   :  { %v744_v5 = vpop.f32.mrb[26].mxu0  ;;  %v872_v6 = vpop.f32.mrb[26].mxu1 }
 0x147   :  { %v1163_v7 = vadd.f32 %v2443_v17, %v744_v5  ;;  %v1195_v8 = vadd.f32 %v2443_v17, %v872_v6  ;;  %v746_v9 = vpop.f32.mrb[27].mxu0  ;;  %v874_v10 = vpop.f32.mrb[27].mxu1  ;;  %v1226_v11 = vmax.f32 %v1162_v1, 0.0  ;;  %v1258_v12 = vmax.f32 %v1194_v2, 0.0 }
 0x149   :  { %v1227_v13 = vmax.f32 %v1163_v7, 0.0  ;;  %v1259_v14 = vmax.f32 %v1195_v8, 0.0 }
 0x14b   :  { %v1844_v15 = vpack.c.bf16 %v1227_v13, %v1226_v11  ;;  %v1924_v16 = vpack.c.bf16 %v1259_v14, %v1258_v12 }
 0x14c   :  { %v749_v18 = vpop.f32.mrb[28].mxu0  ;;  %v877_v19 = vpop.f32.mrb[28].mxu1 }
 0x14d   :  { %1976 = vst [vmem:[%s2608_s3 + $0x30] sm:$0xff] %v1844_v15   ;;  %1992 = vst [vmem:[%s2608_s3 + $0xb0] sm:$0xff] %v1924_v16   ;;  %v1164_v20 = vadd.f32 %v2443_v17, %v749_v18  ;;  %v1196_v21 = vadd.f32 %v2443_v17, %v877_v19  ;;  %v751_v22 = vpop.f32.mrb[29].mxu0  ;;  %v879_v23 = vpop.f32.mrb[29].mxu1 }
 0x14e   :  { %v752_v24 = vpop.f32.mrb[30].mxu0  ;;  %v880_v25 = vpop.f32.mrb[30].mxu1 }
 0x14f   :  { %v1165_v26 = vadd.f32 %v2443_v17, %v752_v24  ;;  %v1197_v27 = vadd.f32 %v2443_v17, %v880_v25  ;;  %v754_v28 = vpop.f32.mrb[31].mxu0  ;;  %v882_v29 = vpop.f32.mrb[31].mxu1  ;;  %v1228_v30 = vmax.f32 %v1164_v20, 0.0  ;;  %v1260_v31 = vmax.f32 %v1196_v21, 0.0 }
 0x151   :  { %v1229_v32 = vmax.f32 %v1165_v26, 0.0  ;;  %v1261_v33 = vmax.f32 %v1197_v27, 0.0 }
 0x153   :  { %v1849_v34 = vpack.c.bf16 %v1229_v32, %v1228_v30  ;;  %v1929_v35 = vpack.c.bf16 %v1261_v33, %v1260_v31 }
 0x154   :  { %v757_v36 = vpop.f32.mrb[32].mxu0  ;;  %v885_v37 = vpop.f32.mrb[32].mxu1 }
 0x155   :  { %1977 = vst [vmem:[%s2608_s3 + $0x38] sm:$0xff] %v1849_v34   ;;  %1993 = vst [vmem:[%s2608_s3 + $0xb8] sm:$0xff] %v1929_v35   ;;  %v1166_v38 = vadd.f32 %v2443_v17, %v757_v36  ;;  %v1198_v39 = vadd.f32 %v2443_v17, %v885_v37  ;;  %v759_v40 = vpop.f32.mrb[33].mxu0  ;;  %v887_v41 = vpop.f32.mrb[33].mxu1 }
 0x156   :  { %v760_v42 = vpop.f32.mrb[34].mxu0  ;;  %v888_v43 = vpop.f32.mrb[34].mxu1 }
 0x157   :  { %v1167_v44 = vadd.f32 %v2443_v17, %v760_v42  ;;  %v1199_v45 = vadd.f32 %v2443_v17, %v888_v43  ;;  %v762_v46 = vpop.f32.mrb[35].mxu0  ;;  %v890_v47 = vpop.f32.mrb[35].mxu1  ;;  %v1230_v48 = vmax.f32 %v1166_v38, 0.0  ;;  %v1262_v49 = vmax.f32 %v1198_v39, 0.0 }
 0x159   :  { %v1231_v50 = vmax.f32 %v1167_v44, 0.0  ;;  %v1263_v51 = vmax.f32 %v1199_v45, 0.0 }
 0x15b   :  { %v1854_v52 = vpack.c.bf16 %v1231_v50, %v1230_v48  ;;  %v1934_v53 = vpack.c.bf16 %v1263_v51, %v1262_v49 }
 0x15c   :  { %v765_v54 = vpop.f32.mrb[36].mxu0  ;;  %v893_v55 = vpop.f32.mrb[36].mxu1 }
 0x15d   :  { %1978 = vst [vmem:[%s2608_s3 + $0x40] sm:$0xff] %v1854_v52   ;;  %1994 = vst [vmem:[%s2608_s3 + $0xc0] sm:$0xff] %v1934_v53   ;;  %v1168_v56 = vadd.f32 %v2443_v17, %v765_v54  ;;  %v1200_v57 = vadd.f32 %v2443_v17, %v893_v55  ;;  %v767_v58 = vpop.f32.mrb[37].mxu0  ;;  %v895_v59 = vpop.f32.mrb[37].mxu1 }
 0x15e   :  { %v768_v60 = vpop.f32.mrb[38].mxu0  ;;  %v896_v61 = vpop.f32.mrb[38].mxu1 }
 0x15f   :  { %v1169_v62 = vadd.f32 %v2443_v17, %v768_v60  ;;  %v1201_v63 = vadd.f32 %v2443_v17, %v896_v61  ;;  %v770_v0 = vpop.f32.mrb[39].mxu0  ;;  %v898_v1 = vpop.f32.mrb[39].mxu1  ;;  %v1232_v2 = vmax.f32 %v1168_v56, 0.0  ;;  %v1264_v3 = vmax.f32 %v1200_v57, 0.0 }
 0x161   :  { %v1233_v4 = vmax.f32 %v1169_v62, 0.0  ;;  %v1265_v5 = vmax.f32 %v1201_v63, 0.0 }
 0x163   :  { %v1859_v6 = vpack.c.bf16 %v1233_v4, %v1232_v2  ;;  %v1939_v7 = vpack.c.bf16 %v1265_v5, %v1264_v3 }
 0x164   :  { %v773_v8 = vpop.f32.mrb[40].mxu0  ;;  %v901_v9 = vpop.f32.mrb[40].mxu1 }
 0x165   :  { %1979 = vst [vmem:[%s2608_s3 + $0x48] sm:$0xff] %v1859_v6   ;;  %1995 = vst [vmem:[%s2608_s3 + $0xc8] sm:$0xff] %v1939_v7   ;;  %v1170_v10 = vadd.f32 %v2443_v17, %v773_v8  ;;  %v1202_v11 = vadd.f32 %v2443_v17, %v901_v9  ;;  %v775_v12 = vpop.f32.mrb[41].mxu0  ;;  %v903_v13 = vpop.f32.mrb[41].mxu1 }
 0x166   :  { %v776_v14 = vpop.f32.mrb[42].mxu0  ;;  %v904_v15 = vpop.f32.mrb[42].mxu1 }
 0x167   :  { %v1171_v16 = vadd.f32 %v2443_v17, %v776_v14  ;;  %v1203_v18 = vadd.f32 %v2443_v17, %v904_v15  ;;  %v778_v19 = vpop.f32.mrb[43].mxu0  ;;  %v906_v20 = vpop.f32.mrb[43].mxu1  ;;  %v1234_v21 = vmax.f32 %v1170_v10, 0.0  ;;  %v1266_v22 = vmax.f32 %v1202_v11, 0.0 }
 0x169   :  { %v1235_v23 = vmax.f32 %v1171_v16, 0.0  ;;  %v1267_v24 = vmax.f32 %v1203_v18, 0.0 }
 0x16b   :  { %v1864_v25 = vpack.c.bf16 %v1235_v23, %v1234_v21  ;;  %v1944_v26 = vpack.c.bf16 %v1267_v24, %v1266_v22 }
 0x16c   :  { %v781_v27 = vpop.f32.mrb[44].mxu0  ;;  %v909_v28 = vpop.f32.mrb[44].mxu1 }
 0x16d   :  { %1980 = vst [vmem:[%s2608_s3 + $0x50] sm:$0xff] %v1864_v25   ;;  %1996 = vst [vmem:[%s2608_s3 + $0xd0] sm:$0xff] %v1944_v26   ;;  %v1172_v29 = vadd.f32 %v2443_v17, %v781_v27  ;;  %v1204_v30 = vadd.f32 %v2443_v17, %v909_v28  ;;  %v783_v31 = vpop.f32.mrb[45].mxu0  ;;  %v911_v32 = vpop.f32.mrb[45].mxu1 }
 0x16e   :  { %v784_v33 = vpop.f32.mrb[46].mxu0  ;;  %v912_v34 = vpop.f32.mrb[46].mxu1 }
 0x16f   :  { %v1173_v35 = vadd.f32 %v2443_v17, %v784_v33  ;;  %v1205_v36 = vadd.f32 %v2443_v17, %v912_v34  ;;  %v786_v37 = vpop.f32.mrb[47].mxu0  ;;  %v914_v38 = vpop.f32.mrb[47].mxu1  ;;  %v1236_v39 = vmax.f32 %v1172_v29, 0.0  ;;  %v1268_v40 = vmax.f32 %v1204_v30, 0.0 }
 0x171   :  { %v1237_v41 = vmax.f32 %v1173_v35, 0.0  ;;  %v1269_v42 = vmax.f32 %v1205_v36, 0.0 }
 0x173   :  { %v1869_v43 = vpack.c.bf16 %v1237_v41, %v1236_v39  ;;  %v1949_v44 = vpack.c.bf16 %v1269_v42, %v1268_v40 }
 0x174   :  { %v789_v45 = vpop.f32.mrb[48].mxu0  ;;  %v917_v46 = vpop.f32.mrb[48].mxu1 }
 0x175   :  { %1981 = vst [vmem:[%s2608_s3 + $0x58] sm:$0xff] %v1869_v43   ;;  %1997 = vst [vmem:[%s2608_s3 + $0xd8] sm:$0xff] %v1949_v44   ;;  %v1174_v47 = vadd.f32 %v2443_v17, %v789_v45  ;;  %v1206_v48 = vadd.f32 %v2443_v17, %v917_v46  ;;  %v791_v49 = vpop.f32.mrb[49].mxu0  ;;  %v919_v50 = vpop.f32.mrb[49].mxu1 }
 0x176   :  { %v792_v51 = vpop.f32.mrb[50].mxu0  ;;  %v920_v52 = vpop.f32.mrb[50].mxu1 }
 0x177   :  { %v1175_v53 = vadd.f32 %v2443_v17, %v792_v51  ;;  %v1207_v54 = vadd.f32 %v2443_v17, %v920_v52  ;;  %v794_v55 = vpop.f32.mrb[51].mxu0  ;;  %v922_v56 = vpop.f32.mrb[51].mxu1  ;;  %v1238_v57 = vmax.f32 %v1174_v47, 0.0  ;;  %v1270_v58 = vmax.f32 %v1206_v48, 0.0 }
 0x179   :  { %v1239_v59 = vmax.f32 %v1175_v53, 0.0  ;;  %v1271_v60 = vmax.f32 %v1207_v54, 0.0 }
 0x17b   :  { %v1874_v61 = vpack.c.bf16 %v1239_v59, %v1238_v57  ;;  %v1954_v62 = vpack.c.bf16 %v1271_v60, %v1270_v58 }
 0x17c   :  { %v797_v63 = vpop.f32.mrb[52].mxu0  ;;  %v925_v0 = vpop.f32.mrb[52].mxu1 }
 0x17d   :  { %1982 = vst [vmem:[%s2608_s3 + $0x60] sm:$0xff] %v1874_v61   ;;  %1998 = vst [vmem:[%s2608_s3 + $0xe0] sm:$0xff] %v1954_v62   ;;  %v1176_v1 = vadd.f32 %v2443_v17, %v797_v63  ;;  %v1208_v2 = vadd.f32 %v2443_v17, %v925_v0  ;;  %v799_v3 = vpop.f32.mrb[53].mxu0  ;;  %v927_v4 = vpop.f32.mrb[53].mxu1 }
 0x17e   :  { %v800_v5 = vpop.f32.mrb[54].mxu0  ;;  %v928_v6 = vpop.f32.mrb[54].mxu1 }
 0x17f   :  { %v1177_v7 = vadd.f32 %v2443_v17, %v800_v5  ;;  %v1209_v8 = vadd.f32 %v2443_v17, %v928_v6  ;;  %v802_v9 = vpop.f32.mrb[55].mxu0  ;;  %v930_v10 = vpop.f32.mrb[55].mxu1  ;;  %v1240_v11 = vmax.f32 %v1176_v1, 0.0  ;;  %v1272_v12 = vmax.f32 %v1208_v2, 0.0 }
 0x181   :  { %v1241_v13 = vmax.f32 %v1177_v7, 0.0  ;;  %v1273_v14 = vmax.f32 %v1209_v8, 0.0 }
 0x183   :  { %v1879_v15 = vpack.c.bf16 %v1241_v13, %v1240_v11  ;;  %v1959_v16 = vpack.c.bf16 %v1273_v14, %v1272_v12 }
 0x184   :  { %v805_v18 = vpop.f32.mrb[56].mxu0  ;;  %v933_v19 = vpop.f32.mrb[56].mxu1 }
 0x185   :  { %1983 = vst [vmem:[%s2608_s3 + $0x68] sm:$0xff] %v1879_v15   ;;  %1999 = vst [vmem:[%s2608_s3 + $0xe8] sm:$0xff] %v1959_v16   ;;  %v1178_v20 = vadd.f32 %v2443_v17, %v805_v18  ;;  %v1210_v21 = vadd.f32 %v2443_v17, %v933_v19  ;;  %v807_v22 = vpop.f32.mrb[57].mxu0  ;;  %v935_v23 = vpop.f32.mrb[57].mxu1 }
 0x186   :  { %v808_v24 = vpop.f32.mrb[58].mxu0  ;;  %v936_v25 = vpop.f32.mrb[58].mxu1 }
 0x187   :  { %v1179_v26 = vadd.f32 %v2443_v17, %v808_v24  ;;  %v1211_v27 = vadd.f32 %v2443_v17, %v936_v25  ;;  %v810_v28 = vpop.f32.mrb[59].mxu0  ;;  %v938_v29 = vpop.f32.mrb[59].mxu1  ;;  %v1242_v30 = vmax.f32 %v1178_v20, 0.0  ;;  %v1274_v31 = vmax.f32 %v1210_v21, 0.0 }
 0x189   :  { %v1243_v32 = vmax.f32 %v1179_v26, 0.0  ;;  %v1275_v33 = vmax.f32 %v1211_v27, 0.0 }
 0x18b   :  { %v1884_v34 = vpack.c.bf16 %v1243_v32, %v1242_v30  ;;  %v1964_v35 = vpack.c.bf16 %v1275_v33, %v1274_v31 }
 0x18c   :  { %v813_v36 = vpop.f32.mrb[60].mxu0  ;;  %v941_v37 = vpop.f32.mrb[60].mxu1 }
 0x18d   :  { %1984 = vst [vmem:[%s2608_s3 + $0x70] sm:$0xff] %v1884_v34   ;;  %2000 = vst [vmem:[%s2608_s3 + $0xf0] sm:$0xff] %v1964_v35   ;;  %v1180_v38 = vadd.f32 %v2443_v17, %v813_v36  ;;  %v1212_v39 = vadd.f32 %v2443_v17, %v941_v37  ;;  %v815_v40 = vpop.f32.mrb[61].mxu0  ;;  %v943_v41 = vpop.f32.mrb[61].mxu1 }
 0x18e   :  { %v816_v42 = vpop.f32.mrb[62].mxu0  ;;  %v944_v43 = vpop.f32.mrb[62].mxu1 }
 0x18f   :  { %v1181_v44 = vadd.f32 %v2443_v17, %v816_v42  ;;  %v1213_v45 = vadd.f32 %v2443_v17, %v944_v43  ;;  %v818_v46 = vpop.f32.mrb[63].mxu0  ;;  %v946_v47 = vpop.f32.mrb[63].mxu1  ;;  %v1244_v48 = vmax.f32 %v1180_v38, 0.0  ;;  %v1276_v49 = vmax.f32 %v1212_v39, 0.0 }
 0x191   :  { %v1245_v50 = vmax.f32 %v1181_v44, 0.0  ;;  %v1277_v51 = vmax.f32 %v1213_v45, 0.0 }
 0x193   :  { %v1889_v52 = vpack.c.bf16 %v1245_v50, %v1244_v48  ;;  %v1969_v53 = vpack.c.bf16 %v1277_v51, %v1276_v49 }
 0x195   :  { %1985 = vst [vmem:[%s2608_s3 + $0x78] sm:$0xff] %v1889_v52   ;;  %2001 = vst [vmem:[%s2608_s3 + $0xf8] sm:$0xff] %v1969_v53  }

// kernel: _lambda_.16
= control target key start
LH: loop header
LB: loop body
LE: loop exit
PB: predicated region body
PF: predicated region fallthrough
CT: control target
= control target key end

     0   :  { %s608_s0 = inlined_call_operand.vmem [shape: bf16[9,64,128], index: 0, kind: input, shape index: {}]   ;;  %s609_s1 = inlined_call_operand.vmem [shape: bf16[64,128], index: 1, kind: output, shape index: {}]  }
   0x1   :  { %v277_v0 = vld [vmem:[%s608_s0] sm:$0xff]   ;;  %v440_v16 = vld [vmem:[%s608_s0 + $0x8] sm:$0xff]   ;;  %v441_v55 = vld [vmem:[%s608_s0 + $0x10] sm:$0xff]  }
   0x2   :  { %v443_v1 = vld [vmem:[%s608_s0 + $0x20] sm:$0xff]   ;;  %v278_v3 = vunpack.c.l.bf16 %v277_v0  ;;  %v279_v4 = vunpack.c.h.bf16 %v277_v0  ;;  %v444_v17 = vld [vmem:[%s608_s0 + $0x28] sm:$0xff]   ;;  %v282_v27 = vunpack.c.l.bf16 %v440_v16  ;;  %v283_v28 = vunpack.c.h.bf16 %v440_v16  ;;  %v445_v60 = vld [vmem:[%s608_s0 + $0x30] sm:$0xff]  }
   0x3   :  { %v447_v2 = vld [vmem:[%s608_s0 + $0x40] sm:$0xff]   ;;  %v294_v5 = vunpack.c.l.bf16 %v443_v1  ;;  %v295_v6 = vunpack.c.h.bf16 %v443_v1  ;;  %v448_v25 = vld [vmem:[%s608_s0 + $0x48] sm:$0xff]   ;;  %v298_v29 = vunpack.c.l.bf16 %v444_v17  ;;  %v299_v30 = vunpack.c.h.bf16 %v444_v17 }
   0x4   :  { %v451_v7 = vld [vmem:[%s608_s0 + $0x60] sm:$0xff]   ;;  %v310_v8 = vunpack.c.l.bf16 %v447_v2  ;;  %v311_v9 = vunpack.c.h.bf16 %v447_v2  ;;  %v452_v35 = vld [vmem:[%s608_s0 + $0x68] sm:$0xff]   ;;  %v314_v38 = vunpack.c.l.bf16 %v448_v25  ;;  %v315_v39 = vunpack.c.h.bf16 %v448_v25  ;;  %v457_v25 = vld [vmem:[%s608_s0 + $0x90] sm:$0xff]  }
   0x5   :  { %v455_v10 = vld [vmem:[%s608_s0 + $0x80] sm:$0xff]   ;;  %v326_v12 = vunpack.c.l.bf16 %v451_v7  ;;  %v327_v13 = vunpack.c.h.bf16 %v451_v7  ;;  %v152_v14 = vmax.f32 %v278_v3, %v294_v5  ;;  %v160_v15 = vmax.f32 %v279_v4, %v295_v6  ;;  %v456_v40 = vld [vmem:[%s608_s0 + $0x88] sm:$0xff]   ;;  %v449_v6 = vld [vmem:[%s608_s0 + $0x50] sm:$0xff]  }
   0x6   :  { %v459_v11 = vld [vmem:[%s608_s0 + $0xa0] sm:$0xff]   ;;  %v342_v18 = vunpack.c.l.bf16 %v455_v10  ;;  %v343_v20 = vunpack.c.h.bf16 %v455_v10  ;;  %v460_v45 = vld [vmem:[%s608_s0 + $0xa8] sm:$0xff]   ;;  %v330_v46 = vunpack.c.l.bf16 %v452_v35  ;;  %v331_v47 = vunpack.c.h.bf16 %v452_v35  ;;  %v442_v35 = vld [vmem:[%s608_s0 + $0x18] sm:$0xff]  }
   0x7   :  { %v463_v19 = vld [vmem:[%s608_s0 + $0xc0] sm:$0xff]   ;;  %v358_v21 = vunpack.c.l.bf16 %v459_v11  ;;  %v153_v23 = vmax.f32 %v152_v14, %v310_v8  ;;  %v161_v24 = vmax.f32 %v160_v15, %v311_v9  ;;  %v359_v31 = vunpack.c.h.bf16 %v459_v11  ;;  %v464_v48 = vld [vmem:[%s608_s0 + $0xc8] sm:$0xff]   ;;  %v453_v11 = vld [vmem:[%s608_s0 + $0x70] sm:$0xff]  }
   0x8   :  { %v467_v22 = vld [vmem:[%s608_s0 + $0xe0] sm:$0xff]   ;;  %v374_v32 = vunpack.c.l.bf16 %v463_v19  ;;  %v375_v36 = vunpack.c.h.bf16 %v463_v19  ;;  %v168_v49 = vmax.f32 %v282_v27, %v298_v29  ;;  %v176_v50 = vmax.f32 %v283_v28, %v299_v30  ;;  %v468_v1 = vld [vmem:[%s608_s0 + $0xe8] sm:$0xff]   ;;  %v461_v28 = vld [vmem:[%s608_s0 + $0xb0] sm:$0xff]  }
   0x9   :  { %v471_v26 = vld [vmem:[%s608_s0 + $0x100] sm:$0xff]   ;;  %v154_v33 = vmax.f32 %v153_v23, %v326_v12  ;;  %v162_v34 = vmax.f32 %v161_v24, %v327_v13  ;;  %v390_v37 = vunpack.c.l.bf16 %v467_v22  ;;  %v391_v41 = vunpack.c.h.bf16 %v467_v22 }
   0xa   :  { %v406_v42 = vunpack.c.l.bf16 %v471_v26  ;;  %v407_v51 = vunpack.c.h.bf16 %v471_v26  ;;  %v346_v54 = vunpack.c.l.bf16 %v456_v40  ;;  %v347_v56 = vunpack.c.h.bf16 %v456_v40  ;;  %v446_v40 = vld [vmem:[%s608_s0 + $0x38] sm:$0xff]  }
   0xb   :  { %v155_v43 = vmax.f32 %v154_v33, %v342_v18  ;;  %v163_v44 = vmax.f32 %v162_v34, %v343_v20  ;;  %v362_v57 = vunpack.c.l.bf16 %v460_v45  ;;  %v169_v58 = vmax.f32 %v168_v49, %v314_v38  ;;  %v472_v18 = vld [vmem:[%s608_s0 + $0x108] sm:$0xff]  }
   0xc   :  { %v177_v59 = vmax.f32 %v176_v50, %v315_v39  ;;  %v363_v63 = vunpack.c.h.bf16 %v460_v45  ;;  %v378_v0 = vunpack.c.l.bf16 %v464_v48  ;;  %v286_v4 = vunpack.c.l.bf16 %v441_v55  ;;  %v465_v45 = vld [vmem:[%s608_s0 + $0xd0] sm:$0xff]   ;;  %v450_v50 = vld [vmem:[%s608_s0 + $0x58] sm:$0xff]  }
   0xd   :  { %v156_v52 = vmax.f32 %v155_v43, %v358_v21  ;;  %v164_v53 = vmax.f32 %v163_v44, %v359_v31  ;;  %v170_v2 = vmax.f32 %v169_v58, %v330_v46  ;;  %v287_v5 = vunpack.c.h.bf16 %v441_v55 }
   0xe   :  { %v178_v3 = vmax.f32 %v177_v59, %v331_v47  ;;  %v302_v9 = vunpack.c.l.bf16 %v445_v60  ;;  %v303_v10 = vunpack.c.h.bf16 %v445_v60  ;;  %v379_v12 = vunpack.c.h.bf16 %v464_v48  ;;  %v454_v60 = vld [vmem:[%s608_s0 + $0x78] sm:$0xff]  }
   0xf   :  { %v157_v61 = vmax.f32 %v156_v52, %v374_v32  ;;  %v165_v62 = vmax.f32 %v164_v53, %v375_v36  ;;  %v394_v13 = vunpack.c.l.bf16 %v468_v1  ;;  %v171_v14 = vmax.f32 %v170_v2, %v346_v54  ;;  %v469_v53 = vld [vmem:[%s608_s0 + $0xf0] sm:$0xff]  }
  0x10   :  { %v179_v15 = vmax.f32 %v178_v3, %v347_v56  ;;  %v318_v19 = vunpack.c.l.bf16 %v449_v6  ;;  %v319_v20 = vunpack.c.h.bf16 %v449_v6  ;;  %v395_v21 = vunpack.c.h.bf16 %v468_v1 }
  0x11   :  { %v158_v7 = vmax.f32 %v157_v61, %v390_v37  ;;  %v166_v8 = vmax.f32 %v165_v62, %v391_v41  ;;  %v172_v22 = vmax.f32 %v171_v14, %v362_v57  ;;  %v334_v24 = vunpack.c.l.bf16 %v453_v11  ;;  %v473_v62 = vld [vmem:[%s608_s0 + $0x110] sm:$0xff]   ;;  %v462_v14 = vld [vmem:[%s608_s0 + $0xb8] sm:$0xff]  }
  0x12   :  { %v180_v23 = vmax.f32 %v179_v15, %v363_v63  ;;  %v335_v27 = vunpack.c.h.bf16 %v453_v11  ;;  %v184_v29 = vmax.f32 %v286_v4, %v302_v9  ;;  %v192_v30 = vmax.f32 %v287_v5, %v303_v10  ;;  %v458_v5 = vld [vmem:[%s608_s0 + $0x98] sm:$0xff]  }
  0x13   :  { %v159_v16 = vmax.f32 %v158_v7, %v406_v42  ;;  %v167_v17 = vmax.f32 %v166_v8, %v407_v51  ;;  %v410_v31 = vunpack.c.l.bf16 %v472_v18  ;;  %v411_v32 = vunpack.c.h.bf16 %v472_v18 }
  0x14   :  { %v173_v33 = vmax.f32 %v172_v22, %v378_v0  ;;  %v181_v34 = vmax.f32 %v180_v23, %v379_v12  ;;  %v350_v36 = vunpack.c.l.bf16 %v457_v25  ;;  %v351_v37 = vunpack.c.h.bf16 %v457_v25 }
  0x15   :  { %v423_v26 = vpack.c.bf16 %v167_v17, %v159_v16  ;;  %v185_v38 = vmax.f32 %v184_v29, %v318_v19  ;;  %v193_v39 = vmax.f32 %v192_v30, %v319_v20  ;;  %v366_v43 = vunpack.c.l.bf16 %v461_v28 }
  0x16   :  { %v174_v41 = vmax.f32 %v173_v33, %v394_v13  ;;  %v182_v42 = vmax.f32 %v181_v34, %v395_v21  ;;  %v367_v44 = vunpack.c.h.bf16 %v461_v28  ;;  %v290_v48 = vunpack.c.l.bf16 %v442_v35  ;;  %v466_v21 = vld [vmem:[%s608_s0 + $0xd8] sm:$0xff]  }
  0x17   :  { %424 = vst [vmem:[%s609_s1] sm:$0xff] %v423_v26   ;;  %v186_v46 = vmax.f32 %v185_v38, %v334_v24  ;;  %v194_v47 = vmax.f32 %v193_v39, %v335_v27  ;;  %v291_v49 = vunpack.c.h.bf16 %v442_v35  ;;  %v306_v54 = vunpack.c.l.bf16 %v446_v40  ;;  %v470_v28 = vld [vmem:[%s608_s0 + $0xf8] sm:$0xff]  }
  0x18   :  { %v175_v51 = vmax.f32 %v174_v41, %v410_v31  ;;  %v183_v52 = vmax.f32 %v182_v42, %v411_v32  ;;  %v307_v55 = vunpack.c.h.bf16 %v446_v40  ;;  %v382_v56 = vunpack.c.l.bf16 %v465_v45  ;;  %v474_v34 = vld [vmem:[%s608_s0 + $0x118] sm:$0xff]  }
  0x19   :  { %v383_v57 = vunpack.c.h.bf16 %v465_v45  ;;  %v187_v58 = vmax.f32 %v186_v46, %v350_v36  ;;  %v195_v59 = vmax.f32 %v194_v47, %v351_v37  ;;  %v322_v63 = vunpack.c.l.bf16 %v450_v50 }
  0x1a   :  { %v428_v61 = vpack.c.bf16 %v183_v52, %v175_v51  ;;  %v323_v0 = vunpack.c.h.bf16 %v450_v50  ;;  %v398_v1 = vunpack.c.l.bf16 %v469_v53  ;;  %v399_v2 = vunpack.c.h.bf16 %v469_v53 }
  0x1b   :  { %v188_v3 = vmax.f32 %v187_v58, %v366_v43  ;;  %v196_v4 = vmax.f32 %v195_v59, %v367_v44  ;;  %v338_v6 = vunpack.c.l.bf16 %v454_v60  ;;  %v339_v7 = vunpack.c.h.bf16 %v454_v60 }
  0x1c   :  { %475 = vst [vmem:[%s609_s1 + $0x8] sm:$0xff] %v428_v61   ;;  %v200_v8 = vmax.f32 %v290_v48, %v306_v54  ;;  %v208_v9 = vmax.f32 %v291_v49, %v307_v55  ;;  %v414_v10 = vunpack.c.l.bf16 %v473_v62  ;;  %v415_v11 = vunpack.c.h.bf16 %v473_v62 }
  0x1d   :  { %v189_v12 = vmax.f32 %v188_v3, %v382_v56  ;;  %v197_v13 = vmax.f32 %v196_v4, %v383_v57  ;;  %v354_v15 = vunpack.c.l.bf16 %v458_v5  ;;  %v355_v16 = vunpack.c.h.bf16 %v458_v5 }
  0x1e   :  { %v201_v17 = vmax.f32 %v200_v8, %v322_v63  ;;  %v209_v18 = vmax.f32 %v208_v9, %v323_v0  ;;  %v370_v22 = vunpack.c.l.bf16 %v462_v14  ;;  %v371_v23 = vunpack.c.h.bf16 %v462_v14 }
  0x1f   :  { %v190_v19 = vmax.f32 %v189_v12, %v398_v1  ;;  %v198_v20 = vmax.f32 %v197_v13, %v399_v2  ;;  %v386_v29 = vunpack.c.l.bf16 %v466_v21  ;;  %v387_v30 = vunpack.c.h.bf16 %v466_v21 }
  0x20   :  { %v202_v24 = vmax.f32 %v201_v17, %v338_v6  ;;  %v210_v25 = vmax.f32 %v209_v18, %v339_v7  ;;  %v402_v35 = vunpack.c.l.bf16 %v470_v28  ;;  %v403_v36 = vunpack.c.h.bf16 %v470_v28 }
  0x21   :  { %v191_v26 = vmax.f32 %v190_v19, %v414_v10  ;;  %v199_v27 = vmax.f32 %v198_v20, %v415_v11  ;;  %v418_v39 = vunpack.c.l.bf16 %v474_v34  ;;  %v419_v40 = vunpack.c.h.bf16 %v474_v34 }
  0x22   :  { %v203_v31 = vmax.f32 %v202_v24, %v354_v15  ;;  %v211_v32 = vmax.f32 %v210_v25, %v355_v16 }
  0x23   :  { %v433_v33 = vpack.c.bf16 %v199_v27, %v191_v26 }
  0x24   :  { %v204_v37 = vmax.f32 %v203_v31, %v370_v22  ;;  %v212_v38 = vmax.f32 %v211_v32, %v371_v23 }
  0x25   :  { %476 = vst [vmem:[%s609_s1 + $0x10] sm:$0xff] %v433_v33  }
  0x26   :  { %v205_v41 = vmax.f32 %v204_v37, %v386_v29  ;;  %v213_v42 = vmax.f32 %v212_v38, %v387_v30 }
  0x28   :  { %v206_v43 = vmax.f32 %v205_v41, %v402_v35  ;;  %v214_v44 = vmax.f32 %v213_v42, %v403_v36 }
  0x2a   :  { %v207_v45 = vmax.f32 %v206_v43, %v418_v39  ;;  %v215_v46 = vmax.f32 %v214_v44, %v419_v40 }
  0x2c   :  { %v438_v47 = vpack.c.bf16 %v215_v46, %v207_v45 }
  0x2e   :  { %477 = vst [vmem:[%s609_s1 + $0x18] sm:$0xff] %v438_v47  }

// kernel: _lambda_.17
= control target key start
LH: loop header
LB: loop body
LE: loop exit
PB: predicated region body
PF: predicated region fallthrough
CT: control target
= control target key end

     0   :  { %s1190_s12 = smov 0   ;;  %s1192_s13 = smov 0   ;;  %s1322_s0 = inlined_call_operand.vmem [shape: bf16[128,640], index: 0, kind: input, shape index: {}]   ;;  %s1323_s1 = inlined_call_operand.vmem [shape: bf16[640,128], index: 1, kind: input, shape index: {}]   ;;  %s1324_s2 = inlined_call_operand.vmem [shape: f32[1,128], index: 2, kind: input, shape index: {}]   ;;  %s1325_s3 = inlined_call_operand.vmem [shape: bf16[128,128], index: 3, kind: output, shape index: {}]  }
   0x1   :  { %s1194_s14 = smov 0   ;;  %s1196_s15 = smov 0  }
   0x2   :  { %s1198_s16 = smov 0  }
   0x3 LB: > { %s25_s17 = sadd.s32 1, %s1163_s15  ;;  %p48_p1 = scmp.ne.s32.totalorder %s1155_s13, %s1151_s12  ;;  %s1167_s16 = sphi %s1198_s16, %s13_s16   ;;  %s1163_s15 = sphi %s1196_s15, %s1329_s15   ;;  %s1159_s14 = sphi %s1194_s14, %s1328_s14   ;;  %s1155_s13 = sphi %s1192_s13, %s1327_s13   ;;  %s1151_s12 = sphi %s1190_s12, %s1326_s12  }
   0x4   : > { %p26_p0 = scmp.ge.s32.totalorder %s25_s17, 5  ;;  %p49_p2 = scmp.eq.s32.totalorder %s1167_s16, 0 }
   0x5   : > { %s41_s19 = sadd.s32 1, %s1155_s13  ;;  %p899_p5 = scmp.ge.s32.totalorder %s1167_s16, 5 }
   0x6   : > { %s1331_s17 = smov (%p26_p0, %s25_s17), 0  ;;  %p50_p3 = por %p49_p2, %p48_p1 }
   0x7   : > { %s37_s18 = ssub.s32 %s1163_s15, %s1331_s17  ;;  %162 = sbr.rel (%p899_p5) target bundleno = 28 (0x1c), region = 20 }
   0x8   : > { %p39_p4 = scmp.eq.s32.totalorder %s37_s18, 0 }
   0xa   : > { %s1225_s20 = scalar_select %p39_p4, %s1155_s13, %s41_s19  }
   0xe   : > { %165 = sbr.rel (!%p50_p3) target bundleno = 28 (0x1c), region = 24  ;;  %s167_s21 = sand.u32 (%p50_p3), 1, %s1155_s13  }
   0xf   : > { %s901_s22 = sshll.u32 (%p50_p3), %s1163_s15, 2  ;;  %s900_s23 = sshll.u32 (%p50_p3), %s167_s21, 6 }
  0x10   : > { %s1233_s26 = scalar_lea.vmem (%p50_p3), %s1322_s0, %s901_s22  ;;  %s169_s27 = scalar_lea.vmem (%p50_p3), [#allocation3], %s900_s23 }
  0x11   : > { %v190_v0 = vld [vmem:[%s1233_s26] sm:$0xf] (%p50_p3)  ;;  %v192_v1 = vld [vmem:[%s1233_s26 + $0x14] sm:$0xf] (%p50_p3)  ;;  %v194_v2 = vld [vmem:[%s1233_s26 + $0x28] sm:$0xf] (%p50_p3) }
  0x12   : > { %191 = vst [vmem:[%s169_s27] sm:$0xf] (%p50_p3), %v190_v0  ;;  %193 = vst [vmem:[%s169_s27 + $0x4] sm:$0xf] (%p50_p3), %v192_v1  ;;  %v196_v3 = vld [vmem:[%s1233_s26 + $0x3c] sm:$0xf] (%p50_p3) }
  0x13   : > { %v198_v4 = vld [vmem:[%s1233_s26 + $0x50] sm:$0xf] (%p50_p3)  ;;  %195 = vst [vmem:[%s169_s27 + $0x8] sm:$0xf] (%p50_p3), %v194_v2  ;;  %197 = vst [vmem:[%s169_s27 + $0xc] sm:$0xf] (%p50_p3), %v196_v3 }
  0x14   : > { %199 = vst [vmem:[%s169_s27 + $0x10] sm:$0xf] (%p50_p3), %v198_v4  ;;  %v200_v5 = vld [vmem:[%s1233_s26 + $0x64] sm:$0xf] (%p50_p3)  ;;  %v202_v6 = vld [vmem:[%s1233_s26 + $0x78] sm:$0xf] (%p50_p3) }
  0x15   : > { %v204_v7 = vld [vmem:[%s1233_s26 + $0x8c] sm:$0xf]  ;;  %201 = vst [vmem:[%s169_s27 + $0x14] sm:$0xf] %v200_v5  ;;  %203 = vst [vmem:[%s169_s27 + $0x18] sm:$0xf] %v202_v6 }
  0x16   : > { %205 = vst [vmem:[%s169_s27 + $0x1c] sm:$0xf] %v204_v7  ;;  %v206_v8 = vld [vmem:[%s1233_s26 + $0xa0] sm:$0xf]  ;;  %v208_v9 = vld [vmem:[%s1233_s26 + $0xb4] sm:$0xf] }
  0x17   : > { %v210_v10 = vld [vmem:[%s1233_s26 + $0xc8] sm:$0xf]  ;;  %207 = vst [vmem:[%s169_s27 + $0x20] sm:$0xf] %v206_v8  ;;  %209 = vst [vmem:[%s169_s27 + $0x24] sm:$0xf] %v208_v9 }
  0x18   : > { %211 = vst [vmem:[%s169_s27 + $0x28] sm:$0xf] %v210_v10  ;;  %v212_v11 = vld [vmem:[%s1233_s26 + $0xdc] sm:$0xf]  ;;  %v214_v12 = vld [vmem:[%s1233_s26 + $0xf0] sm:$0xf] }
  0x19   : > { %v216_v13 = vld [vmem:[%s1233_s26 + $0x104] sm:$0xf]  ;;  %213 = vst [vmem:[%s169_s27 + $0x2c] sm:$0xf] %v212_v11  ;;  %215 = vst [vmem:[%s169_s27 + $0x30] sm:$0xf] %v214_v12 }
  0x1a   : > { %217 = vst [vmem:[%s169_s27 + $0x34] sm:$0xf] %v216_v13  ;;  %v218_v14 = vld [vmem:[%s1233_s26 + $0x118] sm:$0xf]  ;;  %v220_v15 = vld [vmem:[%s1233_s26 + $0x12c] sm:$0xf] }
  0x1b   : > { %219 = vst [vmem:[%s169_s27 + $0x38] sm:$0xf] %v218_v14  ;;  %221 = vst [vmem:[%s169_s27 + $0x3c] sm:$0xf] %v220_v15 }
  0x1c PF: > { %p902_p6 = scmp.ge.s32.totalorder %s1167_s16, 1  ;;  %p287_p7 = scmp.lt.s32.totalorder %s1167_s16, 6 }
  0x1e   : > { %p288_p8 = pnand %p902_p6, %p287_p7 }
  0x1f   : > { %s294_s28 = sand.u32 (!%p288_p8), 1, %s1151_s12   ;;  %s904_s29 = sshll.u32 (!%p288_p8), %s1159_s14, 4 }
  0x20   : > { %291 = sbr.rel (%p288_p8) target bundleno = 323 (0x143), region = 69  ;;  %s903_s30 = sshll.u32 (!%p288_p8), %s294_s28, 6 }
  0x21   : > { %p333_p9 = scmp.lt.s32.totalorder (!%p288_p8), %s904_s29, 79  ;;  %s1260_s8 = scalar_lea.vmem (!%p288_p8), [#allocation3], %s903_s30 }
  0x22   : > { %p906_p10 = scmp.ne.s32.totalorder (!%p288_p8), %s1159_s14, 0 }
  0x27   : > { %s1333_s29 = smov (!%p333_p9, %s904_s29), 79  ;;  %357 = sbr.rel (%p906_p10) target bundleno = 49 (0x31), region = 77 }
  0x28   : > { %s905_s4 = sshll.u32 %s1333_s29, 2  ;;  %v1169_v16 = vmov (!%p906_p10), 0.0  }
  0x29   : > { %s1258_s7 = scalar_lea.vmem %s1323_s1, %s905_s4  ;;  %358 = vst [vmem:[#allocation2] sm:$0xff] (!%p906_p10), %v1169_v16  ;;  %359 = vst [vmem:[#allocation2 + $0x8] sm:$0xff] (!%p906_p10), %v1169_v16 }
  0x2a   : > { %360 = vst [vmem:[#allocation2 + $0x10] sm:$0xff] (!%p906_p10), %v1169_v16  ;;  %361 = vst [vmem:[#allocation2 + $0x18] sm:$0xff] (!%p906_p10), %v1169_v16 }
  0x2b   : > { %362 = vst [vmem:[#allocation2 + $0x20] sm:$0xff] (!%p906_p10), %v1169_v16  ;;  %363 = vst [vmem:[#allocation2 + $0x28] sm:$0xff] (!%p906_p10), %v1169_v16 }
  0x2c   : > { %364 = vst [vmem:[#allocation2 + $0x30] sm:$0xff] (!%p906_p10), %v1169_v16  ;;  %365 = vst [vmem:[#allocation2 + $0x38] sm:$0xff] (!%p906_p10), %v1169_v16 }
  0x2d   : > { %366 = vst [vmem:[#allocation2 + $0x40] sm:$0xff] (!%p906_p10), %v1169_v16  ;;  %367 = vst [vmem:[#allocation2 + $0x48] sm:$0xff] (!%p906_p10), %v1169_v16 }
  0x2e   : > { %368 = vst [vmem:[#allocation2 + $0x50] sm:$0xff] %v1169_v16  ;;  %369 = vst [vmem:[#allocation2 + $0x58] sm:$0xff] %v1169_v16 }
  0x2f   : > { %370 = vst [vmem:[#allocation2 + $0x60] sm:$0xff] %v1169_v16  ;;  %371 = vst [vmem:[#allocation2 + $0x68] sm:$0xff] %v1169_v16 }
  0x30   : > { %372 = vst [vmem:[#allocation2 + $0x70] sm:$0xff] %v1169_v16  ;;  %373 = vst [vmem:[#allocation2 + $0x78] sm:$0xff] %v1169_v16 }
  0x31 PF: > { %v1113_v17 = vld [vmem:[%s1258_s7] sm:$0xff]   ;;  %v1114_v18 = vld [vmem:[%s1258_s7 + $0x8] sm:$0xff]   ;;  %v1115_v19 = vld [vmem:[%s1258_s7 + $0x10] sm:$0xff]   ;;  %p923_p11 = scmp.ne.s32.totalorder %s1159_s14, 4 }
  0x32   : > { %1024 = vmatprep.subr.bf16.mxu0 %v1113_v17  ;;  %1056 = vmatprep.subr.bf16.mxu1 %v1113_v17  ;;  %v1116_v20 = vld [vmem:[%s1258_s7 + $0x18] sm:$0xff]   ;;  %v1121_v21 = vld [vmem:[%s1260_s8] sm:$0xff]   ;;  %v1118_v24 = vld [vmem:[%s1258_s7 + $0x28] sm:$0xff]  }
  0x33   : > { %1025 = vmatpush3.bf16.msra.mxu0 %v1113_v17  ;;  %1064 = vmatpush3.bf16.msra.mxu1 %v1113_v17  ;;  %v1122_v22 = vld [vmem:[%s1260_s8 + $0x20] sm:$0xff]   ;;  %v1119_v25 = vld [vmem:[%s1258_s7 + $0x30] sm:$0xff]   ;;  %v1120_v26 = vld [vmem:[%s1258_s7 + $0x38] sm:$0xff]  }
  0x34   : > { %1026 = vmatprep.subr.bf16.mxu0 %v1114_v18  ;;  %1057 = vmatprep.subr.bf16.mxu1 %v1114_v18  ;;  %v1117_v23 = vld [vmem:[%s1258_s7 + $0x20] sm:$0xff]   ;;  %v1123_v27 = vld [vmem:[%s1260_s8 + $0x8] sm:$0xff]   ;;  %v1125_v29 = vld [vmem:[%s1260_s8 + $0x10] sm:$0xff]  }
  0x35   : > { %1040 = vmatprep.mubr.bf16.mxu0 %v1121_v21  ;;  %1048 = vmatprep.mubr.bf16.mxu1 %v1122_v22  ;;  %v1124_v28 = vld [vmem:[%s1260_s8 + $0x28] sm:$0xff]   ;;  %v1126_v30 = vld [vmem:[%s1260_s8 + $0x30] sm:$0xff]   ;;  %v1127_v31 = vld [vmem:[%s1260_s8 + $0x18] sm:$0xff]  }
  0x36   : > { %v1128_v32 = vld [vmem:[%s1260_s8 + $0x38] sm:$0xff]   ;;  %v376_v33 = vld [vmem:[#allocation2 + $0x10] sm:$0xff]  ;;  %v374_v35 = vld [vmem:[#allocation2] sm:$0xff] }
  0x37   : > { %1027 = vmatpush3.bf16.msra.mxu0 %v1114_v18  ;;  %1065 = vmatpush3.bf16.msra.mxu1 %v1114_v18  ;;  %v384_v34 = vld [vmem:[#allocation2 + $0x50] sm:$0xff]  ;;  %v382_v36 = vld [vmem:[#allocation2 + $0x40] sm:$0xff]  ;;  %v377_v39 = vld [vmem:[#allocation2 + $0x18] sm:$0xff] }
  0x38   : > { %1028 = vmatprep.subr.bf16.mxu0 %v1115_v19  ;;  %1058 = vmatprep.subr.bf16.mxu1 %v1115_v19  ;;  %v385_v40 = vld [vmem:[#allocation2 + $0x58] sm:$0xff]  ;;  %v375_v45 = vld [vmem:[#allocation2 + $0x8] sm:$0xff]  ;;  %v380_v57 = vld [vmem:[#allocation2 + $0x30] sm:$0xff] }
  0x39   : > { %v383_v46 = vld [vmem:[#allocation2 + $0x48] sm:$0xff]  ;;  %v388_v58 = vld [vmem:[#allocation2 + $0x70] sm:$0xff]  ;;  %v378_v59 = vld [vmem:[#allocation2 + $0x20] sm:$0xff] }
  0x3a   : > { %v386_v60 = vld [vmem:[#allocation2 + $0x60] sm:$0xff]  ;;  %v381_v63 = vld [vmem:[#allocation2 + $0x38] sm:$0xff]  ;;  %v379_v5 = vld [vmem:[#allocation2 + $0x28] sm:$0xff] }
  0x3b   : > { %1029 = vmatpush3.bf16.msra.mxu0 %v1115_v19  ;;  %1066 = vmatpush3.bf16.msra.mxu1 %v1115_v19  ;;  %v389_v0 = vld [vmem:[#allocation2 + $0x78] sm:$0xff]  ;;  %v387_v6 = vld [vmem:[#allocation2 + $0x68] sm:$0xff]  ;;  %v924_v19 = vld [vmem:[%s1324_s2] ss:$0 sm:$0xff] (!%p923_p11) }
  0x3c   : > { %1030 = vmatprep.subr.bf16.mxu0 %v1116_v20  ;;  %1059 = vmatprep.subr.bf16.mxu1 %v1116_v20 }
  0x3f   : > { %1031 = vmatpush3.bf16.msra.mxu0 %v1116_v20  ;;  %1067 = vmatpush3.bf16.msra.mxu1 %v1116_v20 }
  0x40   : > { %1032 = vmatprep.subr.bf16.mxu0 %v1117_v23  ;;  %1060 = vmatprep.subr.bf16.mxu1 %v1117_v23 }
  0x43   : > { %1033 = vmatpush3.bf16.msra.mxu0 %v1117_v23  ;;  %1068 = vmatpush3.bf16.msra.mxu1 %v1117_v23 }
  0x44   : > { %1034 = vmatprep.subr.bf16.mxu0 %v1118_v24  ;;  %1061 = vmatprep.subr.bf16.mxu1 %v1118_v24 }
  0x47   : > { %1035 = vmatpush3.bf16.msra.mxu0 %v1118_v24  ;;  %1069 = vmatpush3.bf16.msra.mxu1 %v1118_v24 }
  0x48   : > { %1036 = vmatprep.subr.bf16.mxu0 %v1119_v25  ;;  %1062 = vmatprep.subr.bf16.mxu1 %v1119_v25 }
  0x4b   : > { %1037 = vmatpush3.bf16.msra.mxu0 %v1119_v25  ;;  %1070 = vmatpush3.bf16.msra.mxu1 %v1119_v25 }
  0x4c   : > { %1038 = vmatprep.subr.bf16.mxu0 %v1120_v26  ;;  %1063 = vmatprep.subr.bf16.mxu1 %v1120_v26 }
  0x4f   : > { %1039 = vmatpush3.bf16.msra.mxu0 %v1120_v26  ;;  %1071 = vmatpush3.bf16.msra.mxu1 %v1120_v26 }
  0x52   : > { %1041 = vmatmul.mubr.bf16.vlgmr.msra.gmra.mrb[0].mxu0 %v1123_v27  ;;  %1049 = vmatmul.mubr.bf16.vlgmr.msra.gmra.mrb[0].mxu1 %v1124_v28 }
  0x53   : > { %1044 = vmatprep.mubr.bf16.mxu0 %v1125_v29  ;;  %1052 = vmatprep.mubr.bf16.mxu1 %v1126_v30 }
  0x5a   : > { %1045 = vmatmul.mubr.bf16.gmra.mrb[4].mxu0 %v1127_v31  ;;  %1053 = vmatmul.mubr.bf16.gmra.mrb[4].mxu1 %v1128_v32 }
 0x125   : > { %v1042_v37 = vpop.f32.mrb[0].mxu0  ;;  %v1050_v38 = vpop.f32.mrb[0].mxu1 }
 0x126   : > { %v617_v41 = vadd.f32 %v1042_v37, %v376_v33  ;;  %v625_v42 = vadd.f32 %v1050_v38, %v384_v34  ;;  %v552_v43 = vpop.f32.mrb[1].mxu0  ;;  %v584_v44 = vpop.f32.mrb[1].mxu1 }
 0x127   : > { %v615_v47 = vadd.f32 %v552_v43, %v374_v35  ;;  %v623_v48 = vadd.f32 %v584_v44, %v382_v36  ;;  %v1043_v49 = vpop.f32.mrb[2].mxu0  ;;  %v1051_v50 = vpop.f32.mrb[2].mxu1 }
 0x128   : > { %633 = vst [vmem:[#allocation2 + $0x10] sm:$0xff] %v617_v41  ;;  %641 = vst [vmem:[#allocation2 + $0x50] sm:$0xff] %v625_v42  ;;  %v618_v51 = vadd.f32 %v1043_v49, %v377_v39  ;;  %v626_v52 = vadd.f32 %v1051_v50, %v385_v40  ;;  %v555_v53 = vpop.f32.mrb[3].mxu0  ;;  %v587_v54 = vpop.f32.mrb[3].mxu1 }
 0x129   : > { %631 = vst [vmem:[#allocation2] sm:$0xff] %v615_v47  ;;  %639 = vst [vmem:[#allocation2 + $0x40] sm:$0xff] %v623_v48  ;;  %v616_v55 = vadd.f32 %v555_v53, %v375_v45  ;;  %v624_v56 = vadd.f32 %v587_v54, %v383_v46 }
 0x12a   : > { %634 = vst [vmem:[#allocation2 + $0x18] sm:$0xff] %v618_v51  ;;  %642 = vst [vmem:[#allocation2 + $0x58] sm:$0xff] %v626_v52 }
 0x12b   : > { %632 = vst [vmem:[#allocation2 + $0x8] sm:$0xff] %v616_v55  ;;  %640 = vst [vmem:[#allocation2 + $0x48] sm:$0xff] %v624_v56 }
 0x12d   : > { %v1046_v61 = vpop.f32.mrb[4].mxu0  ;;  %v1054_v62 = vpop.f32.mrb[4].mxu1  ;;  %650 = sbr.rel (%p923_p11) target bundleno = 323 (0x143), region = 81 }
 0x12e   : > { %v621_v1 = vadd.f32 %v1046_v61, %v380_v57  ;;  %v629_v2 = vadd.f32 %v1054_v62, %v388_v58  ;;  %v568_v3 = vpop.f32.mrb[5].mxu0  ;;  %v600_v4 = vpop.f32.mrb[5].mxu1 }
 0x12f   : > { %v619_v7 = vadd.f32 %v568_v3, %v378_v59  ;;  %v627_v8 = vadd.f32 %v600_v4, %v386_v60  ;;  %v1047_v9 = vpop.f32.mrb[6].mxu0  ;;  %v1055_v10 = vpop.f32.mrb[6].mxu1  ;;  %v653_v22 = vld [vmem:[#allocation2 + $0x10] sm:$0xff] (!%p923_p11) }
 0x130   : > { %637 = vst [vmem:[#allocation2 + $0x30] sm:$0xff] %v621_v1  ;;  %645 = vst [vmem:[#allocation2 + $0x70] sm:$0xff] %v629_v2  ;;  %v622_v11 = vadd.f32 %v1047_v9, %v381_v63  ;;  %v630_v12 = vadd.f32 %v1055_v10, %v389_v0  ;;  %v571_v13 = vpop.f32.mrb[7].mxu0  ;;  %v603_v14 = vpop.f32.mrb[7].mxu1  ;;  %v651_v17 = vld [vmem:[#allocation2] sm:$0xff] (!%p923_p11)  ;;  %v676_v25 = vadd.f32 (!%p923_p11), %v924_v19, %v653_v22  ;;  %v661_v37 = vld [vmem:[#allocation2 + $0x50] sm:$0xff] (!%p923_p11) }
 0x131   : > { %635 = vst [vmem:[#allocation2 + $0x20] sm:$0xff] %v619_v7  ;;  %643 = vst [vmem:[#allocation2 + $0x60] sm:$0xff] %v627_v8  ;;  %v620_v15 = vadd.f32 %v571_v13, %v379_v5  ;;  %v628_v16 = vadd.f32 %v603_v14, %v387_v6  ;;  %v674_v20 = vadd.f32 (!%p923_p11), %v924_v19, %v651_v17  ;;  %v654_v23 = vld [vmem:[#allocation2 + $0x18] sm:$0xff] (!%p923_p11)  ;;  %v659_v35 = vld [vmem:[#allocation2 + $0x40] sm:$0xff] (!%p923_p11) }
 0x132   : > { %638 = vst [vmem:[#allocation2 + $0x38] sm:$0xff] %v622_v11  ;;  %646 = vst [vmem:[#allocation2 + $0x78] sm:$0xff] %v630_v12  ;;  %v652_v18 = vld [vmem:[#allocation2 + $0x8] sm:$0xff] (!%p923_p11)  ;;  %v677_v26 = vadd.f32 (!%p923_p11), %v924_v19, %v654_v23  ;;  %v692_v38 = vmax.f32 (!%p923_p11), %v676_v25, 0.0  ;;  %v662_v42 = vld [vmem:[#allocation2 + $0x58] sm:$0xff] (!%p923_p11)  ;;  %v682_v47 = vadd.f32 (!%p923_p11), %v924_v19, %v659_v35  ;;  %v684_v52 = vadd.f32 (!%p923_p11), %v924_v19, %v661_v37 }
 0x133   : > { %636 = vst [vmem:[#allocation2 + $0x28] sm:$0xff] %v620_v15  ;;  %644 = vst [vmem:[#allocation2 + $0x68] sm:$0xff] %v628_v16  ;;  %v675_v21 = vadd.f32 (!%p923_p11), %v924_v19, %v652_v18  ;;  %v690_v31 = vmax.f32 (!%p923_p11), %v674_v20, 0.0  ;;  %v660_v36 = vld [vmem:[#allocation2 + $0x48] sm:$0xff] (!%p923_p11)  ;;  %v685_v57 = vadd.f32 (!%p923_p11), %v924_v19, %v662_v42 }
 0x134   : > { %v693_v39 = vmax.f32 %v677_v26, 0.0  ;;  %v683_v51 = vadd.f32 %v924_v19, %v660_v36  ;;  %v698_v56 = vmax.f32 %v682_v47, 0.0  ;;  %v700_v61 = vmax.f32 %v684_v52, 0.0 }
 0x135   : > { %v691_v32 = vmax.f32 %v675_v21, 0.0  ;;  %v701_v63 = vmax.f32 %v685_v57, 0.0 }
 0x136   : > { %v969_v49 = vpack.c.bf16 %v693_v39, %v692_v38  ;;  %v699_v60 = vmax.f32 %v683_v51, 0.0 }
 0x137   : > { %v657_v29 = vld [vmem:[#allocation2 + $0x30] sm:$0xff]  ;;  %v964_v44 = vpack.c.bf16 %v691_v32, %v690_v31  ;;  %v989_v5 = vpack.c.bf16 %v701_v63, %v700_v61 }
 0x138   : > { %v655_v24 = vld [vmem:[#allocation2 + $0x20] sm:$0xff]  ;;  %v680_v34 = vadd.f32 %v924_v19, %v657_v29  ;;  %v665_v53 = vld [vmem:[#allocation2 + $0x70] sm:$0xff]  ;;  %1001 = vst [vmem:[%s1325_s3 + $0x8] sm:$0xff] %v969_v49   ;;  %v984_v3 = vpack.c.bf16 %v699_v60, %v698_v56 }
 0x139   : > { %v678_v28 = vadd.f32 %v924_v19, %v655_v24  ;;  %v658_v30 = vld [vmem:[#allocation2 + $0x38] sm:$0xff]  ;;  %v663_v43 = vld [vmem:[#allocation2 + $0x60] sm:$0xff]  ;;  %965 = vst [vmem:[%s1325_s3] sm:$0xff] %v964_v44   ;;  %v688_v1 = vadd.f32 %v924_v19, %v665_v53  ;;  %1005 = vst [vmem:[%s1325_s3 + $0x28] sm:$0xff] %v989_v5  }
 0x13a   : > { %v656_v27 = vld [vmem:[#allocation2 + $0x28] sm:$0xff]  ;;  %v681_v41 = vadd.f32 %v924_v19, %v658_v30  ;;  %v696_v46 = vmax.f32 %v680_v34, 0.0  ;;  %v666_v54 = vld [vmem:[#allocation2 + $0x78] sm:$0xff]  ;;  %v686_v58 = vadd.f32 %v924_v19, %v663_v43  ;;  %1004 = vst [vmem:[%s1325_s3 + $0x20] sm:$0xff] %v984_v3  }
 0x13b   : > { %v679_v33 = vadd.f32 %v924_v19, %v656_v27  ;;  %v694_v40 = vmax.f32 %v678_v28, 0.0  ;;  %v664_v48 = vld [vmem:[#allocation2 + $0x68] sm:$0xff]  ;;  %v689_v2 = vadd.f32 %v924_v19, %v666_v54  ;;  %v704_v6 = vmax.f32 %v688_v1, 0.0 }
 0x13c   : > { %v697_v50 = vmax.f32 %v681_v41, 0.0  ;;  %v687_v62 = vadd.f32 %v924_v19, %v664_v48  ;;  %v702_v0 = vmax.f32 %v686_v58, 0.0 }
 0x13d   : > { %v695_v45 = vmax.f32 %v679_v33, 0.0  ;;  %v705_v7 = vmax.f32 %v689_v2, 0.0 }
 0x13e   : > { %v979_v59 = vpack.c.bf16 %v697_v50, %v696_v46  ;;  %v703_v4 = vmax.f32 %v687_v62, 0.0 }
 0x13f   : > { %v974_v55 = vpack.c.bf16 %v695_v45, %v694_v40  ;;  %v999_v9 = vpack.c.bf16 %v705_v7, %v704_v6 }
 0x140   : > { %1003 = vst [vmem:[%s1325_s3 + $0x18] sm:$0xff] %v979_v59   ;;  %v994_v8 = vpack.c.bf16 %v703_v4, %v702_v0 }
 0x141   : > { %1002 = vst [vmem:[%s1325_s3 + $0x10] sm:$0xff] %v974_v55   ;;  %1007 = vst [vmem:[%s1325_s3 + $0x38] sm:$0xff] %v999_v9  }
 0x142   : > { %1006 = vst [vmem:[%s1325_s3 + $0x30] sm:$0xff] %v994_v8  }
 0x143 PF: > { %s13_s16 = sadd.s32 1, %s1167_s16   ;;  %s1326_s12 = smov %s1155_s13 }
 0x144   : > { %p10_p12 = scmp.ge.s32.totalorder %s13_s16, 7   ;;  %s1327_s13 = smov %s1225_s20 }
 0x145   : > { %s1328_s14 = smov %s1163_s15  ;;  %s1329_s15 = smov %s1331_s17 }
 0x146   :  { %12 = sbr.rel (!%p10_p12) target bundleno = 3 (0x3), region = 122 }

// kernel: _lambda_.18
= control target key start
LH: loop header
LB: loop body
LE: loop exit
PB: predicated region body
PF: predicated region fallthrough
CT: control target
= control target key end

     0   :  { %s1361_s15 = smov 0   ;;  %s1363_s16 = smov 0   ;;  %s1535_s0 = inlined_call_operand.vmem [shape: bf16[128,640], index: 0, kind: input, shape index: {}]   ;;  %s1536_s1 = inlined_call_operand.vmem [shape: bf16[640,128], index: 1, kind: input, shape index: {}]   ;;  %s1537_s2 = inlined_call_operand.vmem [shape: f32[1,128], index: 2, kind: input, shape index: {}]   ;;  %s1538_s3 = inlined_call_operand.vmem [shape: bf16[128,128], index: 3, kind: input, shape index: {}, may-alias: {3,4}]   ;;  %s1539_s4 = inlined_call_operand.vmem [shape: bf16[128,128], index: 4, kind: output, shape index: {}, may-alias: {3,4}]  }
   0x1   :  { %s1365_s17 = smov 0   ;;  %s1367_s18 = smov 0  }
   0x2   :  { %s1369_s19 = smov 0  }
   0x3 LB: > { %s26_s20 = sadd.s32 1, %s1329_s18  ;;  %p49_p1 = scmp.ne.s32.totalorder %s1321_s16, %s1317_s15  ;;  %s1333_s19 = sphi %s1369_s19, %s14_s19   ;;  %s1329_s18 = sphi %s1367_s18, %s1543_s18   ;;  %s1325_s17 = sphi %s1365_s17, %s1542_s17   ;;  %s1321_s16 = sphi %s1363_s16, %s1541_s16   ;;  %s1317_s15 = sphi %s1361_s15, %s1540_s15  }
   0x4   : > { %p27_p0 = scmp.ge.s32.totalorder %s26_s20, 5  ;;  %p50_p2 = scmp.eq.s32.totalorder %s1333_s19, 0 }
   0x5   : > { %s42_s22 = sadd.s32 1, %s1321_s16  ;;  %p1026_p5 = scmp.ge.s32.totalorder %s1333_s19, 5 }
   0x6   : > { %s1545_s20 = smov (%p27_p0, %s26_s20), 0  ;;  %p51_p3 = por %p50_p2, %p49_p1 }
   0x7   : > { %s38_s21 = ssub.s32 %s1329_s18, %s1545_s20  ;;  %203 = sbr.rel (%p1026_p5) target bundleno = 28 (0x1c), region = 24 }
   0x8   : > { %p40_p4 = scmp.eq.s32.totalorder %s38_s21, 0 }
   0xa   : > { %s1396_s23 = scalar_select %p40_p4, %s1321_s16, %s42_s22  }
   0xe   : > { %206 = sbr.rel (!%p51_p3) target bundleno = 28 (0x1c), region = 28  ;;  %s208_s24 = sand.u32 (%p51_p3), 1, %s1321_s16  }
   0xf   : > { %s1028_s25 = sshll.u32 (%p51_p3), %s1329_s18, 2  ;;  %s1027_s26 = sshll.u32 (%p51_p3), %s208_s24, 6 }
  0x10   : > { %s1404_s29 = scalar_lea.vmem (%p51_p3), %s1535_s0, %s1028_s25  ;;  %s210_s30 = scalar_lea.vmem (%p51_p3), [#allocation3], %s1027_s26 }
  0x11   : > { %v231_v0 = vld [vmem:[%s1404_s29] sm:$0xf] (%p51_p3)  ;;  %v233_v1 = vld [vmem:[%s1404_s29 + $0x14] sm:$0xf] (%p51_p3)  ;;  %v235_v2 = vld [vmem:[%s1404_s29 + $0x28] sm:$0xf] (%p51_p3) }
  0x12   : > { %232 = vst [vmem:[%s210_s30] sm:$0xf] (%p51_p3), %v231_v0  ;;  %234 = vst [vmem:[%s210_s30 + $0x4] sm:$0xf] (%p51_p3), %v233_v1  ;;  %v237_v3 = vld [vmem:[%s1404_s29 + $0x3c] sm:$0xf] (%p51_p3) }
  0x13   : > { %v239_v4 = vld [vmem:[%s1404_s29 + $0x50] sm:$0xf] (%p51_p3)  ;;  %236 = vst [vmem:[%s210_s30 + $0x8] sm:$0xf] (%p51_p3), %v235_v2  ;;  %238 = vst [vmem:[%s210_s30 + $0xc] sm:$0xf] (%p51_p3), %v237_v3 }
  0x14   : > { %240 = vst [vmem:[%s210_s30 + $0x10] sm:$0xf] (%p51_p3), %v239_v4  ;;  %v241_v5 = vld [vmem:[%s1404_s29 + $0x64] sm:$0xf] (%p51_p3)  ;;  %v243_v6 = vld [vmem:[%s1404_s29 + $0x78] sm:$0xf] (%p51_p3) }
  0x15   : > { %v245_v7 = vld [vmem:[%s1404_s29 + $0x8c] sm:$0xf]  ;;  %242 = vst [vmem:[%s210_s30 + $0x14] sm:$0xf] %v241_v5  ;;  %244 = vst [vmem:[%s210_s30 + $0x18] sm:$0xf] %v243_v6 }
  0x16   : > { %246 = vst [vmem:[%s210_s30 + $0x1c] sm:$0xf] %v245_v7  ;;  %v247_v8 = vld [vmem:[%s1404_s29 + $0xa0] sm:$0xf]  ;;  %v249_v9 = vld [vmem:[%s1404_s29 + $0xb4] sm:$0xf] }
  0x17   : > { %v251_v10 = vld [vmem:[%s1404_s29 + $0xc8] sm:$0xf]  ;;  %248 = vst [vmem:[%s210_s30 + $0x20] sm:$0xf] %v247_v8  ;;  %250 = vst [vmem:[%s210_s30 + $0x24] sm:$0xf] %v249_v9 }
  0x18   : > { %252 = vst [vmem:[%s210_s30 + $0x28] sm:$0xf] %v251_v10  ;;  %v253_v11 = vld [vmem:[%s1404_s29 + $0xdc] sm:$0xf]  ;;  %v255_v12 = vld [vmem:[%s1404_s29 + $0xf0] sm:$0xf] }
  0x19   : > { %v257_v13 = vld [vmem:[%s1404_s29 + $0x104] sm:$0xf]  ;;  %254 = vst [vmem:[%s210_s30 + $0x2c] sm:$0xf] %v253_v11  ;;  %256 = vst [vmem:[%s210_s30 + $0x30] sm:$0xf] %v255_v12 }
  0x1a   : > { %258 = vst [vmem:[%s210_s30 + $0x34] sm:$0xf] %v257_v13  ;;  %v259_v14 = vld [vmem:[%s1404_s29 + $0x118] sm:$0xf]  ;;  %v261_v15 = vld [vmem:[%s1404_s29 + $0x12c] sm:$0xf] }
  0x1b   : > { %260 = vst [vmem:[%s210_s30 + $0x38] sm:$0xf] %v259_v14  ;;  %262 = vst [vmem:[%s210_s30 + $0x3c] sm:$0xf] %v261_v15 }
  0x1c PF: > { %p1029_p6 = scmp.ge.s32.totalorder %s1333_s19, 1  ;;  %p328_p7 = scmp.lt.s32.totalorder %s1333_s19, 6 }
  0x1e   : > { %p329_p8 = pnand %p1029_p6, %p328_p7 }
  0x1f   : > { %s335_s5 = sand.u32 (!%p329_p8), 1, %s1317_s15   ;;  %s1031_s6 = sshll.u32 (!%p329_p8), %s1325_s17, 4 }
  0x20   : > { %332 = sbr.rel (%p329_p8) target bundleno = 340 (0x154), region = 73  ;;  %s1030_s7 = sshll.u32 (!%p329_p8), %s335_s5, 6 }
  0x21   : > { %p384_p9 = scmp.lt.s32.totalorder (!%p329_p8), %s1031_s6, 79  ;;  %s1431_s12 = scalar_lea.vmem (!%p329_p8), [#allocation3], %s1030_s7 }
  0x22   : > { %p1033_p10 = scmp.ne.s32.totalorder (!%p329_p8), %s1325_s17, 0 }
  0x27   : > { %s1547_s6 = smov (!%p384_p9, %s1031_s6), 79  ;;  %417 = sbr.rel (%p1033_p10) target bundleno = 49 (0x31), region = 81 }
  0x28   : > { %s1032_s8 = sshll.u32 %s1547_s6, 2  ;;  %v1335_v16 = vmov (!%p1033_p10), 0.0  }
  0x29   : > { %s1429_s11 = scalar_lea.vmem %s1536_s1, %s1032_s8  ;;  %418 = vst [vmem:[#allocation2] sm:$0xff] (!%p1033_p10), %v1335_v16  ;;  %419 = vst [vmem:[#allocation2 + $0x8] sm:$0xff] (!%p1033_p10), %v1335_v16 }
  0x2a   : > { %420 = vst [vmem:[#allocation2 + $0x10] sm:$0xff] (!%p1033_p10), %v1335_v16  ;;  %421 = vst [vmem:[#allocation2 + $0x18] sm:$0xff] (!%p1033_p10), %v1335_v16 }
  0x2b   : > { %422 = vst [vmem:[#allocation2 + $0x20] sm:$0xff] (!%p1033_p10), %v1335_v16  ;;  %423 = vst [vmem:[#allocation2 + $0x28] sm:$0xff] (!%p1033_p10), %v1335_v16 }
  0x2c   : > { %424 = vst [vmem:[#allocation2 + $0x30] sm:$0xff] (!%p1033_p10), %v1335_v16  ;;  %425 = vst [vmem:[#allocation2 + $0x38] sm:$0xff] (!%p1033_p10), %v1335_v16 }
  0x2d   : > { %426 = vst [vmem:[#allocation2 + $0x40] sm:$0xff] (!%p1033_p10), %v1335_v16  ;;  %427 = vst [vmem:[#allocation2 + $0x48] sm:$0xff] (!%p1033_p10), %v1335_v16 }
  0x2e   : > { %428 = vst [vmem:[#allocation2 + $0x50] sm:$0xff] %v1335_v16  ;;  %429 = vst [vmem:[#allocation2 + $0x58] sm:$0xff] %v1335_v16 }
  0x2f   : > { %430 = vst [vmem:[#allocation2 + $0x60] sm:$0xff] %v1335_v16  ;;  %431 = vst [vmem:[#allocation2 + $0x68] sm:$0xff] %v1335_v16 }
  0x30   : > { %432 = vst [vmem:[#allocation2 + $0x70] sm:$0xff] %v1335_v16  ;;  %433 = vst [vmem:[#allocation2 + $0x78] sm:$0xff] %v1335_v16 }
  0x31 PF: > { %v1279_v17 = vld [vmem:[%s1429_s11] sm:$0xff]   ;;  %v1280_v18 = vld [vmem:[%s1429_s11 + $0x8] sm:$0xff]   ;;  %v1281_v19 = vld [vmem:[%s1429_s11 + $0x10] sm:$0xff]   ;;  %p1050_p11 = scmp.ne.s32.totalorder %s1325_s17, 4 }
  0x32   : > { %1190 = vmatprep.subr.bf16.mxu0 %v1279_v17  ;;  %1222 = vmatprep.subr.bf16.mxu1 %v1279_v17  ;;  %v1282_v20 = vld [vmem:[%s1429_s11 + $0x18] sm:$0xff]   ;;  %v1287_v21 = vld [vmem:[%s1431_s12] sm:$0xff]   ;;  %v1284_v24 = vld [vmem:[%s1429_s11 + $0x28] sm:$0xff]  }
  0x33   : > { %1191 = vmatpush3.bf16.msra.mxu0 %v1279_v17  ;;  %1230 = vmatpush3.bf16.msra.mxu1 %v1279_v17  ;;  %v1288_v22 = vld [vmem:[%s1431_s12 + $0x20] sm:$0xff]   ;;  %v1285_v25 = vld [vmem:[%s1429_s11 + $0x30] sm:$0xff]   ;;  %v1286_v26 = vld [vmem:[%s1429_s11 + $0x38] sm:$0xff]  }
  0x34   : > { %1192 = vmatprep.subr.bf16.mxu0 %v1280_v18  ;;  %1223 = vmatprep.subr.bf16.mxu1 %v1280_v18  ;;  %v1283_v23 = vld [vmem:[%s1429_s11 + $0x20] sm:$0xff]   ;;  %v1289_v27 = vld [vmem:[%s1431_s12 + $0x8] sm:$0xff]   ;;  %v1291_v29 = vld [vmem:[%s1431_s12 + $0x10] sm:$0xff]  }
  0x35   : > { %1206 = vmatprep.mubr.bf16.mxu0 %v1287_v21  ;;  %1214 = vmatprep.mubr.bf16.mxu1 %v1288_v22  ;;  %v1290_v28 = vld [vmem:[%s1431_s12 + $0x28] sm:$0xff]   ;;  %v1292_v30 = vld [vmem:[%s1431_s12 + $0x30] sm:$0xff]   ;;  %v1293_v31 = vld [vmem:[%s1431_s12 + $0x18] sm:$0xff]  }
  0x36   : > { %v1294_v32 = vld [vmem:[%s1431_s12 + $0x38] sm:$0xff]   ;;  %v436_v33 = vld [vmem:[#allocation2 + $0x10] sm:$0xff]  ;;  %v434_v35 = vld [vmem:[#allocation2] sm:$0xff] }
  0x37   : > { %1193 = vmatpush3.bf16.msra.mxu0 %v1280_v18  ;;  %1231 = vmatpush3.bf16.msra.mxu1 %v1280_v18  ;;  %v444_v34 = vld [vmem:[#allocation2 + $0x50] sm:$0xff]  ;;  %v442_v36 = vld [vmem:[#allocation2 + $0x40] sm:$0xff]  ;;  %v437_v39 = vld [vmem:[#allocation2 + $0x18] sm:$0xff] }
  0x38   : > { %1194 = vmatprep.subr.bf16.mxu0 %v1281_v19  ;;  %1224 = vmatprep.subr.bf16.mxu1 %v1281_v19  ;;  %v445_v40 = vld [vmem:[#allocation2 + $0x58] sm:$0xff]  ;;  %v435_v45 = vld [vmem:[#allocation2 + $0x8] sm:$0xff]  ;;  %v440_v57 = vld [vmem:[#allocation2 + $0x30] sm:$0xff] }
  0x39   : > { %v443_v46 = vld [vmem:[#allocation2 + $0x48] sm:$0xff]  ;;  %v448_v58 = vld [vmem:[#allocation2 + $0x70] sm:$0xff]  ;;  %v438_v59 = vld [vmem:[#allocation2 + $0x20] sm:$0xff] }
  0x3a   : > { %v446_v60 = vld [vmem:[#allocation2 + $0x60] sm:$0xff]  ;;  %v441_v63 = vld [vmem:[#allocation2 + $0x38] sm:$0xff]  ;;  %v439_v5 = vld [vmem:[#allocation2 + $0x28] sm:$0xff] }
  0x3b   : > { %1195 = vmatpush3.bf16.msra.mxu0 %v1281_v19  ;;  %1232 = vmatpush3.bf16.msra.mxu1 %v1281_v19  ;;  %v449_v0 = vld [vmem:[#allocation2 + $0x78] sm:$0xff]  ;;  %v447_v6 = vld [vmem:[#allocation2 + $0x68] sm:$0xff]  ;;  %v1454_v19 = vld [vmem:[%s1537_s2] ss:$0 sm:$0xff] (!%p1050_p11) }
  0x3c   : > { %1196 = vmatprep.subr.bf16.mxu0 %v1282_v20  ;;  %1225 = vmatprep.subr.bf16.mxu1 %v1282_v20  ;;  %v1089_v22 = vld [vmem:[%s1538_s3] sm:$0xff] (!%p1050_p11)  }
  0x3f   : > { %1197 = vmatpush3.bf16.msra.mxu0 %v1282_v20  ;;  %1233 = vmatpush3.bf16.msra.mxu1 %v1282_v20 }
  0x40   : > { %1198 = vmatprep.subr.bf16.mxu0 %v1283_v23  ;;  %1226 = vmatprep.subr.bf16.mxu1 %v1283_v23 }
  0x43   : > { %1199 = vmatpush3.bf16.msra.mxu0 %v1283_v23  ;;  %1234 = vmatpush3.bf16.msra.mxu1 %v1283_v23 }
  0x44   : > { %1200 = vmatprep.subr.bf16.mxu0 %v1284_v24  ;;  %1227 = vmatprep.subr.bf16.mxu1 %v1284_v24 }
  0x47   : > { %1201 = vmatpush3.bf16.msra.mxu0 %v1284_v24  ;;  %1235 = vmatpush3.bf16.msra.mxu1 %v1284_v24 }
  0x48   : > { %1202 = vmatprep.subr.bf16.mxu0 %v1285_v25  ;;  %1228 = vmatprep.subr.bf16.mxu1 %v1285_v25 }
  0x4b   : > { %1203 = vmatpush3.bf16.msra.mxu0 %v1285_v25  ;;  %1236 = vmatpush3.bf16.msra.mxu1 %v1285_v25  ;;  %v1090_v25 = vunpack.c.l.bf16 (!%p1050_p11), %v1089_v22 }
  0x4c   : > { %1204 = vmatprep.subr.bf16.mxu0 %v1286_v26  ;;  %1229 = vmatprep.subr.bf16.mxu1 %v1286_v26 }
  0x4f   : > { %1205 = vmatpush3.bf16.msra.mxu0 %v1286_v26  ;;  %1237 = vmatpush3.bf16.msra.mxu1 %v1286_v26  ;;  %v1091_v26 = vunpack.c.h.bf16 (!%p1050_p11), %v1089_v22 }
  0x52   : > { %1207 = vmatmul.mubr.bf16.vlgmr.msra.gmra.mrb[0].mxu0 %v1289_v27  ;;  %1215 = vmatmul.mubr.bf16.vlgmr.msra.gmra.mrb[0].mxu1 %v1290_v28 }
  0x53   : > { %1210 = vmatprep.mubr.bf16.mxu0 %v1291_v29  ;;  %1218 = vmatprep.mubr.bf16.mxu1 %v1292_v30  ;;  %v1160_v29 = vld [vmem:[%s1538_s3 + $0x8] sm:$0xff] (!%p1050_p11)  }
  0x5a   : > { %1211 = vmatmul.mubr.bf16.gmra.mrb[4].mxu0 %v1293_v31  ;;  %1219 = vmatmul.mubr.bf16.gmra.mrb[4].mxu1 %v1294_v32  ;;  %v1094_v32 = vunpack.c.l.bf16 (!%p1050_p11), %v1160_v29 }
 0x125   : > { %v1208_v37 = vpop.f32.mrb[0].mxu0  ;;  %v1216_v38 = vpop.f32.mrb[0].mxu1 }
 0x126   : > { %v677_v41 = vadd.f32 %v1208_v37, %v436_v33  ;;  %v685_v42 = vadd.f32 %v1216_v38, %v444_v34  ;;  %v612_v43 = vpop.f32.mrb[1].mxu0  ;;  %v644_v44 = vpop.f32.mrb[1].mxu1  ;;  %v1095_v33 = vunpack.c.h.bf16 (!%p1050_p11), %v1160_v29 }
 0x127   : > { %v675_v47 = vadd.f32 %v612_v43, %v434_v35  ;;  %v683_v48 = vadd.f32 %v644_v44, %v442_v36  ;;  %v1209_v49 = vpop.f32.mrb[2].mxu0  ;;  %v1217_v50 = vpop.f32.mrb[2].mxu1  ;;  %v1161_v36 = vld [vmem:[%s1538_s3 + $0x10] sm:$0xff] (!%p1050_p11)   ;;  %v1162_v43 = vld [vmem:[%s1538_s3 + $0x18] sm:$0xff] (!%p1050_p11)  }
 0x128   : > { %693 = vst [vmem:[#allocation2 + $0x10] sm:$0xff] %v677_v41  ;;  %701 = vst [vmem:[#allocation2 + $0x50] sm:$0xff] %v685_v42  ;;  %v678_v51 = vadd.f32 %v1209_v49, %v437_v39  ;;  %v686_v52 = vadd.f32 %v1217_v50, %v445_v40  ;;  %v615_v53 = vpop.f32.mrb[3].mxu0  ;;  %v647_v54 = vpop.f32.mrb[3].mxu1  ;;  %v1098_v41 = vunpack.c.l.bf16 (!%p1050_p11), %v1161_v36  ;;  %v1099_v42 = vunpack.c.h.bf16 (!%p1050_p11), %v1161_v36 }
 0x129   : > { %691 = vst [vmem:[#allocation2] sm:$0xff] %v675_v47  ;;  %699 = vst [vmem:[#allocation2 + $0x40] sm:$0xff] %v683_v48  ;;  %v676_v55 = vadd.f32 %v615_v53, %v435_v45  ;;  %v684_v56 = vadd.f32 %v647_v54, %v443_v46 }
 0x12a   : > { %694 = vst [vmem:[#allocation2 + $0x18] sm:$0xff] %v678_v51  ;;  %702 = vst [vmem:[#allocation2 + $0x58] sm:$0xff] %v686_v52 }
 0x12b   : > { %692 = vst [vmem:[#allocation2 + $0x8] sm:$0xff] %v676_v55  ;;  %700 = vst [vmem:[#allocation2 + $0x48] sm:$0xff] %v684_v56  ;;  %v1102_v56 = vunpack.c.l.bf16 (!%p1050_p11), %v1162_v43 }
 0x12d   : > { %v1212_v61 = vpop.f32.mrb[4].mxu0  ;;  %v1220_v62 = vpop.f32.mrb[4].mxu1  ;;  %710 = sbr.rel (%p1050_p11) target bundleno = 340 (0x154), region = 85 }
 0x12e   : > { %v681_v1 = vadd.f32 %v1212_v61, %v440_v57  ;;  %v689_v2 = vadd.f32 %v1220_v62, %v448_v58  ;;  %v628_v3 = vpop.f32.mrb[5].mxu0  ;;  %v660_v4 = vpop.f32.mrb[5].mxu1  ;;  %v1103_v57 = vunpack.c.h.bf16 (!%p1050_p11), %v1162_v43  ;;  %v1163_v58 = vld [vmem:[%s1538_s3 + $0x20] sm:$0xff] (!%p1050_p11)  }
 0x12f   : > { %v679_v7 = vadd.f32 %v628_v3, %v438_v59  ;;  %v687_v8 = vadd.f32 %v660_v4, %v446_v60  ;;  %v1213_v9 = vpop.f32.mrb[6].mxu0  ;;  %v1221_v10 = vpop.f32.mrb[6].mxu1  ;;  %v713_v23 = vld [vmem:[#allocation2 + $0x10] sm:$0xff] (!%p1050_p11) }
 0x130   : > { %697 = vst [vmem:[#allocation2 + $0x30] sm:$0xff] %v681_v1  ;;  %705 = vst [vmem:[#allocation2 + $0x70] sm:$0xff] %v689_v2  ;;  %v682_v11 = vadd.f32 %v1213_v9, %v441_v63  ;;  %v690_v12 = vadd.f32 %v1221_v10, %v449_v0  ;;  %v631_v13 = vpop.f32.mrb[7].mxu0  ;;  %v663_v14 = vpop.f32.mrb[7].mxu1  ;;  %v711_v17 = vld [vmem:[#allocation2] sm:$0xff] (!%p1050_p11)  ;;  %v736_v27 = vadd.f32 (!%p1050_p11), %v1454_v19, %v713_v23  ;;  %v721_v59 = vld [vmem:[#allocation2 + $0x50] sm:$0xff] (!%p1050_p11)  ;;  %v1107_v9 = vunpack.c.h.bf16 (!%p1050_p11), %v1163_v58 }
 0x131   : > { %695 = vst [vmem:[#allocation2 + $0x20] sm:$0xff] %v679_v7  ;;  %703 = vst [vmem:[#allocation2 + $0x60] sm:$0xff] %v687_v8  ;;  %v680_v15 = vadd.f32 %v631_v13, %v439_v5  ;;  %v688_v16 = vadd.f32 %v663_v14, %v447_v6  ;;  %v734_v20 = vadd.f32 (!%p1050_p11), %v1454_v19, %v711_v17  ;;  %v714_v24 = vld [vmem:[#allocation2 + $0x18] sm:$0xff] (!%p1050_p11)  ;;  %v719_v48 = vld [vmem:[#allocation2 + $0x40] sm:$0xff] (!%p1050_p11)  ;;  %v1106_v8 = vunpack.c.l.bf16 (!%p1050_p11), %v1163_v58 }
 0x132   : > { %698 = vst [vmem:[#allocation2 + $0x38] sm:$0xff] %v682_v11  ;;  %706 = vst [vmem:[#allocation2 + $0x78] sm:$0xff] %v690_v12  ;;  %v712_v18 = vld [vmem:[#allocation2 + $0x8] sm:$0xff] (!%p1050_p11)  ;;  %v737_v28 = vadd.f32 (!%p1050_p11), %v1454_v19, %v714_v24  ;;  %v784_v44 = vadd.f32 (!%p1050_p11), %v1094_v32, %v736_v27  ;;  %v742_v63 = vadd.f32 (!%p1050_p11), %v1454_v19, %v719_v48  ;;  %v722_v0 = vld [vmem:[#allocation2 + $0x58] sm:$0xff] (!%p1050_p11) }
 0x133   : > { %696 = vst [vmem:[#allocation2 + $0x28] sm:$0xff] %v680_v15  ;;  %704 = vst [vmem:[#allocation2 + $0x68] sm:$0xff] %v688_v16  ;;  %v735_v21 = vadd.f32 (!%p1050_p11), %v1454_v19, %v712_v18  ;;  %v782_v39 = vadd.f32 (!%p1050_p11), %v1090_v25, %v734_v20  ;;  %v720_v53 = vld [vmem:[#allocation2 + $0x48] sm:$0xff] (!%p1050_p11)  ;;  %v744_v10 = vadd.f32 (!%p1050_p11), %v1454_v19, %v721_v59 }
 0x134   : > { %v785_v45 = vadd.f32 %v1095_v33, %v737_v28  ;;  %v800_v54 = vmax.f32 %v784_v44, 0.0  ;;  %v1164_v1 = vld [vmem:[%s1538_s3 + $0x28] sm:$0xff]   ;;  %v743_v5 = vadd.f32 %v1454_v19, %v720_v53  ;;  %v745_v15 = vadd.f32 %v1454_v19, %v722_v0 }
 0x135   : > { %v783_v40 = vadd.f32 %v1091_v26, %v735_v21  ;;  %v798_v49 = vmax.f32 %v782_v39, 0.0  ;;  %v1110_v16 = vunpack.c.l.bf16 %v1164_v1  ;;  %v790_v17 = vadd.f32 %v1106_v8, %v742_v63 }
 0x136   : > { %v801_v55 = vmax.f32 %v785_v45, 0.0  ;;  %v791_v18 = vadd.f32 %v1107_v9, %v743_v5  ;;  %v1111_v20 = vunpack.c.h.bf16 %v1164_v1 }
 0x137   : > { %v717_v37 = vld [vmem:[#allocation2 + $0x30] sm:$0xff]  ;;  %v799_v50 = vmax.f32 %v783_v40, 0.0  ;;  %v792_v25 = vadd.f32 %v1110_v16, %v744_v10  ;;  %v806_v29 = vmax.f32 %v790_v17, 0.0 }
 0x138   : > { %v715_v30 = vld [vmem:[#allocation2 + $0x20] sm:$0xff]  ;;  %v740_v46 = vadd.f32 %v1454_v19, %v717_v37  ;;  %v1128_v2 = vpack.c.bf16 %v801_v55, %v800_v54  ;;  %v725_v22 = vld [vmem:[#allocation2 + $0x70] sm:$0xff] }
 0x139   : > { %v738_v34 = vadd.f32 %v1454_v19, %v715_v30  ;;  %v718_v38 = vld [vmem:[#allocation2 + $0x38] sm:$0xff]  ;;  %v1123_v60 = vpack.c.bf16 %v799_v50, %v798_v49  ;;  %v723_v6 = vld [vmem:[#allocation2 + $0x60] sm:$0xff]  ;;  %v807_v30 = vmax.f32 %v791_v18, 0.0  ;;  %v808_v33 = vmax.f32 %v792_v25, 0.0 }
 0x13a   : > { %v716_v31 = vld [vmem:[#allocation2 + $0x28] sm:$0xff]  ;;  %v741_v47 = vadd.f32 %v1454_v19, %v718_v38  ;;  %v788_v3 = vadd.f32 %v1102_v56, %v740_v46  ;;  %v746_v21 = vadd.f32 %v1454_v19, %v723_v6  ;;  %v726_v23 = vld [vmem:[#allocation2 + $0x78] sm:$0xff] }
 0x13b   : > { %v739_v35 = vadd.f32 %v1454_v19, %v716_v31  ;;  %v786_v51 = vadd.f32 %v1098_v41, %v738_v34  ;;  %1124 = vst [vmem:[%s1539_s4] sm:$0xff] %v1123_v60   ;;  %v724_v11 = vld [vmem:[#allocation2 + $0x68] sm:$0xff]  ;;  %v793_v31 = vadd.f32 %v1111_v20, %v745_v15  ;;  %v749_v36 = vadd.f32 %v1454_v19, %v726_v23 }
 0x13c   : > { %v789_v4 = vadd.f32 %v1103_v57, %v741_v47  ;;  %v804_v13 = vmax.f32 %v788_v3, 0.0  ;;  %v747_v26 = vadd.f32 %v1454_v19, %v724_v11  ;;  %v1143_v37 = vpack.c.bf16 %v807_v30, %v806_v29 }
 0x13d   : > { %v787_v52 = vadd.f32 %v1099_v42, %v739_v35  ;;  %v802_v61 = vmax.f32 %v786_v51, 0.0  ;;  %v748_v35 = vadd.f32 %v1454_v19, %v725_v22  ;;  %v809_v38 = vmax.f32 %v793_v31, 0.0 }
 0x13e   : > { %v805_v14 = vmax.f32 %v789_v4, 0.0 }
 0x13f   : > { %v803_v62 = vmax.f32 %v787_v52, 0.0  ;;  %v1148_v43 = vpack.c.bf16 %v809_v38, %v808_v33 }
 0x140   : > { %v1138_v24 = vpack.c.bf16 %v805_v14, %v804_v13 }
 0x141   : > { %v1133_v7 = vpack.c.bf16 %v803_v62, %v802_v61 }
 0x142   : > { %v1165_v12 = vld [vmem:[%s1538_s3 + $0x30] sm:$0xff]  }
 0x143   : > { %1167 = vst [vmem:[%s1539_s4 + $0x8] sm:$0xff] %v1128_v2   ;;  %1168 = vst [vmem:[%s1539_s4 + $0x10] sm:$0xff] %v1133_v7   ;;  %v1114_v27 = vunpack.c.l.bf16 %v1165_v12  ;;  %v1115_v32 = vunpack.c.h.bf16 %v1165_v12 }
 0x145   : > { %v794_v34 = vadd.f32 %v1114_v27, %v746_v21  ;;  %v795_v39 = vadd.f32 %v1115_v32, %v747_v26 }
 0x147   : > { %v810_v41 = vmax.f32 %v794_v34, 0.0  ;;  %v811_v44 = vmax.f32 %v795_v39, 0.0 }
 0x149   : > { %v1153_v47 = vpack.c.bf16 %v811_v44, %v810_v41 }
 0x14a   : > { %v1166_v28 = vld [vmem:[%s1538_s3 + $0x38] sm:$0xff]  }
 0x14b   : > { %1169 = vst [vmem:[%s1539_s4 + $0x18] sm:$0xff] %v1138_v24   ;;  %v1118_v40 = vunpack.c.l.bf16 %v1166_v28  ;;  %v1119_v42 = vunpack.c.h.bf16 %v1166_v28  ;;  %1170 = vst [vmem:[%s1539_s4 + $0x20] sm:$0xff] %v1143_v37  }
 0x14c   : > { %1171 = vst [vmem:[%s1539_s4 + $0x28] sm:$0xff] %v1148_v43   ;;  %1172 = vst [vmem:[%s1539_s4 + $0x30] sm:$0xff] %v1153_v47  }
 0x14d   : > { %v796_v45 = vadd.f32 %v1118_v40, %v748_v35  ;;  %v797_v46 = vadd.f32 %v1119_v42, %v749_v36 }
 0x14f   : > { %v812_v19 = vmax.f32 %v796_v45, 0.0  ;;  %v813_v48 = vmax.f32 %v797_v46, 0.0 }
 0x151   : > { %v1158_v49 = vpack.c.bf16 %v813_v48, %v812_v19 }
 0x153   : > { %1173 = vst [vmem:[%s1539_s4 + $0x38] sm:$0xff] %v1158_v49  }
 0x154 PF: > { %s14_s19 = sadd.s32 1, %s1333_s19   ;;  %s1540_s15 = smov %s1321_s16 }
 0x155   : > { %p11_p12 = scmp.ge.s32.totalorder %s14_s19, 7   ;;  %s1541_s16 = smov %s1396_s23 }
 0x156   : > { %s1542_s17 = smov %s1329_s18  ;;  %s1543_s18 = smov %s1545_s20 }
 0x157   :  { %13 = sbr.rel (!%p11_p12) target bundleno = 3 (0x3), region = 129 }

// kernel: _lambda_.19
= control target key start
LH: loop header
LB: loop body
LE: loop exit
PB: predicated region body
PF: predicated region fallthrough
CT: control target
= control target key end

     0   :  { %s796_s12 = smov 0   ;;  %s798_s13 = smov 0   ;;  %s889_s0 = inlined_call_operand.vmem [shape: bf16[32,640], index: 0, kind: input, shape index: {}]   ;;  %s890_s1 = inlined_call_operand.vmem [shape: bf16[640,128], index: 1, kind: input, shape index: {}]   ;;  %s891_s2 = inlined_call_operand.vmem [shape: f32[1,128], index: 2, kind: input, shape index: {}]   ;;  %s892_s3 = inlined_call_operand.vmem [shape: bf16[32,128], index: 3, kind: output, shape index: {}]  }
   0x1   :  { %s800_s14 = smov 0   ;;  %s802_s15 = smov 0  }
   0x2   :  { %s804_s16 = smov 0  }
   0x3 LB: > { %s25_s17 = sadd.s32 1, %s769_s15  ;;  %p48_p1 = scmp.ne.s32.totalorder %s761_s13, %s757_s12  ;;  %s773_s16 = sphi %s804_s16, %s13_s16   ;;  %s769_s15 = sphi %s802_s15, %s896_s15   ;;  %s765_s14 = sphi %s800_s14, %s895_s14   ;;  %s761_s13 = sphi %s798_s13, %s894_s13   ;;  %s757_s12 = sphi %s796_s12, %s893_s12  }
   0x4   : > { %p26_p0 = scmp.ge.s32.totalorder %s25_s17, 5  ;;  %p49_p2 = scmp.eq.s32.totalorder %s773_s16, 0 }
   0x5   : > { %s41_s19 = sadd.s32 1, %s761_s13  ;;  %p611_p5 = scmp.ge.s32.totalorder %s773_s16, 5 }
   0x6   : > { %s898_s17 = smov (%p26_p0, %s25_s17), 0  ;;  %p50_p3 = por %p49_p2, %p48_p1 }
   0x7   : > { %s37_s18 = ssub.s32 %s769_s15, %s898_s17  ;;  %162 = sbr.rel (%p611_p5) target bundleno = 21 (0x15), region = 20 }
   0x8   : > { %p39_p4 = scmp.eq.s32.totalorder %s37_s18, 0 }
   0xa   : > { %s831_s20 = scalar_select %p39_p4, %s761_s13, %s41_s19  }
   0xe   : > { %165 = sbr.rel (!%p50_p3) target bundleno = 21 (0x15), region = 24  ;;  %s167_s21 = sand.u32 (%p50_p3), 1, %s761_s13  }
   0xf   : > { %s613_s22 = sshll.u32 (%p50_p3), %s769_s15, 2  ;;  %s612_s23 = sshll.u32 (%p50_p3), %s167_s21, 4 }
  0x10   : > { %s174_s26 = scalar_lea.vmem (%p50_p3), %s889_s0, %s613_s22  ;;  %s169_s27 = scalar_lea.vmem (%p50_p3), [#allocation3], %s612_s23 }
  0x11   : > { %v190_v0 = vld [vmem:[%s174_s26] sm:$0xf] (%p50_p3)  ;;  %v192_v1 = vld [vmem:[%s174_s26 + $0x14] sm:$0xf] (%p50_p3)  ;;  %v194_v2 = vld [vmem:[%s174_s26 + $0x28] sm:$0xf] (%p50_p3) }
  0x12   : > { %191 = vst [vmem:[%s169_s27] sm:$0xf] (%p50_p3), %v190_v0  ;;  %193 = vst [vmem:[%s169_s27 + $0x4] sm:$0xf] (%p50_p3), %v192_v1  ;;  %v196_v3 = vld [vmem:[%s174_s26 + $0x3c] sm:$0xf] (%p50_p3) }
  0x13   : > { %195 = vst [vmem:[%s169_s27 + $0x8] sm:$0xf] (%p50_p3), %v194_v2  ;;  %197 = vst [vmem:[%s169_s27 + $0xc] sm:$0xf] (%p50_p3), %v196_v3 }
  0x15 PF: > { %p614_p6 = scmp.ge.s32.totalorder %s773_s16, 1  ;;  %p239_p7 = scmp.lt.s32.totalorder %s773_s16, 6 }
  0x17   : > { %p240_p8 = pnand %p614_p6, %p239_p7 }
  0x18   : > { %s246_s28 = sand.u32 (!%p240_p8), 1, %s757_s12   ;;  %s616_s29 = sshll.u32 (!%p240_p8), %s765_s14, 4 }
  0x19   : > { %243 = sbr.rel (%p240_p8) target bundleno = 304 (0x130), region = 69  ;;  %s843_s30 = sshll.u32 (!%p240_p8), %s246_s28, 4 }
  0x1a   : > { %p285_p9 = scmp.lt.s32.totalorder (!%p240_p8), %s616_s29, 79  ;;  %s248_s8 = scalar_lea.vmem (!%p240_p8), [#allocation3], %s843_s30 }
  0x1b   : > { %p618_p10 = scmp.ne.s32.totalorder (!%p240_p8), %s765_s14, 0 }
  0x20   : > { %s900_s29 = smov (!%p285_p9, %s616_s29), 79  ;;  %309 = sbr.rel (%p618_p10) target bundleno = 39 (0x27), region = 77 }
  0x21   : > { %s617_s4 = sshll.u32 %s900_s29, 2  ;;  %v775_v4 = vmov (!%p618_p10), 0.0  }
  0x22   : > { %s848_s7 = scalar_lea.vmem %s890_s1, %s617_s4  ;;  %310 = vst [vmem:[#allocation2] sm:$0xff] (!%p618_p10), %v775_v4  ;;  %311 = vst [vmem:[#allocation2 + $0x8] sm:$0xff] (!%p618_p10), %v775_v4 }
  0x23   : > { %312 = vst [vmem:[#allocation2 + $0x10] sm:$0xff] (!%p618_p10), %v775_v4  ;;  %313 = vst [vmem:[#allocation2 + $0x18] sm:$0xff] (!%p618_p10), %v775_v4 }
  0x27 PF: > { %v725_v5 = vld [vmem:[%s848_s7] sm:$0xff]   ;;  %v726_v6 = vld [vmem:[%s848_s7 + $0x8] sm:$0xff]   ;;  %v727_v7 = vld [vmem:[%s848_s7 + $0x10] sm:$0xff]   ;;  %p629_p11 = scmp.ne.s32.totalorder %s765_s14, 4 }
  0x28   : > { %664 = vmatprep.subr.bf16.mxu0 %v725_v5  ;;  %v728_v8 = vld [vmem:[%s848_s7 + $0x18] sm:$0xff]   ;;  %v733_v9 = vld [vmem:[%s248_s8] sm:$0xff]   ;;  %v730_v11 = vld [vmem:[%s848_s7 + $0x28] sm:$0xff]  }
  0x29   : > { %665 = vmatpush3.bf16.msra.mxu0 %v725_v5  ;;  %680 = vmatprep.mubr.bf16.mxu0 %v733_v9  ;;  %v729_v10 = vld [vmem:[%s848_s7 + $0x20] sm:$0xff]   ;;  %v731_v12 = vld [vmem:[%s848_s7 + $0x30] sm:$0xff]   ;;  %v732_v13 = vld [vmem:[%s848_s7 + $0x38] sm:$0xff]  }
  0x2a   : > { %666 = vmatprep.subr.bf16.mxu0 %v726_v6  ;;  %v734_v14 = vld [vmem:[%s248_s8 + $0x8] sm:$0xff]   ;;  %v316_v15 = vld [vmem:[#allocation2 + $0x10] sm:$0xff]  ;;  %v314_v16 = vld [vmem:[#allocation2] sm:$0xff] }
  0x2b   : > { %v317_v18 = vld [vmem:[#allocation2 + $0x18] sm:$0xff]  ;;  %v315_v21 = vld [vmem:[#allocation2 + $0x8] sm:$0xff]  ;;  %v630_v29 = vld [vmem:[%s891_s2] ss:$0 sm:$0xff] (!%p629_p11) }
  0x2d   : > { %667 = vmatpush3.bf16.msra.mxu0 %v726_v6 }
  0x2e   : > { %668 = vmatprep.subr.bf16.mxu0 %v727_v7 }
  0x31   : > { %669 = vmatpush3.bf16.msra.mxu0 %v727_v7 }
  0x32   : > { %670 = vmatprep.subr.bf16.mxu0 %v728_v8 }
  0x35   : > { %671 = vmatpush3.bf16.msra.mxu0 %v728_v8 }
  0x36   : > { %672 = vmatprep.subr.bf16.mxu0 %v729_v10 }
  0x39   : > { %673 = vmatpush3.bf16.msra.mxu0 %v729_v10 }
  0x3a   : > { %674 = vmatprep.subr.bf16.mxu0 %v730_v11 }
  0x3d   : > { %675 = vmatpush3.bf16.msra.mxu0 %v730_v11 }
  0x3e   : > { %676 = vmatprep.subr.bf16.mxu0 %v731_v12 }
  0x41   : > { %677 = vmatpush3.bf16.msra.mxu0 %v731_v12 }
  0x42   : > { %678 = vmatprep.subr.bf16.mxu0 %v732_v13 }
  0x45   : > { %679 = vmatpush3.bf16.msra.mxu0 %v732_v13 }
  0x48   : > { %681 = vmatmul.mubr.bf16.vlgmr.msra.gmra.mrb[0].mxu0 %v734_v14 }
 0x11b   : > { %v682_v17 = vpop.f32.mrb[0].mxu0  ;;  %458 = sbr.rel (%p629_p11) target bundleno = 304 (0x130), region = 81 }
 0x11c   : > { %v449_v19 = vadd.f32 %v682_v17, %v316_v15  ;;  %v432_v20 = vpop.f32.mrb[1].mxu0 }
 0x11d   : > { %v447_v22 = vadd.f32 %v432_v20, %v314_v16  ;;  %v683_v23 = vpop.f32.mrb[2].mxu0 }
 0x11e   : > { %453 = vst [vmem:[#allocation2 + $0x10] sm:$0xff] %v449_v19  ;;  %v450_v24 = vadd.f32 %v683_v23, %v317_v18  ;;  %v435_v25 = vpop.f32.mrb[3].mxu0 }
 0x11f   : > { %451 = vst [vmem:[#allocation2] sm:$0xff] %v447_v22  ;;  %v448_v26 = vadd.f32 %v435_v25, %v315_v21 }
 0x120   : > { %454 = vst [vmem:[#allocation2 + $0x18] sm:$0xff] %v450_v24 }
 0x121   : > { %452 = vst [vmem:[#allocation2 + $0x8] sm:$0xff] %v448_v26 }
 0x125   : > { %v461_v32 = vld [vmem:[#allocation2 + $0x10] sm:$0xff] }
 0x126   : > { %v459_v27 = vld [vmem:[#allocation2] sm:$0xff]  ;;  %v472_v34 = vadd.f32 %v630_v29, %v461_v32 }
 0x127   : > { %v470_v30 = vadd.f32 %v630_v29, %v459_v27  ;;  %v462_v33 = vld [vmem:[#allocation2 + $0x18] sm:$0xff] }
 0x128   : > { %v460_v28 = vld [vmem:[#allocation2 + $0x8] sm:$0xff]  ;;  %v473_v35 = vadd.f32 %v630_v29, %v462_v33  ;;  %v476_v38 = vmax.f32 %v472_v34, 0.0 }
 0x129   : > { %v471_v31 = vadd.f32 %v630_v29, %v460_v28  ;;  %v474_v36 = vmax.f32 %v470_v30, 0.0 }
 0x12a   : > { %v477_v39 = vmax.f32 %v473_v35, 0.0 }
 0x12b   : > { %v475_v37 = vmax.f32 %v471_v31, 0.0 }
 0x12c   : > { %v651_v41 = vpack.c.bf16 %v477_v39, %v476_v38 }
 0x12d   : > { %v646_v40 = vpack.c.bf16 %v475_v37, %v474_v36 }
 0x12e   : > { %653 = vst [vmem:[%s892_s3 + $0x8] sm:$0xff] %v651_v41  }
 0x12f   : > { %647 = vst [vmem:[%s892_s3] sm:$0xff] %v646_v40  }
 0x130 PF: > { %s13_s16 = sadd.s32 1, %s773_s16   ;;  %s893_s12 = smov %s761_s13 }
 0x131   : > { %p10_p12 = scmp.ge.s32.totalorder %s13_s16, 7   ;;  %s894_s13 = smov %s831_s20 }
 0x132   : > { %s895_s14 = smov %s769_s15  ;;  %s896_s15 = smov %s898_s17 }
 0x133   :  { %12 = sbr.rel (!%p10_p12) target bundleno = 3 (0x3), region = 122 }

// kernel: _lambda_.20
= control target key start
LH: loop header
LB: loop body
LE: loop exit
PB: predicated region body
PF: predicated region fallthrough
CT: control target
= control target key end

     0   :  { %s335_s1 = inlined_call_operand.vmem [shape: bf16[128,128], index: 1, kind: input, shape index: {}]   ;;  %s336_s0 = inlined_call_operand.vmem [shape: bf16[32,128], index: 0, kind: input, shape index: {}]   ;;  %s337_s2 = inlined_call_operand.vmem [shape: f32[1,128], index: 2, kind: input, shape index: {}]   ;;  %s338_s3 = inlined_call_operand.vmem [shape: bf16[32,128], index: 3, kind: output, shape index: {}]  }
   0x1   :  { %v266_v0 = vld [vmem:[%s335_s1] sm:$0xff]   ;;  %v267_v1 = vld [vmem:[%s335_s1 + $0x8] sm:$0xff]   ;;  %v268_v2 = vld [vmem:[%s335_s1 + $0x10] sm:$0xff]  }
   0x2   :  { %246 = vmatprep.subr.bf16.mxu0 %v266_v0  ;;  %v269_v3 = vld [vmem:[%s335_s1 + $0x18] sm:$0xff]   ;;  %v274_v4 = vld [vmem:[%s336_s0] sm:$0xff]   ;;  %v271_v6 = vld [vmem:[%s335_s1 + $0x28] sm:$0xff]  }
   0x3   :  { %247 = vmatpush3.bf16.msra.mxu0 %v266_v0  ;;  %262 = vmatprep.mubr.bf16.mxu0 %v274_v4  ;;  %v270_v5 = vld [vmem:[%s335_s1 + $0x20] sm:$0xff]   ;;  %v272_v7 = vld [vmem:[%s335_s1 + $0x30] sm:$0xff]   ;;  %v273_v8 = vld [vmem:[%s335_s1 + $0x38] sm:$0xff]  }
   0x4   :  { %248 = vmatprep.subr.bf16.mxu0 %v267_v1  ;;  %v275_v9 = vld [vmem:[%s336_s0 + $0x8] sm:$0xff]   ;;  %v216_v11 = vld [vmem:[%s337_s2] ss:$0 sm:$0xff] }
   0x7   :  { %249 = vmatpush3.bf16.msra.mxu0 %v267_v1 }
   0x8   :  { %250 = vmatprep.subr.bf16.mxu0 %v268_v2 }
   0xb   :  { %251 = vmatpush3.bf16.msra.mxu0 %v268_v2 }
   0xc   :  { %252 = vmatprep.subr.bf16.mxu0 %v269_v3 }
   0xf   :  { %253 = vmatpush3.bf16.msra.mxu0 %v269_v3 }
  0x10   :  { %254 = vmatprep.subr.bf16.mxu0 %v270_v5 }
  0x13   :  { %255 = vmatpush3.bf16.msra.mxu0 %v270_v5 }
  0x14   :  { %256 = vmatprep.subr.bf16.mxu0 %v271_v6 }
  0x17   :  { %257 = vmatpush3.bf16.msra.mxu0 %v271_v6 }
  0x18   :  { %258 = vmatprep.subr.bf16.mxu0 %v272_v7 }
  0x1b   :  { %259 = vmatpush3.bf16.msra.mxu0 %v272_v7 }
  0x1c   :  { %260 = vmatprep.subr.bf16.mxu0 %v273_v8 }
  0x1f   :  { %261 = vmatpush3.bf16.msra.mxu0 %v273_v8 }
  0x22   :  { %263 = vmatmul.mubr.bf16.vlgmr.msra.gmra.mrb[0].mxu0 %v275_v9 }
  0xf5   :  { %v264_v10 = vpop.f32.mrb[0].mxu0 }
  0xf6   :  { %v141_v12 = vpop.f32.mrb[1].mxu0  ;;  %v180_v14 = vadd.f32 %v264_v10, %v216_v11 }
  0xf7   :  { %v265_v13 = vpop.f32.mrb[2].mxu0  ;;  %v178_v17 = vadd.f32 %v216_v11, %v141_v12 }
  0xf8   :  { %v181_v15 = vadd.f32 %v265_v13, %v216_v11  ;;  %v144_v16 = vpop.f32.mrb[3].mxu0 }
  0xf9   :  { %v179_v18 = vadd.f32 %v216_v11, %v144_v16 }
  0xfa   :  { %v233_v19 = vpack.c.bf16 %v181_v15, %v180_v14 }
  0xfb   :  { %v228_v20 = vpack.c.bf16 %v179_v18, %v178_v17 }
  0xfc   :  { %235 = vst [vmem:[%s338_s3 + $0x8] sm:$0xff] %v233_v19  }
  0xfd   :  { %229 = vst [vmem:[%s338_s3] sm:$0xff] %v228_v20  }

// kernel: _lambda_.21
= control target key start
LH: loop header
LB: loop body
LE: loop exit
PB: predicated region body
PF: predicated region fallthrough
CT: control target
= control target key end

     0   :  { %s901_s15 = smov 0   ;;  %s903_s16 = smov 0   ;;  %s1000_s0 = inlined_call_operand.vmem [shape: bf16[32,1152], index: 0, kind: input, shape index: {}]   ;;  %s1001_s1 = inlined_call_operand.vmem [shape: bf16[1152,128], index: 1, kind: input, shape index: {}]   ;;  %s1002_s2 = inlined_call_operand.vmem [shape: f32[1,128], index: 2, kind: input, shape index: {}]   ;;  %s1003_s3 = inlined_call_operand.vmem [shape: bf16[32,128], index: 3, kind: input, shape index: {}, may-alias: {3,4}]   ;;  %s1004_s4 = inlined_call_operand.vmem [shape: bf16[32,128], index: 4, kind: output, shape index: {}, may-alias: {3,4}]  }
   0x1   :  { %s905_s17 = smov 0   ;;  %s907_s18 = smov 0  }
   0x2   :  { %s909_s19 = smov 0  }
   0x3 LB: > { %s26_s20 = sadd.s32 1, %s869_s18  ;;  %p49_p1 = scmp.ne.s32.totalorder %s861_s16, %s857_s15  ;;  %s873_s19 = sphi %s909_s19, %s14_s19   ;;  %s869_s18 = sphi %s907_s18, %s1008_s18   ;;  %s865_s17 = sphi %s905_s17, %s1007_s17   ;;  %s861_s16 = sphi %s903_s16, %s1006_s16   ;;  %s857_s15 = sphi %s901_s15, %s1005_s15  }
   0x4   : > { %p27_p0 = scmp.ge.s32.totalorder %s26_s20, 9  ;;  %p50_p2 = scmp.eq.s32.totalorder %s873_s19, 0 }
   0x5   : > { %s42_s22 = sadd.s32 1, %s861_s16  ;;  %p702_p5 = scmp.ge.s32.totalorder %s873_s19, 9 }
   0x6   : > { %s1010_s20 = smov (%p27_p0, %s26_s20), 0  ;;  %p51_p3 = por %p50_p2, %p49_p1 }
   0x7   : > { %s38_s21 = ssub.s32 %s869_s18, %s1010_s20  ;;  %203 = sbr.rel (%p702_p5) target bundleno = 21 (0x15), region = 24 }
   0x8   : > { %p40_p4 = scmp.eq.s32.totalorder %s38_s21, 0 }
   0xa   : > { %s936_s23 = scalar_select %p40_p4, %s861_s16, %s42_s22  }
   0xe   : > { %206 = sbr.rel (!%p51_p3) target bundleno = 21 (0x15), region = 28  ;;  %s208_s24 = sand.u32 (%p51_p3), 1, %s861_s16  }
   0xf   : > { %s704_s25 = sshll.u32 (%p51_p3), %s869_s18, 2  ;;  %s703_s26 = sshll.u32 (%p51_p3), %s208_s24, 4 }
  0x10   : > { %s215_s29 = scalar_lea.vmem (%p51_p3), %s1000_s0, %s704_s25  ;;  %s210_s30 = scalar_lea.vmem (%p51_p3), [#allocation3], %s703_s26 }
  0x11   : > { %v231_v0 = vld [vmem:[%s215_s29] sm:$0xf] (%p51_p3)  ;;  %v233_v1 = vld [vmem:[%s215_s29 + $0x24] sm:$0xf] (%p51_p3)  ;;  %v235_v2 = vld [vmem:[%s215_s29 + $0x48] sm:$0xf] (%p51_p3) }
  0x12   : > { %232 = vst [vmem:[%s210_s30] sm:$0xf] (%p51_p3), %v231_v0  ;;  %234 = vst [vmem:[%s210_s30 + $0x4] sm:$0xf] (%p51_p3), %v233_v1  ;;  %v237_v3 = vld [vmem:[%s215_s29 + $0x6c] sm:$0xf] (%p51_p3) }
  0x13   : > { %236 = vst [vmem:[%s210_s30 + $0x8] sm:$0xf] (%p51_p3), %v235_v2  ;;  %238 = vst [vmem:[%s210_s30 + $0xc] sm:$0xf] (%p51_p3), %v237_v3 }
  0x15 PF: > { %p705_p6 = scmp.ge.s32.totalorder %s873_s19, 1  ;;  %p280_p7 = scmp.lt.s32.totalorder %s873_s19, 10 }
  0x17   : > { %p281_p8 = pnand %p705_p6, %p280_p7 }
  0x18   : > { %s287_s5 = sand.u32 (!%p281_p8), 1, %s857_s15   ;;  %s707_s6 = sshll.u32 (!%p281_p8), %s865_s17, 4 }
  0x19   : > { %284 = sbr.rel (%p281_p8) target bundleno = 306 (0x132), region = 73  ;;  %s948_s7 = sshll.u32 (!%p281_p8), %s287_s5, 4 }
  0x1a   : > { %p336_p9 = scmp.lt.s32.totalorder (!%p281_p8), %s707_s6, 143  ;;  %s289_s12 = scalar_lea.vmem (!%p281_p8), [#allocation3], %s948_s7 }
  0x1b   : > { %p709_p10 = scmp.ne.s32.totalorder (!%p281_p8), %s865_s17, 0 }
  0x20   : > { %s1012_s6 = smov (!%p336_p9, %s707_s6), 143  ;;  %369 = sbr.rel (%p709_p10) target bundleno = 39 (0x27), region = 81 }
  0x21   : > { %s708_s8 = sshll.u32 %s1012_s6, 2  ;;  %v875_v4 = vmov (!%p709_p10), 0.0  }
  0x22   : > { %s953_s11 = scalar_lea.vmem %s1001_s1, %s708_s8  ;;  %370 = vst [vmem:[#allocation2] sm:$0xff] (!%p709_p10), %v875_v4  ;;  %371 = vst [vmem:[#allocation2 + $0x8] sm:$0xff] (!%p709_p10), %v875_v4 }
  0x23   : > { %372 = vst [vmem:[#allocation2 + $0x10] sm:$0xff] (!%p709_p10), %v875_v4  ;;  %373 = vst [vmem:[#allocation2 + $0x18] sm:$0xff] (!%p709_p10), %v875_v4 }
  0x27 PF: > { %v825_v5 = vld [vmem:[%s953_s11] sm:$0xff]   ;;  %v826_v6 = vld [vmem:[%s953_s11 + $0x8] sm:$0xff]   ;;  %v827_v7 = vld [vmem:[%s953_s11 + $0x10] sm:$0xff]   ;;  %p720_p11 = scmp.ne.s32.totalorder %s865_s17, 8 }
  0x28   : > { %764 = vmatprep.subr.bf16.mxu0 %v825_v5  ;;  %v828_v8 = vld [vmem:[%s953_s11 + $0x18] sm:$0xff]   ;;  %v833_v9 = vld [vmem:[%s289_s12] sm:$0xff]   ;;  %v830_v11 = vld [vmem:[%s953_s11 + $0x28] sm:$0xff]  }
  0x29   : > { %765 = vmatpush3.bf16.msra.mxu0 %v825_v5  ;;  %780 = vmatprep.mubr.bf16.mxu0 %v833_v9  ;;  %v829_v10 = vld [vmem:[%s953_s11 + $0x20] sm:$0xff]   ;;  %v831_v12 = vld [vmem:[%s953_s11 + $0x30] sm:$0xff]   ;;  %v832_v13 = vld [vmem:[%s953_s11 + $0x38] sm:$0xff]  }
  0x2a   : > { %766 = vmatprep.subr.bf16.mxu0 %v826_v6  ;;  %v834_v14 = vld [vmem:[%s289_s12 + $0x8] sm:$0xff]   ;;  %v376_v15 = vld [vmem:[#allocation2 + $0x10] sm:$0xff]  ;;  %v374_v16 = vld [vmem:[#allocation2] sm:$0xff] }
  0x2b   : > { %v377_v18 = vld [vmem:[#allocation2 + $0x18] sm:$0xff]  ;;  %v375_v21 = vld [vmem:[#allocation2 + $0x8] sm:$0xff]  ;;  %v721_v29 = vld [vmem:[%s1002_s2] ss:$0 sm:$0xff] (!%p720_p11) }
  0x2c   : > { %v735_v32 = vld [vmem:[%s1003_s3] sm:$0xff] (!%p720_p11)   ;;  %v752_v39 = vld [vmem:[%s1003_s3 + $0x8] sm:$0xff] (!%p720_p11)  }
  0x2d   : > { %767 = vmatpush3.bf16.msra.mxu0 %v826_v6  ;;  %v736_v35 = vunpack.c.l.bf16 (!%p720_p11), %v735_v32  ;;  %v737_v36 = vunpack.c.h.bf16 (!%p720_p11), %v735_v32  ;;  %v740_v40 = vunpack.c.l.bf16 (!%p720_p11), %v752_v39  ;;  %v741_v41 = vunpack.c.h.bf16 (!%p720_p11), %v752_v39 }
  0x2e   : > { %768 = vmatprep.subr.bf16.mxu0 %v827_v7 }
  0x31   : > { %769 = vmatpush3.bf16.msra.mxu0 %v827_v7 }
  0x32   : > { %770 = vmatprep.subr.bf16.mxu0 %v828_v8 }
  0x35   : > { %771 = vmatpush3.bf16.msra.mxu0 %v828_v8 }
  0x36   : > { %772 = vmatprep.subr.bf16.mxu0 %v829_v10 }
  0x39   : > { %773 = vmatpush3.bf16.msra.mxu0 %v829_v10 }
  0x3a   : > { %774 = vmatprep.subr.bf16.mxu0 %v830_v11 }
  0x3d   : > { %775 = vmatpush3.bf16.msra.mxu0 %v830_v11 }
  0x3e   : > { %776 = vmatprep.subr.bf16.mxu0 %v831_v12 }
  0x41   : > { %777 = vmatpush3.bf16.msra.mxu0 %v831_v12 }
  0x42   : > { %778 = vmatprep.subr.bf16.mxu0 %v832_v13 }
  0x45   : > { %779 = vmatpush3.bf16.msra.mxu0 %v832_v13 }
  0x48   : > { %781 = vmatmul.mubr.bf16.vlgmr.msra.gmra.mrb[0].mxu0 %v834_v14 }
 0x11b   : > { %v782_v17 = vpop.f32.mrb[0].mxu0  ;;  %518 = sbr.rel (%p720_p11) target bundleno = 306 (0x132), region = 85 }
 0x11c   : > { %v509_v19 = vadd.f32 %v782_v17, %v376_v15  ;;  %v492_v20 = vpop.f32.mrb[1].mxu0 }
 0x11d   : > { %v507_v22 = vadd.f32 %v492_v20, %v374_v16  ;;  %v783_v23 = vpop.f32.mrb[2].mxu0 }
 0x11e   : > { %513 = vst [vmem:[#allocation2 + $0x10] sm:$0xff] %v509_v19  ;;  %v510_v24 = vadd.f32 %v783_v23, %v377_v18  ;;  %v495_v25 = vpop.f32.mrb[3].mxu0 }
 0x11f   : > { %511 = vst [vmem:[#allocation2] sm:$0xff] %v507_v22  ;;  %v508_v26 = vadd.f32 %v495_v25, %v375_v21 }
 0x120   : > { %514 = vst [vmem:[#allocation2 + $0x18] sm:$0xff] %v510_v24 }
 0x121   : > { %512 = vst [vmem:[#allocation2 + $0x8] sm:$0xff] %v508_v26 }
 0x125   : > { %v521_v33 = vld [vmem:[#allocation2 + $0x10] sm:$0xff] }
 0x126   : > { %v519_v27 = vld [vmem:[#allocation2] sm:$0xff]  ;;  %v532_v37 = vadd.f32 %v721_v29, %v521_v33 }
 0x127   : > { %v530_v30 = vadd.f32 %v721_v29, %v519_v27  ;;  %v522_v34 = vld [vmem:[#allocation2 + $0x18] sm:$0xff] }
 0x128   : > { %v520_v28 = vld [vmem:[#allocation2 + $0x8] sm:$0xff]  ;;  %v533_v38 = vadd.f32 %v721_v29, %v522_v34  ;;  %v544_v44 = vadd.f32 %v740_v40, %v532_v37 }
 0x129   : > { %v531_v31 = vadd.f32 %v721_v29, %v520_v28  ;;  %v542_v42 = vadd.f32 %v736_v35, %v530_v30 }
 0x12a   : > { %v545_v45 = vadd.f32 %v741_v41, %v533_v38  ;;  %v548_v48 = vmax.f32 %v544_v44, 0.0 }
 0x12b   : > { %v543_v43 = vadd.f32 %v737_v36, %v531_v31  ;;  %v546_v46 = vmax.f32 %v542_v42, 0.0 }
 0x12c   : > { %v549_v49 = vmax.f32 %v545_v45, 0.0 }
 0x12d   : > { %v547_v47 = vmax.f32 %v543_v43, 0.0 }
 0x12e   : > { %v750_v51 = vpack.c.bf16 %v549_v49, %v548_v48 }
 0x12f   : > { %v745_v50 = vpack.c.bf16 %v547_v47, %v546_v46 }
 0x130   : > { %753 = vst [vmem:[%s1004_s4 + $0x8] sm:$0xff] %v750_v51  }
 0x131   : > { %746 = vst [vmem:[%s1004_s4] sm:$0xff] %v745_v50  }
 0x132 PF: > { %s14_s19 = sadd.s32 1, %s873_s19   ;;  %s1005_s15 = smov %s861_s16 }
 0x133   : > { %p11_p12 = scmp.ge.s32.totalorder %s14_s19, 11   ;;  %s1006_s16 = smov %s936_s23 }
 0x134   : > { %s1007_s17 = smov %s869_s18  ;;  %s1008_s18 = smov %s1010_s20 }
 0x135   :  { %13 = sbr.rel (!%p11_p12) target bundleno = 3 (0x3), region = 129 }

// kernel: _lambda_.22
= control target key start
LH: loop header
LB: loop body
LE: loop exit
PB: predicated region body
PF: predicated region fallthrough
CT: control target
= control target key end

     0   :  { %s701_s12 = smov 0   ;;  %s703_s13 = smov 0   ;;  %s768_s0 = inlined_call_operand.vmem [shape: bf16[8,1152], index: 0, kind: input, shape index: {}]   ;;  %s769_s1 = inlined_call_operand.vmem [shape: bf16[1152,256], index: 1, kind: input, shape index: {}]   ;;  %s770_s2 = inlined_call_operand.vmem [shape: f32[1,256], index: 2, kind: input, shape index: {}]   ;;  %s771_s3 = inlined_call_operand.vmem [shape: bf16[8,256], index: 3, kind: output, shape index: {}]  }
   0x1   :  { %s705_s14 = smov 0  }
   0x2 LB: > { %s25_s15 = sadd.s32 1, %s673_s13  ;;  %p575_p0 = scmp.ge.s32.totalorder %s677_s14, 1  ;;  %s677_s14 = sphi %s705_s14, %s13_s14   ;;  %s673_s13 = sphi %s703_s13, %s773_s13   ;;  %s669_s12 = sphi %s701_s12, %s772_s12  }
   0x3   : > { %p26_p1 = scmp.ge.s32.totalorder %s25_s15, 9  ;;  %p192_p2 = scmp.lt.s32.totalorder %s677_s14, 10 }
   0x5   : > { %s775_s15 = smov (%p26_p1, %s25_s15), 0  ;;  %p193_p3 = pnand %p575_p0, %p192_p2 }
   0x6   : > { %p239_p4 = scmp.lt.s32.totalorder (!%p193_p3), %s669_s12, 8  ;;  %s577_s16 = sshll.u32 (!%p193_p3), %s669_s12, 4 }
   0x7   : > { %196 = sbr.rel (%p193_p3) target bundleno = 285 (0x11d), region = 32  ;;  %p247_p5 = scmp.lt.s32.totalorder (!%p193_p3), %s577_s16, 143 }
   0x8   : > { %p580_p6 = scmp.ne.s32.totalorder (!%p193_p3), %s669_s12, 0 }
   0xe   : > { %s240_s17 = scalar_select %p239_p4, %s669_s12, 8 }
   0xf   : > { %s777_s16 = smov (!%p247_p5, %s577_s16), 143  ;;  %276 = sbr.rel (%p580_p6) target bundleno = 22 (0x16), region = 36 }
  0x10   : > { %s576_s18 = sshll.u32 %s240_s17, 2  ;;  %s603_s22 = sshll.u32 %s777_s16, 3  ;;  %v679_v0 = vmov (!%p580_p6), 0.0  }
  0x11   : > { %s727_s21 = scalar_lea.vmem %s768_s0, %s576_s18  ;;  %s732_s25 = scalar_lea.vmem %s769_s1, %s603_s22  ;;  %277 = vst [vmem:[#allocation2] sm:$0xff] (!%p580_p6), %v679_v0  ;;  %278 = vst [vmem:[#allocation2 + $0x8] sm:$0xff] (!%p580_p6), %v679_v0 }
  0x16 PF: > { %v631_v1 = vld [vmem:[%s732_s25 + $0x4] ss:$8 sps:$4 sm:$0xff]   ;;  %v633_v2 = vld [vmem:[%s732_s25] ss:$8 sps:$4 sm:$0xff]   ;;  %v680_v3 = vmov 0   ;;  %p597_p7 = scmp.ne.s32.totalorder %s669_s12, 8 }
  0x17   : > { %410 = vmatprep.mubr.bf16.mxu0 %v680_v3  ;;  %378 = vmatprep.subr.bf16.mxu0 %v631_v1  ;;  %v634_v4 = vld [vmem:[%s732_s25 + $0x14] ss:$8 sps:$4 sm:$0xff]   ;;  %v636_v5 = vld [vmem:[%s732_s25 + $0x10] ss:$8 sps:$4 sm:$0xff]   ;;  %v637_v6 = vld [vmem:[%s732_s25 + $0x24] ss:$8 sps:$4 sm:$0xff]   ;;  %v431_v27 = vlaneseq (!%p597_p7) }
  0x18   : > { %379 = vmatpush1.bf16.msra.mxu0 %v633_v2  ;;  %v639_v7 = vld [vmem:[%s732_s25 + $0x20] ss:$8 sps:$4 sm:$0xff]   ;;  %v640_v8 = vld [vmem:[%s732_s25 + $0x34] ss:$8 sps:$4 sm:$0xff]   ;;  %v642_v9 = vld [vmem:[%s732_s25 + $0x30] ss:$8 sps:$4 sm:$0xff]  }
  0x19   : > { %380 = vmatprep.subr.bf16.mxu0 %v634_v4  ;;  %v643_v10 = vld [vmem:[%s732_s25 + $0x44] ss:$8 sps:$4 sm:$0xff]   ;;  %v645_v11 = vld [vmem:[%s732_s25 + $0x40] ss:$8 sps:$4 sm:$0xff]   ;;  %v646_v12 = vld [vmem:[%s732_s25 + $0x54] ss:$8 sps:$4 sm:$0xff]  }
  0x1a   : > { %v648_v13 = vld [vmem:[%s732_s25 + $0x50] ss:$8 sps:$4 sm:$0xff]   ;;  %v649_v14 = vld [vmem:[%s732_s25 + $0x64] ss:$8 sps:$4 sm:$0xff]   ;;  %v651_v15 = vld [vmem:[%s732_s25 + $0x60] ss:$8 sps:$4 sm:$0xff]  }
  0x1b   : > { %v652_v16 = vld [vmem:[%s732_s25 + $0x74] ss:$8 sps:$4 sm:$0xff]   ;;  %v654_v17 = vld [vmem:[%s732_s25 + $0x70] ss:$8 sps:$4 sm:$0xff]   ;;  %v281_v18 = vld [vmem:[%s727_s21] sm:$0xf] }
  0x1c   : > { %381 = vmatpush1.bf16.msra.mxu0 %v636_v5  ;;  %v279_v19 = vld [vmem:[#allocation2] sm:$0xff]  ;;  %v280_v20 = vld [vmem:[#allocation2 + $0x8] sm:$0xff]  ;;  %v432_v28 = vshrl.u32 (!%p597_p7), %v431_v27, 7 }
  0x1d   : > { %382 = vmatprep.subr.bf16.mxu0 %v637_v6  ;;  %v429_v29 = vld [vmem:[%s770_s2] sm:$0x3] (!%p597_p7) }
  0x1e   : > { %v433_v30 = vsub.s32 (!%p597_p7), 0, %v432_v28  ;;  %v437_v31 = vsub.s32 (!%p597_p7), 1, %v432_v28 }
  0x20   : > { %383 = vmatpush1.bf16.msra.mxu0 %v639_v7  ;;  %v434_v34 = vrot.slane (!%p597_p7), %v429_v29, %v433_v30  ;;  %v438_v35 = vrot.slane (!%p597_p7), %v429_v29, %v437_v31 }
  0x21   : > { %384 = vmatprep.subr.bf16.mxu0 %v640_v8 }
  0x24   : > { %385 = vmatpush1.bf16.msra.mxu0 %v642_v9 }
  0x25   : > { %386 = vmatprep.subr.bf16.mxu0 %v643_v10 }
  0x28   : > { %387 = vmatpush1.bf16.msra.mxu0 %v645_v11 }
  0x29   : > { %388 = vmatprep.subr.bf16.mxu0 %v646_v12 }
  0x2c   : > { %389 = vmatpush1.bf16.msra.mxu0 %v648_v13 }
  0x2d   : > { %390 = vmatprep.subr.bf16.mxu0 %v649_v14 }
  0x30   : > { %391 = vmatpush1.bf16.msra.mxu0 %v651_v15 }
  0x31   : > { %392 = vmatprep.subr.bf16.mxu0 %v652_v16 }
  0x34   : > { %393 = vmatpush1.bf16.msra.mxu0 %v654_v17 }
  0x37   : > { %411 = vmatmul.mubr.bf16.vlgmr.msra.gmra.mrb[0].mxu0 %v281_v18 }
 0x108   : > { %426 = sbr.rel (%p597_p7) target bundleno = 285 (0x11d), region = 40 }
 0x10a   : > { %v412_v21 = vpop.f32.mrb[0].mxu0 }
 0x10b   : > { %v419_v22 = vadd.f32 %v412_v21, %v279_v19  ;;  %v414_v23 = vpop.f32.mrb[1].mxu0 }
 0x10c   : > { %v420_v24 = vadd.f32 %v414_v23, %v280_v20  ;;  %v416_v25 = vpop.f32.mrb[2].mxu0 }
 0x10d   : > { %421 = vst [vmem:[#allocation2] sm:$0xff] %v419_v22  ;;  %v417_v26 = vpop.f32.mrb[3].mxu0 }
 0x10e   : > { %422 = vst [vmem:[#allocation2 + $0x8] sm:$0xff] %v420_v24 }
 0x114   : > { %v427_v32 = vld [vmem:[#allocation2] sm:$0xff] }
 0x115   : > { %v428_v33 = vld [vmem:[#allocation2 + $0x8] sm:$0xff]  ;;  %v441_v36 = vadd.f32 %v434_v34, %v427_v32 }
 0x116   : > { %v442_v37 = vadd.f32 %v438_v35, %v428_v33 }
 0x117   : > { %v443_v38 = vmax.f32 %v441_v36, 0.0 }
 0x118   : > { %v444_v39 = vmax.f32 %v442_v37, 0.0 }
 0x11a   : > { %v604_v40 = vpack.c.bf16 %v444_v39, %v443_v38 }
 0x11c   : > { %453 = vst [vmem:[%s771_s3] sm:$0xff] %v604_v40 }
 0x11d PF: > { %s13_s14 = sadd.s32 1, %s677_s14   ;;  %s772_s12 = smov %s673_s13 }
 0x11e   : > { %p10_p8 = scmp.ge.s32.totalorder %s13_s14, 11   ;;  %s773_s13 = smov %s775_s15 }
 0x120   :  { %12 = sbr.rel (!%p10_p8) target bundleno = 2 (0x2), region = 76 }

// kernel: _lambda_.23
= control target key start
LH: loop header
LB: loop body
LE: loop exit
PB: predicated region body
PF: predicated region fallthrough
CT: control target
= control target key end

     0   :  { %v240_v1 = vmov 0   ;;  %v172_v18 = vlaneseq  ;;  %s318_s1 = inlined_call_operand.vmem [shape: bf16[128,256], index: 1, kind: input, shape index: {}]   ;;  %s319_s0 = inlined_call_operand.vmem [shape: bf16[8,128], index: 0, kind: input, shape index: {}]   ;;  %s320_s2 = inlined_call_operand.vmem [shape: f32[1,256], index: 2, kind: input, shape index: {}]   ;;  %s321_s3 = inlined_call_operand.vmem [shape: bf16[8,256], index: 3, kind: output, shape index: {}]  }
   0x1   :  { %v216_v0 = vld [vmem:[%s318_s1 + $0x4] ss:$8 sps:$4 sm:$0xff]   ;;  %152 = vmatprep.mubr.bf16.mxu0 %v240_v1  ;;  %v218_v2 = vld [vmem:[%s318_s1] ss:$8 sps:$4 sm:$0xff]   ;;  %v219_v3 = vld [vmem:[%s318_s1 + $0x14] ss:$8 sps:$4 sm:$0xff]  }
   0x2   :  { %120 = vmatprep.subr.bf16.mxu0 %v216_v0  ;;  %v221_v4 = vld [vmem:[%s318_s1 + $0x10] ss:$8 sps:$4 sm:$0xff]   ;;  %v222_v5 = vld [vmem:[%s318_s1 + $0x24] ss:$8 sps:$4 sm:$0xff]   ;;  %v224_v6 = vld [vmem:[%s318_s1 + $0x20] ss:$8 sps:$4 sm:$0xff]  }
   0x3   :  { %121 = vmatpush1.bf16.msra.mxu0 %v218_v2  ;;  %v225_v7 = vld [vmem:[%s318_s1 + $0x34] ss:$8 sps:$4 sm:$0xff]   ;;  %v227_v8 = vld [vmem:[%s318_s1 + $0x30] ss:$8 sps:$4 sm:$0xff]   ;;  %v228_v9 = vld [vmem:[%s318_s1 + $0x44] ss:$8 sps:$4 sm:$0xff]  }
   0x4   :  { %122 = vmatprep.subr.bf16.mxu0 %v219_v3  ;;  %v230_v10 = vld [vmem:[%s318_s1 + $0x40] ss:$8 sps:$4 sm:$0xff]   ;;  %v231_v11 = vld [vmem:[%s318_s1 + $0x54] ss:$8 sps:$4 sm:$0xff]   ;;  %v233_v12 = vld [vmem:[%s318_s1 + $0x50] ss:$8 sps:$4 sm:$0xff]  }
   0x5   :  { %v234_v13 = vld [vmem:[%s318_s1 + $0x64] ss:$8 sps:$4 sm:$0xff]   ;;  %v236_v14 = vld [vmem:[%s318_s1 + $0x60] ss:$8 sps:$4 sm:$0xff]   ;;  %v237_v15 = vld [vmem:[%s318_s1 + $0x74] ss:$8 sps:$4 sm:$0xff]  }
   0x6   :  { %v239_v16 = vld [vmem:[%s318_s1 + $0x70] ss:$8 sps:$4 sm:$0xff]   ;;  %v23_v17 = vld [vmem:[%s319_s0] sm:$0xf]  ;;  %v173_v19 = vshrl.u32 %v172_v18, 7 }
   0x7   :  { %123 = vmatpush1.bf16.msra.mxu0 %v221_v4  ;;  %v170_v21 = vld [vmem:[%s320_s2] sm:$0x3] }
   0x8   :  { %124 = vmatprep.subr.bf16.mxu0 %v222_v5  ;;  %v174_v20 = vsub.s32 0, %v173_v19  ;;  %v178_v22 = vsub.s32 1, %v173_v19 }
   0xa   :  { %v175_v23 = vrot.slane %v170_v21, %v174_v20  ;;  %v179_v24 = vrot.slane %v170_v21, %v178_v22 }
   0xb   :  { %125 = vmatpush1.bf16.msra.mxu0 %v224_v6 }
   0xc   :  { %126 = vmatprep.subr.bf16.mxu0 %v225_v7 }
   0xf   :  { %127 = vmatpush1.bf16.msra.mxu0 %v227_v8 }
  0x10   :  { %128 = vmatprep.subr.bf16.mxu0 %v228_v9 }
  0x13   :  { %129 = vmatpush1.bf16.msra.mxu0 %v230_v10 }
  0x14   :  { %130 = vmatprep.subr.bf16.mxu0 %v231_v11 }
  0x17   :  { %131 = vmatpush1.bf16.msra.mxu0 %v233_v12 }
  0x18   :  { %132 = vmatprep.subr.bf16.mxu0 %v234_v13 }
  0x1b   :  { %133 = vmatpush1.bf16.msra.mxu0 %v236_v14 }
  0x1c   :  { %134 = vmatprep.subr.bf16.mxu0 %v237_v15 }
  0x1f   :  { %135 = vmatpush1.bf16.msra.mxu0 %v239_v16 }
  0x22   :  { %153 = vmatmul.mubr.bf16.vlgmr.msra.gmra.mrb[0].mxu0 %v23_v17 }
  0xf5   :  { %v154_v25 = vpop.f32.mrb[0].mxu0 }
  0xf6   :  { %v182_v26 = vadd.f32 %v175_v23, %v154_v25  ;;  %v156_v27 = vpop.f32.mrb[1].mxu0 }
  0xf7   :  { %v183_v28 = vadd.f32 %v179_v24, %v156_v27  ;;  %v158_v29 = vpop.f32.mrb[2].mxu0 }
  0xf8   :  { %v159_v30 = vpop.f32.mrb[3].mxu0 }
  0xf9   :  { %v214_v31 = vpack.c.bf16 %v183_v28, %v182_v26 }
  0xfb   :  { %192 = vst [vmem:[%s321_s3] sm:$0xff] %v214_v31 }

// kernel: _lambda_.24
= control target key start
LH: loop header
LB: loop body
LE: loop exit
PB: predicated region body
PF: predicated region fallthrough
CT: control target
= control target key end

     0   :  { %s946_s15 = smov 0   ;;  %s948_s16 = smov 0   ;;  %s1031_s0 = inlined_call_operand.vmem [shape: bf16[8,2304], index: 0, kind: input, shape index: {}]   ;;  %s1032_s1 = inlined_call_operand.vmem [shape: bf16[2304,256], index: 1, kind: input, shape index: {}]   ;;  %s1033_s2 = inlined_call_operand.vmem [shape: f32[1,256], index: 2, kind: input, shape index: {}]   ;;  %s1034_s3 = inlined_call_operand.vmem [shape: bf16[8,256], index: 3, kind: input, shape index: {}, may-alias: {3,4}]   ;;  %s1035_s4 = inlined_call_operand.vmem [shape: bf16[8,256], index: 4, kind: output, shape index: {}, may-alias: {3,4}]  }
   0x1   :  { %s950_s17 = smov 0  }
   0x2 LB: > { %s26_s18 = sadd.s32 1, %s914_s16  ;;  %p772_p0 = scmp.ge.s32.totalorder %s918_s17, 1  ;;  %s918_s17 = sphi %s950_s17, %s14_s17   ;;  %s914_s16 = sphi %s948_s16, %s1037_s16   ;;  %s910_s15 = sphi %s946_s15, %s1036_s15  }
   0x3   : > { %p27_p1 = scmp.ge.s32.totalorder %s26_s18, 9  ;;  %p236_p2 = scmp.lt.s32.totalorder %s918_s17, 10 }
   0x5   : > { %s1039_s18 = smov (%p27_p1, %s26_s18), 0  ;;  %p237_p3 = pnand %p772_p0, %p236_p2 }
   0x6   : > { %s773_s19 = sshll.u32 (!%p237_p3), %s910_s15, 1  ;;  %s775_s20 = sshll.u32 (!%p237_p3), %s910_s15, 5 }
   0x7   : > { %240 = sbr.rel (%p237_p3) target bundleno = 321 (0x141), region = 36  ;;  %p296_p4 = scmp.lt.s32.totalorder (!%p237_p3), %s773_s19, 17 }
   0x8   : > { %p305_p5 = scmp.lt.s32.totalorder (!%p237_p3), %s775_s20, 287  ;;  %p778_p6 = scmp.ne.s32.totalorder (!%p237_p3), %s910_s15, 0 }
   0xe   : > { %s1041_s19 = smov (!%p296_p4, %s773_s19), 17  ;;  %s1043_s20 = smov (!%p305_p5, %s775_s20), 287 }
   0xf   : > { %s774_s21 = sshll.u32 %s1041_s19, 2  ;;  %s819_s25 = sshll.u32 %s1043_s20, 3  ;;  %v920_v0 = vmov (!%p778_p6), 0.0  }
  0x10   : > { %s971_s24 = scalar_lea.vmem %s1031_s0, %s774_s21  ;;  %s976_s28 = scalar_lea.vmem %s1032_s1, %s819_s25  ;;  %344 = vst [vmem:[#allocation2] sm:$0xff] (!%p778_p6), %v920_v0  ;;  %345 = vst [vmem:[#allocation2 + $0x8] sm:$0xff] (!%p778_p6), %v920_v0 }
  0x11   : > { %343 = sbr.rel (%p778_p6) target bundleno = 24 (0x18), region = 40 }
  0x18 PF: > { %v846_v1 = vld [vmem:[%s976_s28 + $0x4] ss:$8 sps:$4 sm:$0xff]   ;;  %v848_v2 = vld [vmem:[%s976_s28] ss:$8 sps:$4 sm:$0xff]   ;;  %v849_v3 = vld [vmem:[%s976_s28 + $0x14] ss:$8 sps:$4 sm:$0xff]  }
  0x19   : > { %548 = vmatprep.subr.bf16.mxu0 %v846_v1  ;;  %v851_v4 = vld [vmem:[%s976_s28 + $0x10] ss:$8 sps:$4 sm:$0xff]   ;;  %v852_v5 = vld [vmem:[%s976_s28 + $0x24] ss:$8 sps:$4 sm:$0xff]   ;;  %v854_v6 = vld [vmem:[%s976_s28 + $0x20] ss:$8 sps:$4 sm:$0xff]  }
  0x1a   : > { %549 = vmatpush1.bf16.msra.mxu0 %v848_v2  ;;  %v855_v7 = vld [vmem:[%s976_s28 + $0x34] ss:$8 sps:$4 sm:$0xff]   ;;  %v857_v8 = vld [vmem:[%s976_s28 + $0x30] ss:$8 sps:$4 sm:$0xff]   ;;  %v858_v9 = vld [vmem:[%s976_s28 + $0x44] ss:$8 sps:$4 sm:$0xff]  }
  0x1b   : > { %550 = vmatprep.subr.bf16.mxu0 %v849_v3  ;;  %v860_v10 = vld [vmem:[%s976_s28 + $0x40] ss:$8 sps:$4 sm:$0xff]   ;;  %v861_v11 = vld [vmem:[%s976_s28 + $0x54] ss:$8 sps:$4 sm:$0xff]   ;;  %v863_v12 = vld [vmem:[%s976_s28 + $0x50] ss:$8 sps:$4 sm:$0xff]  }
  0x1c   : > { %v864_v13 = vld [vmem:[%s976_s28 + $0x64] ss:$8 sps:$4 sm:$0xff]   ;;  %v866_v16 = vld [vmem:[%s976_s28 + $0x60] ss:$8 sps:$4 sm:$0xff]   ;;  %v867_v17 = vld [vmem:[%s976_s28 + $0x74] ss:$8 sps:$4 sm:$0xff]  }
  0x1d   : > { %v348_v14 = vld [vmem:[%s971_s24] sm:$0xff]  ;;  %v869_v18 = vld [vmem:[%s976_s28 + $0x70] ss:$8 sps:$4 sm:$0xff]   ;;  %v873_v21 = vld [vmem:[%s976_s28 + $0x94] ss:$8 sps:$4 sm:$0xff]   ;;  %p813_p7 = scmp.ne.s32.totalorder %s910_s15, 8 }
  0x1e   : > { %551 = vmatpush1.bf16.msra.mxu0 %v851_v4  ;;  %v780_v15 = vcombine.high %v348_v14, %v348_v14  ;;  %v870_v19 = vld [vmem:[%s976_s28 + $0x84] ss:$8 sps:$4 sm:$0xff]   ;;  %v872_v20 = vld [vmem:[%s976_s28 + $0x80] ss:$8 sps:$4 sm:$0xff]   ;;  %v875_v22 = vld [vmem:[%s976_s28 + $0x90] ss:$8 sps:$4 sm:$0xff]   ;;  %v779_v35 = vcombine.low %v348_v14, %v348_v14  ;;  %v601_v44 = vlaneseq (!%p813_p7) }
  0x1f   : > { %552 = vmatprep.subr.bf16.mxu0 %v852_v5  ;;  %v876_v23 = vld [vmem:[%s976_s28 + $0xa4] ss:$8 sps:$4 sm:$0xff]   ;;  %v878_v24 = vld [vmem:[%s976_s28 + $0xa0] ss:$8 sps:$4 sm:$0xff]   ;;  %v879_v25 = vld [vmem:[%s976_s28 + $0xb4] ss:$8 sps:$4 sm:$0xff]  }
  0x20   : > { %580 = vmatprep.mubr.bf16.mxu0 %v780_v15  ;;  %v881_v26 = vld [vmem:[%s976_s28 + $0xb0] ss:$8 sps:$4 sm:$0xff]   ;;  %v882_v27 = vld [vmem:[%s976_s28 + $0xc4] ss:$8 sps:$4 sm:$0xff]   ;;  %v884_v28 = vld [vmem:[%s976_s28 + $0xc0] ss:$8 sps:$4 sm:$0xff]  }
  0x21   : > { %v885_v29 = vld [vmem:[%s976_s28 + $0xd4] ss:$8 sps:$4 sm:$0xff]   ;;  %v887_v30 = vld [vmem:[%s976_s28 + $0xd0] ss:$8 sps:$4 sm:$0xff]   ;;  %v888_v31 = vld [vmem:[%s976_s28 + $0xe4] ss:$8 sps:$4 sm:$0xff]  }
  0x22   : > { %553 = vmatpush1.bf16.msra.mxu0 %v854_v6  ;;  %v890_v32 = vld [vmem:[%s976_s28 + $0xe0] ss:$8 sps:$4 sm:$0xff]   ;;  %v891_v33 = vld [vmem:[%s976_s28 + $0xf4] ss:$8 sps:$4 sm:$0xff]   ;;  %v893_v34 = vld [vmem:[%s976_s28 + $0xf0] ss:$8 sps:$4 sm:$0xff]  }
  0x23   : > { %554 = vmatprep.subr.bf16.mxu0 %v855_v7  ;;  %v346_v36 = vld [vmem:[#allocation2] sm:$0xff]  ;;  %v347_v37 = vld [vmem:[#allocation2 + $0x8] sm:$0xff]  ;;  %v602_v45 = vshrl.u32 (!%p813_p7), %v601_v44, 7 }
  0x24   : > { %v599_v46 = vld [vmem:[%s1033_s2] sm:$0x3] (!%p813_p7) }
  0x25   : > { %v613_v47 = vld [vmem:[%s1034_s3] sm:$0xff] (!%p813_p7)  ;;  %v603_v48 = vsub.s32 (!%p813_p7), 0, %v602_v45  ;;  %v607_v49 = vsub.s32 (!%p813_p7), 1, %v602_v45 }
  0x26   : > { %555 = vmatpush1.bf16.msra.mxu0 %v857_v8  ;;  %v614_v54 = vunpack.c.l.bf16 (!%p813_p7), %v613_v47  ;;  %v615_v55 = vunpack.c.h.bf16 (!%p813_p7), %v613_v47 }
  0x27   : > { %556 = vmatprep.subr.bf16.mxu0 %v858_v9  ;;  %v604_v52 = vrot.slane (!%p813_p7), %v599_v46, %v603_v48  ;;  %v608_v53 = vrot.slane (!%p813_p7), %v599_v46, %v607_v49 }
  0x2a   : > { %557 = vmatpush1.bf16.msra.mxu0 %v860_v10 }
  0x2b   : > { %558 = vmatprep.subr.bf16.mxu0 %v861_v11 }
  0x2e   : > { %559 = vmatpush1.bf16.msra.mxu0 %v863_v12 }
  0x2f   : > { %560 = vmatprep.subr.bf16.mxu0 %v864_v13 }
  0x32   : > { %561 = vmatpush1.bf16.msra.mxu0 %v866_v16 }
  0x33   : > { %562 = vmatprep.subr.bf16.mxu0 %v867_v17 }
  0x36   : > { %563 = vmatpush1.bf16.msra.mxu0 %v869_v18 }
  0x37   : > { %564 = vmatprep.subr.bf16.mxu0 %v870_v19 }
  0x3a   : > { %565 = vmatpush1.bf16.msra.mxu0 %v872_v20 }
  0x3b   : > { %566 = vmatprep.subr.bf16.mxu0 %v873_v21 }
  0x3e   : > { %567 = vmatpush1.bf16.msra.mxu0 %v875_v22 }
  0x3f   : > { %568 = vmatprep.subr.bf16.mxu0 %v876_v23 }
  0x42   : > { %569 = vmatpush1.bf16.msra.mxu0 %v878_v24 }
  0x43   : > { %570 = vmatprep.subr.bf16.mxu0 %v879_v25 }
  0x46   : > { %571 = vmatpush1.bf16.msra.mxu0 %v881_v26 }
  0x47   : > { %572 = vmatprep.subr.bf16.mxu0 %v882_v27 }
  0x4a   : > { %573 = vmatpush1.bf16.msra.mxu0 %v884_v28 }
  0x4b   : > { %574 = vmatprep.subr.bf16.mxu0 %v885_v29 }
  0x4e   : > { %575 = vmatpush1.bf16.msra.mxu0 %v887_v30 }
  0x4f   : > { %576 = vmatprep.subr.bf16.mxu0 %v888_v31 }
  0x52   : > { %577 = vmatpush1.bf16.msra.mxu0 %v890_v32 }
  0x53   : > { %578 = vmatprep.subr.bf16.mxu0 %v891_v33 }
  0x56   : > { %579 = vmatpush1.bf16.msra.mxu0 %v893_v34 }
  0x59   : > { %581 = vmatmul.mubr.bf16.vlgmr.msra.gmra.mrb[0].mxu0 %v779_v35 }
 0x12a   : > { %596 = sbr.rel (%p813_p7) target bundleno = 321 (0x141), region = 44 }
 0x12c   : > { %v582_v38 = vpop.f32.mrb[0].mxu0 }
 0x12d   : > { %v589_v39 = vadd.f32 %v582_v38, %v346_v36  ;;  %v584_v40 = vpop.f32.mrb[1].mxu0 }
 0x12e   : > { %v590_v41 = vadd.f32 %v584_v40, %v347_v37  ;;  %v586_v42 = vpop.f32.mrb[2].mxu0 }
 0x12f   : > { %591 = vst [vmem:[#allocation2] sm:$0xff] %v589_v39  ;;  %v587_v43 = vpop.f32.mrb[3].mxu0 }
 0x130   : > { %592 = vst [vmem:[#allocation2 + $0x8] sm:$0xff] %v590_v41 }
 0x136   : > { %v597_v50 = vld [vmem:[#allocation2] sm:$0xff] }
 0x137   : > { %v598_v51 = vld [vmem:[#allocation2 + $0x8] sm:$0xff]  ;;  %v611_v56 = vadd.f32 %v604_v52, %v597_v50 }
 0x138   : > { %v612_v57 = vadd.f32 %v608_v53, %v598_v51 }
 0x139   : > { %v616_v58 = vadd.f32 %v614_v54, %v611_v56 }
 0x13a   : > { %v617_v59 = vadd.f32 %v615_v55, %v612_v57 }
 0x13b   : > { %v618_v60 = vmax.f32 %v616_v58, 0.0 }
 0x13c   : > { %v619_v61 = vmax.f32 %v617_v59, 0.0 }
 0x13e   : > { %v820_v62 = vpack.c.bf16 %v619_v61, %v618_v60 }
 0x140   : > { %628 = vst [vmem:[%s1035_s4] sm:$0xff] %v820_v62 }
 0x141 PF: > { %s14_s17 = sadd.s32 1, %s918_s17   ;;  %s1036_s15 = smov %s914_s16 }
 0x142   : > { %p11_p8 = scmp.ge.s32.totalorder %s14_s17, 11   ;;  %s1037_s16 = smov %s1039_s18 }
 0x144   :  { %13 = sbr.rel (!%p11_p8) target bundleno = 2 (0x2), region = 83 }

// kernel: _lambda_.25
= control target key start
LH: loop header
LB: loop body
LE: loop exit
PB: predicated region body
PF: predicated region fallthrough
CT: control target
= control target key end

     0   :  { %s1199_s12 = smov 0   ;;  %s1201_s13 = smov 0   ;;  %s1316_s0 = inlined_call_operand.vmem [shape: bf16[8,2304], index: 0, kind: input, shape index: {}]   ;;  %s1317_s1 = inlined_call_operand.vmem [shape: bf16[2304,512], index: 1, kind: input, shape index: {}]   ;;  %s1318_s2 = inlined_call_operand.vmem [shape: f32[1,512], index: 2, kind: input, shape index: {}]   ;;  %s1319_s3 = inlined_call_operand.vmem [shape: bf16[8,512], index: 3, kind: output, shape index: {}]  }
   0x1   :  { %s1203_s14 = smov 0  }
   0x2 LB: > { %s25_s15 = sadd.s32 1, %s1172_s13  ;;  %p948_p0 = scmp.ge.s32.totalorder %s1176_s14, 1  ;;  %s1176_s14 = sphi %s1203_s14, %s13_s14   ;;  %s1172_s13 = sphi %s1201_s13, %s1321_s13   ;;  %s1168_s12 = sphi %s1199_s12, %s1320_s12  }
   0x3   : > { %p26_p1 = scmp.ge.s32.totalorder %s25_s15, 9  ;;  %p194_p2 = scmp.lt.s32.totalorder %s1176_s14, 10 }
   0x5   : > { %s1323_s15 = smov (%p26_p1, %s25_s15), 0  ;;  %p195_p3 = pnand %p948_p0, %p194_p2 }
   0x6   : > { %s949_s16 = sshll.u32 (!%p195_p3), %s1168_s12, 1  ;;  %s951_s17 = sshll.u32 (!%p195_p3), %s1168_s12, 5 }
   0x7   : > { %198 = sbr.rel (%p195_p3) target bundleno = 319 (0x13f), region = 32  ;;  %p243_p4 = scmp.lt.s32.totalorder (!%p195_p3), %s949_s16, 17 }
   0x8   : > { %p252_p5 = scmp.lt.s32.totalorder (!%p195_p3), %s951_s17, 287  ;;  %p954_p6 = scmp.ne.s32.totalorder (!%p195_p3), %s1168_s12, 0 }
   0xe   : > { %s1325_s16 = smov (!%p243_p4, %s949_s16), 17  ;;  %s1327_s17 = smov (!%p252_p5, %s951_s17), 287 }
   0xf   : > { %s950_s18 = sshll.u32 %s1325_s16, 2  ;;  %s1028_s22 = sshll.u32 %s1327_s17, 4  ;;  %v1178_v0 = vmov (!%p954_p6), 0.0  }
  0x10   : > { %s1224_s21 = scalar_lea.vmem %s1316_s0, %s950_s18  ;;  %s1229_s25 = scalar_lea.vmem %s1317_s1, %s1028_s22  ;;  %281 = vst [vmem:[#allocation2] sm:$0xff] (!%p954_p6), %v1178_v0  ;;  %282 = vst [vmem:[#allocation2 + $0x8] sm:$0xff] (!%p954_p6), %v1178_v0 }
  0x11   : > { %280 = sbr.rel (%p954_p6) target bundleno = 24 (0x18), region = 36  ;;  %283 = vst [vmem:[#allocation2 + $0x10] sm:$0xff] (!%p954_p6), %v1178_v0  ;;  %284 = vst [vmem:[#allocation2 + $0x18] sm:$0xff] (!%p954_p6), %v1178_v0 }
  0x18 PF: > { %v1056_v1 = vld [vmem:[%s1229_s25 + $0x4] ss:$16 sps:$4 sm:$0xff]   ;;  %v1058_v2 = vld [vmem:[%s1229_s25 + $0xc] ss:$16 sps:$4 sm:$0xff]   ;;  %v1060_v3 = vld [vmem:[%s1229_s25] ss:$16 sps:$4 sm:$0xff]  }
  0x19   : > { %681 = vmatprep.subr.bf16.mxu0 %v1056_v1  ;;  %v1061_v4 = vld [vmem:[%s1229_s25 + $0x8] ss:$16 sps:$4 sm:$0xff]   ;;  %722 = vmatprep.subr.bf16.mxu1 %v1058_v2  ;;  %v1062_v5 = vld [vmem:[%s1229_s25 + $0x24] ss:$16 sps:$4 sm:$0xff]   ;;  %v1064_v6 = vld [vmem:[%s1229_s25 + $0x2c] ss:$16 sps:$4 sm:$0xff]  }
  0x1a   : > { %682 = vmatpush1.bf16.msra.mxu0 %v1060_v3  ;;  %723 = vmatpush1.bf16.msra.mxu1 %v1061_v4  ;;  %v1066_v7 = vld [vmem:[%s1229_s25 + $0x20] ss:$16 sps:$4 sm:$0xff]   ;;  %v1067_v8 = vld [vmem:[%s1229_s25 + $0x28] ss:$16 sps:$4 sm:$0xff]   ;;  %v1068_v9 = vld [vmem:[%s1229_s25 + $0x44] ss:$16 sps:$4 sm:$0xff]  }
  0x1b   : > { %683 = vmatprep.subr.bf16.mxu0 %v1062_v5  ;;  %724 = vmatprep.subr.bf16.mxu1 %v1064_v6  ;;  %v1070_v10 = vld [vmem:[%s1229_s25 + $0x4c] ss:$16 sps:$4 sm:$0xff]   ;;  %v1072_v11 = vld [vmem:[%s1229_s25 + $0x40] ss:$16 sps:$4 sm:$0xff]   ;;  %v1073_v12 = vld [vmem:[%s1229_s25 + $0x48] ss:$16 sps:$4 sm:$0xff]  }
  0x1c   : > { %v1074_v13 = vld [vmem:[%s1229_s25 + $0x64] ss:$16 sps:$4 sm:$0xff]   ;;  %v1076_v14 = vld [vmem:[%s1229_s25 + $0x6c] ss:$16 sps:$4 sm:$0xff]   ;;  %v1078_v15 = vld [vmem:[%s1229_s25 + $0x60] ss:$16 sps:$4 sm:$0xff]  }
  0x1d   : > { %v1079_v16 = vld [vmem:[%s1229_s25 + $0x68] ss:$16 sps:$4 sm:$0xff]   ;;  %v1080_v17 = vld [vmem:[%s1229_s25 + $0x84] ss:$16 sps:$4 sm:$0xff]   ;;  %v1082_v18 = vld [vmem:[%s1229_s25 + $0x8c] ss:$16 sps:$4 sm:$0xff]  }
  0x1e   : > { %684 = vmatpush1.bf16.msra.mxu0 %v1066_v7  ;;  %725 = vmatpush1.bf16.msra.mxu1 %v1067_v8  ;;  %v1084_v19 = vld [vmem:[%s1229_s25 + $0x80] ss:$16 sps:$4 sm:$0xff]   ;;  %v1085_v20 = vld [vmem:[%s1229_s25 + $0x88] ss:$16 sps:$4 sm:$0xff]   ;;  %v1086_v21 = vld [vmem:[%s1229_s25 + $0xa4] ss:$16 sps:$4 sm:$0xff]  }
  0x1f   : > { %685 = vmatprep.subr.bf16.mxu0 %v1068_v9  ;;  %726 = vmatprep.subr.bf16.mxu1 %v1070_v10  ;;  %v1088_v22 = vld [vmem:[%s1229_s25 + $0xac] ss:$16 sps:$4 sm:$0xff]   ;;  %v1090_v23 = vld [vmem:[%s1229_s25 + $0xa0] ss:$16 sps:$4 sm:$0xff]   ;;  %v1091_v24 = vld [vmem:[%s1229_s25 + $0xa8] ss:$16 sps:$4 sm:$0xff]  }
  0x20   : > { %v1092_v25 = vld [vmem:[%s1229_s25 + $0xc4] ss:$16 sps:$4 sm:$0xff]   ;;  %v1094_v26 = vld [vmem:[%s1229_s25 + $0xcc] ss:$16 sps:$4 sm:$0xff]   ;;  %v1096_v27 = vld [vmem:[%s1229_s25 + $0xc0] ss:$16 sps:$4 sm:$0xff]  }
  0x21   : > { %v1097_v28 = vld [vmem:[%s1229_s25 + $0xc8] ss:$16 sps:$4 sm:$0xff]   ;;  %v1098_v29 = vld [vmem:[%s1229_s25 + $0xe4] ss:$16 sps:$4 sm:$0xff]   ;;  %v1100_v30 = vld [vmem:[%s1229_s25 + $0xec] ss:$16 sps:$4 sm:$0xff]  }
  0x22   : > { %686 = vmatpush1.bf16.msra.mxu0 %v1072_v11  ;;  %727 = vmatpush1.bf16.msra.mxu1 %v1073_v12  ;;  %v1102_v31 = vld [vmem:[%s1229_s25 + $0xe0] ss:$16 sps:$4 sm:$0xff]   ;;  %v1103_v32 = vld [vmem:[%s1229_s25 + $0xe8] ss:$16 sps:$4 sm:$0xff]   ;;  %v1104_v33 = vld [vmem:[%s1229_s25 + $0x104] ss:$16 sps:$4 sm:$0xff]  }
  0x23   : > { %687 = vmatprep.subr.bf16.mxu0 %v1074_v13  ;;  %728 = vmatprep.subr.bf16.mxu1 %v1076_v14  ;;  %v1106_v34 = vld [vmem:[%s1229_s25 + $0x10c] ss:$16 sps:$4 sm:$0xff]   ;;  %v1108_v35 = vld [vmem:[%s1229_s25 + $0x100] ss:$16 sps:$4 sm:$0xff]   ;;  %v1109_v36 = vld [vmem:[%s1229_s25 + $0x108] ss:$16 sps:$4 sm:$0xff]  }
  0x24   : > { %v1110_v37 = vld [vmem:[%s1229_s25 + $0x124] ss:$16 sps:$4 sm:$0xff]   ;;  %v1112_v38 = vld [vmem:[%s1229_s25 + $0x12c] ss:$16 sps:$4 sm:$0xff]   ;;  %v1114_v39 = vld [vmem:[%s1229_s25 + $0x120] ss:$16 sps:$4 sm:$0xff]  }
  0x25   : > { %v1115_v40 = vld [vmem:[%s1229_s25 + $0x128] ss:$16 sps:$4 sm:$0xff]   ;;  %v1116_v41 = vld [vmem:[%s1229_s25 + $0x144] ss:$16 sps:$4 sm:$0xff]   ;;  %v1118_v42 = vld [vmem:[%s1229_s25 + $0x14c] ss:$16 sps:$4 sm:$0xff]  }
  0x26   : > { %688 = vmatpush1.bf16.msra.mxu0 %v1078_v15  ;;  %729 = vmatpush1.bf16.msra.mxu1 %v1079_v16  ;;  %v1120_v43 = vld [vmem:[%s1229_s25 + $0x140] ss:$16 sps:$4 sm:$0xff]   ;;  %v1121_v44 = vld [vmem:[%s1229_s25 + $0x148] ss:$16 sps:$4 sm:$0xff]   ;;  %v1122_v45 = vld [vmem:[%s1229_s25 + $0x164] ss:$16 sps:$4 sm:$0xff]  }
  0x27   : > { %689 = vmatprep.subr.bf16.mxu0 %v1080_v17  ;;  %730 = vmatprep.subr.bf16.mxu1 %v1082_v18  ;;  %v1124_v46 = vld [vmem:[%s1229_s25 + $0x16c] ss:$16 sps:$4 sm:$0xff]   ;;  %v289_v47 = vld [vmem:[%s1224_s21] sm:$0xff]  ;;  %v1127_v50 = vld [vmem:[%s1229_s25 + $0x168] ss:$16 sps:$4 sm:$0xff]   ;;  %p1021_p7 = scmp.ne.s32.totalorder %s1168_s12, 8 }
  0x28   : > { %v956_v48 = vcombine.high %v289_v47, %v289_v47  ;;  %v1126_v49 = vld [vmem:[%s1229_s25 + $0x160] ss:$16 sps:$4 sm:$0xff]   ;;  %v1128_v51 = vld [vmem:[%s1229_s25 + $0x184] ss:$16 sps:$4 sm:$0xff]   ;;  %v1130_v52 = vld [vmem:[%s1229_s25 + $0x18c] ss:$16 sps:$4 sm:$0xff]   ;;  %v955_v3 = vcombine.low %v289_v47, %v289_v47 }
  0x29   : > { %v1132_v53 = vld [vmem:[%s1229_s25 + $0x180] ss:$16 sps:$4 sm:$0xff]   ;;  %v1133_v54 = vld [vmem:[%s1229_s25 + $0x188] ss:$16 sps:$4 sm:$0xff]   ;;  %v1134_v55 = vld [vmem:[%s1229_s25 + $0x1a4] ss:$16 sps:$4 sm:$0xff]  }
  0x2a   : > { %690 = vmatpush1.bf16.msra.mxu0 %v1084_v19  ;;  %731 = vmatpush1.bf16.msra.mxu1 %v1085_v20  ;;  %v1136_v56 = vld [vmem:[%s1229_s25 + $0x1ac] ss:$16 sps:$4 sm:$0xff]   ;;  %v1138_v57 = vld [vmem:[%s1229_s25 + $0x1a0] ss:$16 sps:$4 sm:$0xff]   ;;  %v1139_v58 = vld [vmem:[%s1229_s25 + $0x1a8] ss:$16 sps:$4 sm:$0xff]   ;;  %v781_v20 = vlaneseq (!%p1021_p7) }
  0x2b   : > { %691 = vmatprep.subr.bf16.mxu0 %v1086_v21  ;;  %732 = vmatprep.subr.bf16.mxu1 %v1088_v22  ;;  %v1140_v59 = vld [vmem:[%s1229_s25 + $0x1c4] ss:$16 sps:$4 sm:$0xff]   ;;  %v1142_v60 = vld [vmem:[%s1229_s25 + $0x1cc] ss:$16 sps:$4 sm:$0xff]   ;;  %v1144_v61 = vld [vmem:[%s1229_s25 + $0x1c0] ss:$16 sps:$4 sm:$0xff]  }
  0x2c   : > { %713 = vmatprep.mubr.bf16.mxu0 %v956_v48  ;;  %754 = vmatprep.mubr.bf16.mxu1 %v956_v48  ;;  %v1145_v62 = vld [vmem:[%s1229_s25 + $0x1c8] ss:$16 sps:$4 sm:$0xff]   ;;  %v1146_v63 = vld [vmem:[%s1229_s25 + $0x1e4] ss:$16 sps:$4 sm:$0xff]   ;;  %v1148_v0 = vld [vmem:[%s1229_s25 + $0x1ec] ss:$16 sps:$4 sm:$0xff]  }
  0x2d   : > { %v1150_v1 = vld [vmem:[%s1229_s25 + $0x1e0] ss:$16 sps:$4 sm:$0xff]   ;;  %v1151_v2 = vld [vmem:[%s1229_s25 + $0x1e8] ss:$16 sps:$4 sm:$0xff]   ;;  %v782_v21 = vshrl.u32 (!%p1021_p7), %v781_v20, 7 }
  0x2e   : > { %692 = vmatpush1.bf16.msra.mxu0 %v1090_v23  ;;  %733 = vmatpush1.bf16.msra.mxu1 %v1091_v24  ;;  %v285_v4 = vld [vmem:[#allocation2] sm:$0xff]  ;;  %v287_v5 = vld [vmem:[#allocation2 + $0x10] sm:$0xff]  ;;  %v286_v6 = vld [vmem:[#allocation2 + $0x8] sm:$0xff] }
  0x2f   : > { %693 = vmatprep.subr.bf16.mxu0 %v1092_v25  ;;  %734 = vmatprep.subr.bf16.mxu1 %v1094_v26  ;;  %v288_v7 = vld [vmem:[#allocation2 + $0x18] sm:$0xff]  ;;  %v779_v22 = vld [vmem:[%s1318_s2] sm:$0xf] (!%p1021_p7)  ;;  %v783_v24 = vsub.s32 (!%p1021_p7), 0, %v782_v21  ;;  %v787_v25 = vsub.s32 (!%p1021_p7), 1, %v782_v21  ;;  %v791_v26 = vsub.s32 (!%p1021_p7), 2, %v782_v21 }
  0x32   : > { %694 = vmatpush1.bf16.msra.mxu0 %v1096_v27  ;;  %735 = vmatpush1.bf16.msra.mxu1 %v1097_v28  ;;  %v795_v27 = vsub.s32 (!%p1021_p7), 3, %v782_v21 }
  0x33   : > { %695 = vmatprep.subr.bf16.mxu0 %v1098_v29  ;;  %736 = vmatprep.subr.bf16.mxu1 %v1100_v30 }
  0x36   : > { %696 = vmatpush1.bf16.msra.mxu0 %v1102_v31  ;;  %737 = vmatpush1.bf16.msra.mxu1 %v1103_v32  ;;  %v784_v31 = vrot.slane (!%p1021_p7), %v779_v22, %v783_v24  ;;  %v788_v32 = vrot.slane (!%p1021_p7), %v779_v22, %v787_v25 }
  0x37   : > { %697 = vmatprep.subr.bf16.mxu0 %v1104_v33  ;;  %738 = vmatprep.subr.bf16.mxu1 %v1106_v34  ;;  %v792_v33 = vrot.slane (!%p1021_p7), %v779_v22, %v791_v26  ;;  %v796_v34 = vrot.slane (!%p1021_p7), %v779_v22, %v795_v27 }
  0x3a   : > { %698 = vmatpush1.bf16.msra.mxu0 %v1108_v35  ;;  %739 = vmatpush1.bf16.msra.mxu1 %v1109_v36 }
  0x3b   : > { %699 = vmatprep.subr.bf16.mxu0 %v1110_v37  ;;  %740 = vmatprep.subr.bf16.mxu1 %v1112_v38 }
  0x3e   : > { %700 = vmatpush1.bf16.msra.mxu0 %v1114_v39  ;;  %741 = vmatpush1.bf16.msra.mxu1 %v1115_v40 }
  0x3f   : > { %701 = vmatprep.subr.bf16.mxu0 %v1116_v41  ;;  %742 = vmatprep.subr.bf16.mxu1 %v1118_v42 }
  0x42   : > { %702 = vmatpush1.bf16.msra.mxu0 %v1120_v43  ;;  %743 = vmatpush1.bf16.msra.mxu1 %v1121_v44 }
  0x43   : > { %703 = vmatprep.subr.bf16.mxu0 %v1122_v45  ;;  %744 = vmatprep.subr.bf16.mxu1 %v1124_v46 }
  0x46   : > { %704 = vmatpush1.bf16.msra.mxu0 %v1126_v49  ;;  %745 = vmatpush1.bf16.msra.mxu1 %v1127_v50 }
  0x47   : > { %705 = vmatprep.subr.bf16.mxu0 %v1128_v51  ;;  %746 = vmatprep.subr.bf16.mxu1 %v1130_v52 }
  0x4a   : > { %706 = vmatpush1.bf16.msra.mxu0 %v1132_v53  ;;  %747 = vmatpush1.bf16.msra.mxu1 %v1133_v54 }
  0x4b   : > { %707 = vmatprep.subr.bf16.mxu0 %v1134_v55  ;;  %748 = vmatprep.subr.bf16.mxu1 %v1136_v56 }
  0x4e   : > { %708 = vmatpush1.bf16.msra.mxu0 %v1138_v57  ;;  %749 = vmatpush1.bf16.msra.mxu1 %v1139_v58 }
  0x4f   : > { %709 = vmatprep.subr.bf16.mxu0 %v1140_v59  ;;  %750 = vmatprep.subr.bf16.mxu1 %v1142_v60 }
  0x52   : > { %710 = vmatpush1.bf16.msra.mxu0 %v1144_v61  ;;  %751 = vmatpush1.bf16.msra.mxu1 %v1145_v62 }
  0x53   : > { %711 = vmatprep.subr.bf16.mxu0 %v1146_v63  ;;  %752 = vmatprep.subr.bf16.mxu1 %v1148_v0 }
  0x56   : > { %712 = vmatpush1.bf16.msra.mxu0 %v1150_v1  ;;  %753 = vmatpush1.bf16.msra.mxu1 %v1151_v2 }
  0x59   : > { %714 = vmatmul.mubr.bf16.vlgmr.msra.gmra.mrb[0].mxu0 %v955_v3  ;;  %755 = vmatmul.mubr.bf16.vlgmr.msra.gmra.mrb[0].mxu1 %v955_v3 }
 0x12a   : > { %774 = sbr.rel (%p1021_p7) target bundleno = 319 (0x13f), region = 40 }
 0x12c   : > { %v715_v8 = vpop.f32.mrb[0].mxu0  ;;  %v756_v9 = vpop.f32.mrb[0].mxu1 }
 0x12d   : > { %v763_v10 = vadd.f32 %v715_v8, %v285_v4  ;;  %v765_v11 = vadd.f32 %v756_v9, %v287_v5  ;;  %v717_v12 = vpop.f32.mrb[1].mxu0  ;;  %v758_v13 = vpop.f32.mrb[1].mxu1 }
 0x12e   : > { %v764_v14 = vadd.f32 %v717_v12, %v286_v6  ;;  %v766_v15 = vadd.f32 %v758_v13, %v288_v7  ;;  %v719_v16 = vpop.f32.mrb[2].mxu0  ;;  %v760_v17 = vpop.f32.mrb[2].mxu1 }
 0x12f   : > { %767 = vst [vmem:[#allocation2] sm:$0xff] %v763_v10  ;;  %769 = vst [vmem:[#allocation2 + $0x10] sm:$0xff] %v765_v11  ;;  %v720_v18 = vpop.f32.mrb[3].mxu0  ;;  %v761_v19 = vpop.f32.mrb[3].mxu1 }
 0x130   : > { %768 = vst [vmem:[#allocation2 + $0x8] sm:$0xff] %v764_v14  ;;  %770 = vst [vmem:[#allocation2 + $0x18] sm:$0xff] %v766_v15 }
 0x136   : > { %v775_v23 = vld [vmem:[#allocation2] sm:$0xff]  ;;  %v777_v29 = vld [vmem:[#allocation2 + $0x10] sm:$0xff] }
 0x137   : > { %v776_v28 = vld [vmem:[#allocation2 + $0x8] sm:$0xff]  ;;  %v778_v30 = vld [vmem:[#allocation2 + $0x18] sm:$0xff]  ;;  %v801_v35 = vadd.f32 %v784_v31, %v775_v23  ;;  %v803_v37 = vadd.f32 %v792_v33, %v777_v29 }
 0x138   : > { %v802_v36 = vadd.f32 %v788_v32, %v776_v28  ;;  %v804_v38 = vadd.f32 %v796_v34, %v778_v30 }
 0x139   : > { %v805_v39 = vmax.f32 %v801_v35, 0.0  ;;  %v807_v41 = vmax.f32 %v803_v37, 0.0 }
 0x13a   : > { %v806_v40 = vmax.f32 %v802_v36, 0.0  ;;  %v808_v42 = vmax.f32 %v804_v38, 0.0 }
 0x13c   : > { %v1029_v43 = vpack.c.bf16 %v806_v40, %v805_v39  ;;  %v1030_v44 = vpack.c.bf16 %v808_v42, %v807_v41 }
 0x13e   : > { %825 = vst [vmem:[%s1319_s3] sm:$0xff] %v1029_v43  ;;  %826 = vst [vmem:[%s1319_s3 + $0x8] sm:$0xff] %v1030_v44 }
 0x13f PF: > { %s13_s14 = sadd.s32 1, %s1176_s14   ;;  %s1320_s12 = smov %s1172_s13 }
 0x140   : > { %p10_p8 = scmp.ge.s32.totalorder %s13_s14, 11   ;;  %s1321_s13 = smov %s1323_s15 }
 0x142   :  { %12 = sbr.rel (!%p10_p8) target bundleno = 2 (0x2), region = 76 }

// kernel: _lambda_.26
= control target key start
LH: loop header
LB: loop body
LE: loop exit
PB: predicated region body
PF: predicated region fallthrough
CT: control target
= control target key end

     0   :  { %s955_s1 = inlined_call_operand.vmem [shape: bf16[256,512], index: 1, kind: input, shape index: {}]   ;;  %s956_s0 = inlined_call_operand.vmem [shape: bf16[8,256], index: 0, kind: input, shape index: {}]   ;;  %s957_s2 = inlined_call_operand.vmem [shape: f32[1,512], index: 2, kind: input, shape index: {}]   ;;  %s958_s3 = inlined_call_operand.vmem [shape: bf16[8,512], index: 3, kind: output, shape index: {}]  }
   0x1   :  { %v633_v0 = vld [vmem:[%s955_s1 + $0x4] ss:$16 sps:$4 sm:$0xff]   ;;  %v635_v1 = vld [vmem:[%s955_s1 + $0xc] ss:$16 sps:$4 sm:$0xff]   ;;  %v637_v2 = vld [vmem:[%s955_s1] ss:$16 sps:$4 sm:$0xff]  }
   0x2   :  { %418 = vmatprep.subr.bf16.mxu0 %v633_v0  ;;  %v638_v3 = vld [vmem:[%s955_s1 + $0x8] ss:$16 sps:$4 sm:$0xff]   ;;  %459 = vmatprep.subr.bf16.mxu1 %v635_v1  ;;  %v639_v4 = vld [vmem:[%s955_s1 + $0x24] ss:$16 sps:$4 sm:$0xff]   ;;  %v641_v5 = vld [vmem:[%s955_s1 + $0x2c] ss:$16 sps:$4 sm:$0xff]  }
   0x3   :  { %419 = vmatpush1.bf16.msra.mxu0 %v637_v2  ;;  %460 = vmatpush1.bf16.msra.mxu1 %v638_v3  ;;  %v643_v6 = vld [vmem:[%s955_s1 + $0x20] ss:$16 sps:$4 sm:$0xff]   ;;  %v644_v7 = vld [vmem:[%s955_s1 + $0x28] ss:$16 sps:$4 sm:$0xff]   ;;  %v645_v8 = vld [vmem:[%s955_s1 + $0x44] ss:$16 sps:$4 sm:$0xff]   ;;  %v517_v3 = vlaneseq }
   0x4   :  { %420 = vmatprep.subr.bf16.mxu0 %v639_v4  ;;  %461 = vmatprep.subr.bf16.mxu1 %v641_v5  ;;  %v647_v9 = vld [vmem:[%s955_s1 + $0x4c] ss:$16 sps:$4 sm:$0xff]   ;;  %v649_v10 = vld [vmem:[%s955_s1 + $0x40] ss:$16 sps:$4 sm:$0xff]   ;;  %v650_v11 = vld [vmem:[%s955_s1 + $0x48] ss:$16 sps:$4 sm:$0xff]  }
   0x5   :  { %v651_v12 = vld [vmem:[%s955_s1 + $0x64] ss:$16 sps:$4 sm:$0xff]   ;;  %v653_v13 = vld [vmem:[%s955_s1 + $0x6c] ss:$16 sps:$4 sm:$0xff]   ;;  %v655_v14 = vld [vmem:[%s955_s1 + $0x60] ss:$16 sps:$4 sm:$0xff]  }
   0x6   :  { %v656_v15 = vld [vmem:[%s955_s1 + $0x68] ss:$16 sps:$4 sm:$0xff]   ;;  %v657_v16 = vld [vmem:[%s955_s1 + $0x84] ss:$16 sps:$4 sm:$0xff]   ;;  %v659_v17 = vld [vmem:[%s955_s1 + $0x8c] ss:$16 sps:$4 sm:$0xff]  }
   0x7   :  { %421 = vmatpush1.bf16.msra.mxu0 %v643_v6  ;;  %462 = vmatpush1.bf16.msra.mxu1 %v644_v7  ;;  %v661_v18 = vld [vmem:[%s955_s1 + $0x80] ss:$16 sps:$4 sm:$0xff]   ;;  %v662_v19 = vld [vmem:[%s955_s1 + $0x88] ss:$16 sps:$4 sm:$0xff]   ;;  %v663_v20 = vld [vmem:[%s955_s1 + $0xa4] ss:$16 sps:$4 sm:$0xff]  }
   0x8   :  { %422 = vmatprep.subr.bf16.mxu0 %v645_v8  ;;  %463 = vmatprep.subr.bf16.mxu1 %v647_v9  ;;  %v665_v21 = vld [vmem:[%s955_s1 + $0xac] ss:$16 sps:$4 sm:$0xff]   ;;  %v667_v22 = vld [vmem:[%s955_s1 + $0xa0] ss:$16 sps:$4 sm:$0xff]   ;;  %v668_v23 = vld [vmem:[%s955_s1 + $0xa8] ss:$16 sps:$4 sm:$0xff]  }
   0x9   :  { %v669_v24 = vld [vmem:[%s955_s1 + $0xc4] ss:$16 sps:$4 sm:$0xff]   ;;  %v671_v25 = vld [vmem:[%s955_s1 + $0xcc] ss:$16 sps:$4 sm:$0xff]   ;;  %v673_v26 = vld [vmem:[%s955_s1 + $0xc0] ss:$16 sps:$4 sm:$0xff]  }
   0xa   :  { %v674_v27 = vld [vmem:[%s955_s1 + $0xc8] ss:$16 sps:$4 sm:$0xff]   ;;  %v675_v28 = vld [vmem:[%s955_s1 + $0xe4] ss:$16 sps:$4 sm:$0xff]   ;;  %v677_v29 = vld [vmem:[%s955_s1 + $0xec] ss:$16 sps:$4 sm:$0xff]  }
   0xb   :  { %423 = vmatpush1.bf16.msra.mxu0 %v649_v10  ;;  %464 = vmatpush1.bf16.msra.mxu1 %v650_v11  ;;  %v679_v30 = vld [vmem:[%s955_s1 + $0xe0] ss:$16 sps:$4 sm:$0xff]   ;;  %v680_v31 = vld [vmem:[%s955_s1 + $0xe8] ss:$16 sps:$4 sm:$0xff]   ;;  %v681_v32 = vld [vmem:[%s955_s1 + $0x104] ss:$16 sps:$4 sm:$0xff]  }
   0xc   :  { %424 = vmatprep.subr.bf16.mxu0 %v651_v12  ;;  %465 = vmatprep.subr.bf16.mxu1 %v653_v13  ;;  %v683_v33 = vld [vmem:[%s955_s1 + $0x10c] ss:$16 sps:$4 sm:$0xff]   ;;  %v685_v34 = vld [vmem:[%s955_s1 + $0x100] ss:$16 sps:$4 sm:$0xff]   ;;  %v686_v35 = vld [vmem:[%s955_s1 + $0x108] ss:$16 sps:$4 sm:$0xff]  }
   0xd   :  { %v687_v36 = vld [vmem:[%s955_s1 + $0x124] ss:$16 sps:$4 sm:$0xff]   ;;  %v689_v37 = vld [vmem:[%s955_s1 + $0x12c] ss:$16 sps:$4 sm:$0xff]   ;;  %v691_v38 = vld [vmem:[%s955_s1 + $0x120] ss:$16 sps:$4 sm:$0xff]  }
   0xe   :  { %v692_v39 = vld [vmem:[%s955_s1 + $0x128] ss:$16 sps:$4 sm:$0xff]   ;;  %v693_v40 = vld [vmem:[%s955_s1 + $0x144] ss:$16 sps:$4 sm:$0xff]   ;;  %v695_v41 = vld [vmem:[%s955_s1 + $0x14c] ss:$16 sps:$4 sm:$0xff]  }
   0xf   :  { %425 = vmatpush1.bf16.msra.mxu0 %v655_v14  ;;  %466 = vmatpush1.bf16.msra.mxu1 %v656_v15  ;;  %v697_v42 = vld [vmem:[%s955_s1 + $0x140] ss:$16 sps:$4 sm:$0xff]   ;;  %v698_v43 = vld [vmem:[%s955_s1 + $0x148] ss:$16 sps:$4 sm:$0xff]   ;;  %v699_v44 = vld [vmem:[%s955_s1 + $0x164] ss:$16 sps:$4 sm:$0xff]  }
  0x10   :  { %426 = vmatprep.subr.bf16.mxu0 %v657_v16  ;;  %467 = vmatprep.subr.bf16.mxu1 %v659_v17  ;;  %v701_v45 = vld [vmem:[%s955_s1 + $0x16c] ss:$16 sps:$4 sm:$0xff]   ;;  %v26_v46 = vld [vmem:[%s956_s0] sm:$0xff]  ;;  %v704_v49 = vld [vmem:[%s955_s1 + $0x168] ss:$16 sps:$4 sm:$0xff]   ;;  %v518_v4 = vshrl.u32 %v517_v3, 7 }
  0x11   :  { %v564_v47 = vcombine.high %v26_v46, %v26_v46  ;;  %v703_v48 = vld [vmem:[%s955_s1 + $0x160] ss:$16 sps:$4 sm:$0xff]   ;;  %v705_v50 = vld [vmem:[%s955_s1 + $0x184] ss:$16 sps:$4 sm:$0xff]   ;;  %v707_v51 = vld [vmem:[%s955_s1 + $0x18c] ss:$16 sps:$4 sm:$0xff]   ;;  %v563_v2 = vcombine.low %v26_v46, %v26_v46 }
  0x12   :  { %v709_v52 = vld [vmem:[%s955_s1 + $0x180] ss:$16 sps:$4 sm:$0xff]   ;;  %v710_v53 = vld [vmem:[%s955_s1 + $0x188] ss:$16 sps:$4 sm:$0xff]   ;;  %v711_v54 = vld [vmem:[%s955_s1 + $0x1a4] ss:$16 sps:$4 sm:$0xff]  }
  0x13   :  { %427 = vmatpush1.bf16.msra.mxu0 %v661_v18  ;;  %468 = vmatpush1.bf16.msra.mxu1 %v662_v19  ;;  %v713_v55 = vld [vmem:[%s955_s1 + $0x1ac] ss:$16 sps:$4 sm:$0xff]   ;;  %v715_v56 = vld [vmem:[%s955_s1 + $0x1a0] ss:$16 sps:$4 sm:$0xff]   ;;  %v716_v57 = vld [vmem:[%s955_s1 + $0x1a8] ss:$16 sps:$4 sm:$0xff]  }
  0x14   :  { %428 = vmatprep.subr.bf16.mxu0 %v663_v20  ;;  %469 = vmatprep.subr.bf16.mxu1 %v665_v21  ;;  %v717_v58 = vld [vmem:[%s955_s1 + $0x1c4] ss:$16 sps:$4 sm:$0xff]   ;;  %v719_v59 = vld [vmem:[%s955_s1 + $0x1cc] ss:$16 sps:$4 sm:$0xff]   ;;  %v721_v60 = vld [vmem:[%s955_s1 + $0x1c0] ss:$16 sps:$4 sm:$0xff]  }
  0x15   :  { %450 = vmatprep.mubr.bf16.mxu0 %v564_v47  ;;  %491 = vmatprep.mubr.bf16.mxu1 %v564_v47  ;;  %v722_v61 = vld [vmem:[%s955_s1 + $0x1c8] ss:$16 sps:$4 sm:$0xff]   ;;  %v723_v62 = vld [vmem:[%s955_s1 + $0x1e4] ss:$16 sps:$4 sm:$0xff]   ;;  %v725_v63 = vld [vmem:[%s955_s1 + $0x1ec] ss:$16 sps:$4 sm:$0xff]  }
  0x16   :  { %v727_v0 = vld [vmem:[%s955_s1 + $0x1e0] ss:$16 sps:$4 sm:$0xff]   ;;  %v728_v1 = vld [vmem:[%s955_s1 + $0x1e8] ss:$16 sps:$4 sm:$0xff]   ;;  %v519_v5 = vsub.s32 0, %v518_v4  ;;  %v527_v6 = vsub.s32 2, %v518_v4 }
  0x17   :  { %429 = vmatpush1.bf16.msra.mxu0 %v667_v22  ;;  %470 = vmatpush1.bf16.msra.mxu1 %v668_v23  ;;  %v515_v7 = vld [vmem:[%s957_s2] sm:$0xf]  ;;  %v523_v8 = vsub.s32 1, %v518_v4  ;;  %v531_v9 = vsub.s32 3, %v518_v4 }
  0x18   :  { %430 = vmatprep.subr.bf16.mxu0 %v669_v24  ;;  %471 = vmatprep.subr.bf16.mxu1 %v671_v25  ;;  %v520_v10 = vrot.slane %v515_v7, %v519_v5  ;;  %v528_v11 = vrot.slane %v515_v7, %v527_v6 }
  0x19   :  { %v524_v12 = vrot.slane %v515_v7, %v523_v8  ;;  %v532_v13 = vrot.slane %v515_v7, %v531_v9 }
  0x1b   :  { %431 = vmatpush1.bf16.msra.mxu0 %v673_v26  ;;  %472 = vmatpush1.bf16.msra.mxu1 %v674_v27 }
  0x1c   :  { %432 = vmatprep.subr.bf16.mxu0 %v675_v28  ;;  %473 = vmatprep.subr.bf16.mxu1 %v677_v29 }
  0x1f   :  { %433 = vmatpush1.bf16.msra.mxu0 %v679_v30  ;;  %474 = vmatpush1.bf16.msra.mxu1 %v680_v31 }
  0x20   :  { %434 = vmatprep.subr.bf16.mxu0 %v681_v32  ;;  %475 = vmatprep.subr.bf16.mxu1 %v683_v33 }
  0x23   :  { %435 = vmatpush1.bf16.msra.mxu0 %v685_v34  ;;  %476 = vmatpush1.bf16.msra.mxu1 %v686_v35 }
  0x24   :  { %436 = vmatprep.subr.bf16.mxu0 %v687_v36  ;;  %477 = vmatprep.subr.bf16.mxu1 %v689_v37 }
  0x27   :  { %437 = vmatpush1.bf16.msra.mxu0 %v691_v38  ;;  %478 = vmatpush1.bf16.msra.mxu1 %v692_v39 }
  0x28   :  { %438 = vmatprep.subr.bf16.mxu0 %v693_v40  ;;  %479 = vmatprep.subr.bf16.mxu1 %v695_v41 }
  0x2b   :  { %439 = vmatpush1.bf16.msra.mxu0 %v697_v42  ;;  %480 = vmatpush1.bf16.msra.mxu1 %v698_v43 }
  0x2c   :  { %440 = vmatprep.subr.bf16.mxu0 %v699_v44  ;;  %481 = vmatprep.subr.bf16.mxu1 %v701_v45 }
  0x2f   :  { %441 = vmatpush1.bf16.msra.mxu0 %v703_v48  ;;  %482 = vmatpush1.bf16.msra.mxu1 %v704_v49 }
  0x30   :  { %442 = vmatprep.subr.bf16.mxu0 %v705_v50  ;;  %483 = vmatprep.subr.bf16.mxu1 %v707_v51 }
  0x33   :  { %443 = vmatpush1.bf16.msra.mxu0 %v709_v52  ;;  %484 = vmatpush1.bf16.msra.mxu1 %v710_v53 }
  0x34   :  { %444 = vmatprep.subr.bf16.mxu0 %v711_v54  ;;  %485 = vmatprep.subr.bf16.mxu1 %v713_v55 }
  0x37   :  { %445 = vmatpush1.bf16.msra.mxu0 %v715_v56  ;;  %486 = vmatpush1.bf16.msra.mxu1 %v716_v57 }
  0x38   :  { %446 = vmatprep.subr.bf16.mxu0 %v717_v58  ;;  %487 = vmatprep.subr.bf16.mxu1 %v719_v59 }
  0x3b   :  { %447 = vmatpush1.bf16.msra.mxu0 %v721_v60  ;;  %488 = vmatpush1.bf16.msra.mxu1 %v722_v61 }
  0x3c   :  { %448 = vmatprep.subr.bf16.mxu0 %v723_v62  ;;  %489 = vmatprep.subr.bf16.mxu1 %v725_v63 }
  0x3f   :  { %449 = vmatpush1.bf16.msra.mxu0 %v727_v0  ;;  %490 = vmatpush1.bf16.msra.mxu1 %v728_v1 }
  0x42   :  { %451 = vmatmul.mubr.bf16.vlgmr.msra.gmra.mrb[0].mxu0 %v563_v2  ;;  %492 = vmatmul.mubr.bf16.vlgmr.msra.gmra.mrb[0].mxu1 %v563_v2 }
 0x115   :  { %v452_v14 = vpop.f32.mrb[0].mxu0  ;;  %v493_v15 = vpop.f32.mrb[0].mxu1 }
 0x116   :  { %v537_v16 = vadd.f32 %v520_v10, %v452_v14  ;;  %v539_v17 = vadd.f32 %v528_v11, %v493_v15  ;;  %v454_v18 = vpop.f32.mrb[1].mxu0  ;;  %v495_v19 = vpop.f32.mrb[1].mxu1 }
 0x117   :  { %v538_v20 = vadd.f32 %v524_v12, %v454_v18  ;;  %v540_v21 = vadd.f32 %v532_v13, %v495_v19  ;;  %v456_v22 = vpop.f32.mrb[2].mxu0  ;;  %v497_v23 = vpop.f32.mrb[2].mxu1 }
 0x118   :  { %v457_v24 = vpop.f32.mrb[3].mxu0  ;;  %v498_v25 = vpop.f32.mrb[3].mxu1 }
 0x119   :  { %v631_v26 = vpack.c.bf16 %v538_v20, %v537_v16  ;;  %v632_v27 = vpack.c.bf16 %v540_v21, %v539_v17 }
 0x11b   :  { %557 = vst [vmem:[%s958_s3] sm:$0xff] %v631_v26  ;;  %558 = vst [vmem:[%s958_s3 + $0x8] sm:$0xff] %v632_v27 }

// kernel: _lambda_.27
= control target key start
LH: loop header
LB: loop body
LE: loop exit
PB: predicated region body
PF: predicated region fallthrough
CT: control target
= control target key end

     0   :  { %s1937_s15 = smov 0   ;;  %s1939_s16 = smov 0   ;;  %s2137_s0 = inlined_call_operand.vmem [shape: bf16[8,4608], index: 0, kind: input, shape index: {}]   ;;  %s2138_s1 = inlined_call_operand.vmem [shape: bf16[4608,512], index: 1, kind: input, shape index: {}]   ;;  %s2139_s2 = inlined_call_operand.vmem [shape: f32[1,512], index: 2, kind: input, shape index: {}]   ;;  %s2140_s3 = inlined_call_operand.vmem [shape: bf16[8,512], index: 3, kind: input, shape index: {}, may-alias: {3,4}]   ;;  %s2141_s4 = inlined_call_operand.vmem [shape: bf16[8,512], index: 4, kind: output, shape index: {}, may-alias: {3,4}]  }
   0x1   :  { %s1941_s17 = smov 0  }
   0x2 LB: > { %s26_s18 = sadd.s32 1, %s1905_s16  ;;  %p1517_p0 = scmp.ge.s32.totalorder %s1909_s17, 1  ;;  %s1909_s17 = sphi %s1941_s17, %s14_s17   ;;  %s1905_s16 = sphi %s1939_s16, %s2143_s16   ;;  %s1901_s15 = sphi %s1937_s15, %s2142_s15  }
   0x3   : > { %p27_p1 = scmp.ge.s32.totalorder %s26_s18, 9  ;;  %p236_p2 = scmp.lt.s32.totalorder %s1909_s17, 10 }
   0x5   : > { %s2145_s18 = smov (%p27_p1, %s26_s18), 0  ;;  %p237_p3 = pnand %p1517_p0, %p236_p2 }
   0x6   : > { %s1518_s19 = sshll.u32 (!%p237_p3), %s1901_s15, 2  ;;  %s1520_s20 = sshll.u32 (!%p237_p3), %s1901_s15, 6 }
   0x7   : > { %240 = sbr.rel (%p237_p3) target bundleno = 388 (0x184), region = 36  ;;  %p296_p4 = scmp.lt.s32.totalorder (!%p237_p3), %s1518_s19, 35 }
   0x8   : > { %p305_p5 = scmp.lt.s32.totalorder (!%p237_p3), %s1520_s20, 575  ;;  %p1523_p6 = scmp.ne.s32.totalorder (!%p237_p3), %s1901_s15, 0 }
   0xe   : > { %s2147_s19 = smov (!%p296_p4, %s1518_s19), 35  ;;  %s2149_s20 = smov (!%p305_p5, %s1520_s20), 575 }
   0xf   : > { %s1519_s21 = sshll.u32 %s2147_s19, 2  ;;  %s1663_s25 = sshll.u32 %s2149_s20, 4  ;;  %v1911_v0 = vmov (!%p1523_p6), 0.0  }
  0x10   : > { %s1962_s24 = scalar_lea.vmem %s2137_s0, %s1519_s21  ;;  %s1967_s28 = scalar_lea.vmem %s2138_s1, %s1663_s25  ;;  %344 = vst [vmem:[#allocation2] sm:$0xff] (!%p1523_p6), %v1911_v0  ;;  %345 = vst [vmem:[#allocation2 + $0x8] sm:$0xff] (!%p1523_p6), %v1911_v0 }
  0x11   : > { %343 = sbr.rel (%p1523_p6) target bundleno = 24 (0x18), region = 40  ;;  %346 = vst [vmem:[#allocation2 + $0x10] sm:$0xff] (!%p1523_p6), %v1911_v0  ;;  %347 = vst [vmem:[#allocation2 + $0x18] sm:$0xff] (!%p1523_p6), %v1911_v0 }
  0x18 PF: > { %v1691_v1 = vld [vmem:[%s1967_s28 + $0x4] ss:$16 sps:$4 sm:$0xff]   ;;  %v1695_v3 = vld [vmem:[%s1967_s28] ss:$16 sps:$4 sm:$0xff]   ;;  %v353_v49 = vld [vmem:[%s1962_s24 + $0x8] sm:$0xff]  ;;  %p1656_p7 = scmp.ne.s32.totalorder %s1901_s15, 8 }
  0x19   : > { %v1693_v2 = vld [vmem:[%s1967_s28 + $0x204] ss:$16 sps:$4 sm:$0xff]   ;;  %1136 = vmatprep.subr.bf16.mxu0 %v1691_v1  ;;  %v1696_v4 = vld [vmem:[%s1967_s28 + $0x200] ss:$16 sps:$4 sm:$0xff]   ;;  %v1527_v52 = vcombine.high %v353_v49, %v353_v49 }
  0x1a   : > { %1177 = vmatprep.subr.bf16.mxu1 %v1693_v2  ;;  %v1697_v5 = vld [vmem:[%s1967_s28 + $0x24] ss:$16 sps:$4 sm:$0xff]   ;;  %1137 = vmatpush1.bf16.msra.mxu0 %v1695_v3  ;;  %v1701_v7 = vld [vmem:[%s1967_s28 + $0x20] ss:$16 sps:$4 sm:$0xff]  }
  0x1b   : > { %1178 = vmatpush1.bf16.msra.mxu1 %v1696_v4  ;;  %v1699_v6 = vld [vmem:[%s1967_s28 + $0x224] ss:$16 sps:$4 sm:$0xff]   ;;  %1138 = vmatprep.subr.bf16.mxu0 %v1697_v5  ;;  %v1702_v8 = vld [vmem:[%s1967_s28 + $0x220] ss:$16 sps:$4 sm:$0xff]   ;;  %v1793_v5 = vld [vmem:[%s1967_s28 + $0xc] ss:$16 sps:$4 sm:$0xff]  }
  0x1c   : > { %1179 = vmatprep.subr.bf16.mxu1 %v1699_v6  ;;  %v1703_v9 = vld [vmem:[%s1967_s28 + $0x44] ss:$16 sps:$4 sm:$0xff]   ;;  %v1707_v11 = vld [vmem:[%s1967_s28 + $0x40] ss:$16 sps:$4 sm:$0xff]   ;;  %1209 = vmatprep.mubr.bf16.mxu1 %v1527_v52  ;;  %v1796_v6 = vld [vmem:[%s1967_s28 + $0x20c] ss:$16 sps:$4 sm:$0xff]  }
  0x1d   : > { %v1705_v10 = vld [vmem:[%s1967_s28 + $0x244] ss:$16 sps:$4 sm:$0xff]   ;;  %v1708_v12 = vld [vmem:[%s1967_s28 + $0x240] ss:$16 sps:$4 sm:$0xff]  }
  0x1e   : > { %1139 = vmatpush1.bf16.msra.mxu0 %v1701_v7  ;;  %v1709_v13 = vld [vmem:[%s1967_s28 + $0x64] ss:$16 sps:$4 sm:$0xff]   ;;  %v1713_v15 = vld [vmem:[%s1967_s28 + $0x60] ss:$16 sps:$4 sm:$0xff]  }
  0x1f   : > { %1180 = vmatpush1.bf16.msra.mxu1 %v1702_v8  ;;  %1140 = vmatprep.subr.bf16.mxu0 %v1703_v9  ;;  %v1711_v14 = vld [vmem:[%s1967_s28 + $0x264] ss:$16 sps:$4 sm:$0xff]   ;;  %v1714_v16 = vld [vmem:[%s1967_s28 + $0x260] ss:$16 sps:$4 sm:$0xff]   ;;  %v2043_v8 = vcombine.low %v353_v49, %v353_v49  ;;  %v1791_v9 = vld [vmem:[%s1967_s28 + $0x8] ss:$16 sps:$4 sm:$0xff]  }
  0x20   : > { %1181 = vmatprep.subr.bf16.mxu1 %v1705_v10  ;;  %v1715_v17 = vld [vmem:[%s1967_s28 + $0x84] ss:$16 sps:$4 sm:$0xff]   ;;  %v1719_v19 = vld [vmem:[%s1967_s28 + $0x80] ss:$16 sps:$4 sm:$0xff]   ;;  %v1794_v10 = vld [vmem:[%s1967_s28 + $0x208] ss:$16 sps:$4 sm:$0xff]  }
  0x21   : > { %v1717_v18 = vld [vmem:[%s1967_s28 + $0x284] ss:$16 sps:$4 sm:$0xff]   ;;  %v1720_v20 = vld [vmem:[%s1967_s28 + $0x280] ss:$16 sps:$4 sm:$0xff]   ;;  %v1851_v49 = vld [vmem:[%s1967_s28 + $0x148] ss:$16 sps:$4 sm:$0xff]  }
  0x22   : > { %1141 = vmatpush1.bf16.msra.mxu0 %v1707_v11  ;;  %v1721_v21 = vld [vmem:[%s1967_s28 + $0xa4] ss:$16 sps:$4 sm:$0xff]   ;;  %v1725_v23 = vld [vmem:[%s1967_s28 + $0xa0] ss:$16 sps:$4 sm:$0xff]   ;;  %v1799_v11 = vld [vmem:[%s1967_s28 + $0x2c] ss:$16 sps:$4 sm:$0xff]  }
  0x23   : > { %1182 = vmatpush1.bf16.msra.mxu1 %v1708_v12  ;;  %1142 = vmatprep.subr.bf16.mxu0 %v1709_v13  ;;  %v1723_v22 = vld [vmem:[%s1967_s28 + $0x2a4] ss:$16 sps:$4 sm:$0xff]   ;;  %v1726_v24 = vld [vmem:[%s1967_s28 + $0x2a0] ss:$16 sps:$4 sm:$0xff]   ;;  %v1802_v12 = vld [vmem:[%s1967_s28 + $0x22c] ss:$16 sps:$4 sm:$0xff]  }
  0x24   : > { %1183 = vmatprep.subr.bf16.mxu1 %v1711_v14  ;;  %v1727_v25 = vld [vmem:[%s1967_s28 + $0xc4] ss:$16 sps:$4 sm:$0xff]   ;;  %v1731_v27 = vld [vmem:[%s1967_s28 + $0xc0] ss:$16 sps:$4 sm:$0xff]   ;;  %v1797_v13 = vld [vmem:[%s1967_s28 + $0x28] ss:$16 sps:$4 sm:$0xff]  }
  0x25   : > { %v1729_v26 = vld [vmem:[%s1967_s28 + $0x2c4] ss:$16 sps:$4 sm:$0xff]   ;;  %v1732_v28 = vld [vmem:[%s1967_s28 + $0x2c0] ss:$16 sps:$4 sm:$0xff]   ;;  %v1800_v14 = vld [vmem:[%s1967_s28 + $0x228] ss:$16 sps:$4 sm:$0xff]  }
  0x26   : > { %1143 = vmatpush1.bf16.msra.mxu0 %v1713_v15  ;;  %v1733_v29 = vld [vmem:[%s1967_s28 + $0xe4] ss:$16 sps:$4 sm:$0xff]   ;;  %v1737_v31 = vld [vmem:[%s1967_s28 + $0xe0] ss:$16 sps:$4 sm:$0xff]   ;;  %v1805_v15 = vld [vmem:[%s1967_s28 + $0x4c] ss:$16 sps:$4 sm:$0xff]  }
  0x27   : > { %1184 = vmatpush1.bf16.msra.mxu1 %v1714_v16  ;;  %1144 = vmatprep.subr.bf16.mxu0 %v1715_v17  ;;  %v1735_v30 = vld [vmem:[%s1967_s28 + $0x2e4] ss:$16 sps:$4 sm:$0xff]   ;;  %v1738_v32 = vld [vmem:[%s1967_s28 + $0x2e0] ss:$16 sps:$4 sm:$0xff]   ;;  %v1808_v16 = vld [vmem:[%s1967_s28 + $0x24c] ss:$16 sps:$4 sm:$0xff]  }
  0x28   : > { %1185 = vmatprep.subr.bf16.mxu1 %v1717_v18  ;;  %v1739_v33 = vld [vmem:[%s1967_s28 + $0x104] ss:$16 sps:$4 sm:$0xff]   ;;  %v1743_v35 = vld [vmem:[%s1967_s28 + $0x100] ss:$16 sps:$4 sm:$0xff]   ;;  %v1803_v17 = vld [vmem:[%s1967_s28 + $0x48] ss:$16 sps:$4 sm:$0xff]  }
  0x29   : > { %v1741_v34 = vld [vmem:[%s1967_s28 + $0x304] ss:$16 sps:$4 sm:$0xff]   ;;  %v1744_v36 = vld [vmem:[%s1967_s28 + $0x300] ss:$16 sps:$4 sm:$0xff]   ;;  %v1806_v18 = vld [vmem:[%s1967_s28 + $0x248] ss:$16 sps:$4 sm:$0xff]  }
  0x2a   : > { %1145 = vmatpush1.bf16.msra.mxu0 %v1719_v19  ;;  %v1745_v37 = vld [vmem:[%s1967_s28 + $0x124] ss:$16 sps:$4 sm:$0xff]   ;;  %v1749_v39 = vld [vmem:[%s1967_s28 + $0x120] ss:$16 sps:$4 sm:$0xff]   ;;  %v1811_v19 = vld [vmem:[%s1967_s28 + $0x6c] ss:$16 sps:$4 sm:$0xff]  }
  0x2b   : > { %1186 = vmatpush1.bf16.msra.mxu1 %v1720_v20  ;;  %1146 = vmatprep.subr.bf16.mxu0 %v1721_v21  ;;  %v1747_v38 = vld [vmem:[%s1967_s28 + $0x324] ss:$16 sps:$4 sm:$0xff]   ;;  %v1750_v40 = vld [vmem:[%s1967_s28 + $0x320] ss:$16 sps:$4 sm:$0xff]   ;;  %v1814_v20 = vld [vmem:[%s1967_s28 + $0x26c] ss:$16 sps:$4 sm:$0xff]  }
  0x2c   : > { %1187 = vmatprep.subr.bf16.mxu1 %v1723_v22  ;;  %v1751_v41 = vld [vmem:[%s1967_s28 + $0x144] ss:$16 sps:$4 sm:$0xff]   ;;  %v1755_v43 = vld [vmem:[%s1967_s28 + $0x140] ss:$16 sps:$4 sm:$0xff]   ;;  %v1809_v21 = vld [vmem:[%s1967_s28 + $0x68] ss:$16 sps:$4 sm:$0xff]  }
  0x2d   : > { %v1753_v42 = vld [vmem:[%s1967_s28 + $0x344] ss:$16 sps:$4 sm:$0xff]   ;;  %v1756_v44 = vld [vmem:[%s1967_s28 + $0x340] ss:$16 sps:$4 sm:$0xff]   ;;  %v1812_v22 = vld [vmem:[%s1967_s28 + $0x268] ss:$16 sps:$4 sm:$0xff]  }
  0x2e   : > { %1147 = vmatpush1.bf16.msra.mxu0 %v1725_v23  ;;  %v1757_v45 = vld [vmem:[%s1967_s28 + $0x164] ss:$16 sps:$4 sm:$0xff]   ;;  %v1761_v50 = vld [vmem:[%s1967_s28 + $0x160] ss:$16 sps:$4 sm:$0xff]   ;;  %v1817_v23 = vld [vmem:[%s1967_s28 + $0x8c] ss:$16 sps:$4 sm:$0xff]  }
  0x2f   : > { %1188 = vmatpush1.bf16.msra.mxu1 %v1726_v24  ;;  %1148 = vmatprep.subr.bf16.mxu0 %v1727_v25  ;;  %v1759_v46 = vld [vmem:[%s1967_s28 + $0x364] ss:$16 sps:$4 sm:$0xff]   ;;  %v1762_v51 = vld [vmem:[%s1967_s28 + $0x360] ss:$16 sps:$4 sm:$0xff]   ;;  %v1820_v24 = vld [vmem:[%s1967_s28 + $0x28c] ss:$16 sps:$4 sm:$0xff]  }
  0x30   : > { %1189 = vmatprep.subr.bf16.mxu1 %v1729_v26  ;;  %v352_v47 = vld [vmem:[%s1962_s24] sm:$0xff]  ;;  %v1815_v25 = vld [vmem:[%s1967_s28 + $0x88] ss:$16 sps:$4 sm:$0xff]  }
  0x31   : > { %v2017_v48 = vcombine.high %v352_v47, %v352_v47  ;;  %v1763_v53 = vld [vmem:[%s1967_s28 + $0x184] ss:$16 sps:$4 sm:$0xff]   ;;  %v1767_v55 = vld [vmem:[%s1967_s28 + $0x180] ss:$16 sps:$4 sm:$0xff]   ;;  %v2041_v7 = vcombine.low %v352_v47, %v352_v47  ;;  %v1818_v26 = vld [vmem:[%s1967_s28 + $0x288] ss:$16 sps:$4 sm:$0xff]  }
  0x32   : > { %1149 = vmatpush1.bf16.msra.mxu0 %v1731_v27  ;;  %v1765_v54 = vld [vmem:[%s1967_s28 + $0x384] ss:$16 sps:$4 sm:$0xff]   ;;  %v1768_v56 = vld [vmem:[%s1967_s28 + $0x380] ss:$16 sps:$4 sm:$0xff]   ;;  %v1823_v27 = vld [vmem:[%s1967_s28 + $0xac] ss:$16 sps:$4 sm:$0xff]  }
  0x33   : > { %1190 = vmatpush1.bf16.msra.mxu1 %v1732_v28  ;;  %1150 = vmatprep.subr.bf16.mxu0 %v1733_v29  ;;  %v1769_v57 = vld [vmem:[%s1967_s28 + $0x1a4] ss:$16 sps:$4 sm:$0xff]   ;;  %v1773_v59 = vld [vmem:[%s1967_s28 + $0x1a0] ss:$16 sps:$4 sm:$0xff]   ;;  %v1826_v28 = vld [vmem:[%s1967_s28 + $0x2ac] ss:$16 sps:$4 sm:$0xff]  }
  0x34   : > { %1191 = vmatprep.subr.bf16.mxu1 %v1735_v30  ;;  %1168 = vmatprep.mubr.bf16.mxu0 %v2017_v48  ;;  %v1771_v58 = vld [vmem:[%s1967_s28 + $0x3a4] ss:$16 sps:$4 sm:$0xff]   ;;  %v1774_v60 = vld [vmem:[%s1967_s28 + $0x3a0] ss:$16 sps:$4 sm:$0xff]   ;;  %v1821_v29 = vld [vmem:[%s1967_s28 + $0xa8] ss:$16 sps:$4 sm:$0xff]  }
  0x35   : > { %v1775_v61 = vld [vmem:[%s1967_s28 + $0x1c4] ss:$16 sps:$4 sm:$0xff]   ;;  %v1779_v63 = vld [vmem:[%s1967_s28 + $0x1c0] ss:$16 sps:$4 sm:$0xff]   ;;  %v1824_v30 = vld [vmem:[%s1967_s28 + $0x2a8] ss:$16 sps:$4 sm:$0xff]  }
  0x36   : > { %1151 = vmatpush1.bf16.msra.mxu0 %v1737_v31  ;;  %v1777_v62 = vld [vmem:[%s1967_s28 + $0x3c4] ss:$16 sps:$4 sm:$0xff]   ;;  %v1780_v0 = vld [vmem:[%s1967_s28 + $0x3c0] ss:$16 sps:$4 sm:$0xff]   ;;  %v1829_v31 = vld [vmem:[%s1967_s28 + $0xcc] ss:$16 sps:$4 sm:$0xff]  }
  0x37   : > { %1192 = vmatpush1.bf16.msra.mxu1 %v1738_v32  ;;  %1152 = vmatprep.subr.bf16.mxu0 %v1739_v33  ;;  %v1781_v1 = vld [vmem:[%s1967_s28 + $0x1e4] ss:$16 sps:$4 sm:$0xff]   ;;  %v1785_v3 = vld [vmem:[%s1967_s28 + $0x1e0] ss:$16 sps:$4 sm:$0xff]   ;;  %v1832_v32 = vld [vmem:[%s1967_s28 + $0x2cc] ss:$16 sps:$4 sm:$0xff]  }
  0x38   : > { %1193 = vmatprep.subr.bf16.mxu1 %v1741_v34  ;;  %v1783_v2 = vld [vmem:[%s1967_s28 + $0x3e4] ss:$16 sps:$4 sm:$0xff]   ;;  %v1786_v4 = vld [vmem:[%s1967_s28 + $0x3e0] ss:$16 sps:$4 sm:$0xff]   ;;  %v1827_v33 = vld [vmem:[%s1967_s28 + $0xc8] ss:$16 sps:$4 sm:$0xff]  }
  0x39   : > { %v1830_v34 = vld [vmem:[%s1967_s28 + $0x2c8] ss:$16 sps:$4 sm:$0xff]   ;;  %v1853_v47 = vld [vmem:[%s1967_s28 + $0x14c] ss:$16 sps:$4 sm:$0xff]  }
  0x3a   : > { %1153 = vmatpush1.bf16.msra.mxu0 %v1743_v35  ;;  %v1835_v35 = vld [vmem:[%s1967_s28 + $0xec] ss:$16 sps:$4 sm:$0xff]  }
  0x3b   : > { %1194 = vmatpush1.bf16.msra.mxu1 %v1744_v36  ;;  %1154 = vmatprep.subr.bf16.mxu0 %v1745_v37  ;;  %v1838_v36 = vld [vmem:[%s1967_s28 + $0x2ec] ss:$16 sps:$4 sm:$0xff]   ;;  %v1833_v37 = vld [vmem:[%s1967_s28 + $0xe8] ss:$16 sps:$4 sm:$0xff]  }
  0x3c   : > { %1195 = vmatprep.subr.bf16.mxu1 %v1747_v38  ;;  %v1836_v38 = vld [vmem:[%s1967_s28 + $0x2e8] ss:$16 sps:$4 sm:$0xff]  }
  0x3e   : > { %1155 = vmatpush1.bf16.msra.mxu0 %v1749_v39  ;;  %v1841_v39 = vld [vmem:[%s1967_s28 + $0x10c] ss:$16 sps:$4 sm:$0xff]  }
  0x3f   : > { %1196 = vmatpush1.bf16.msra.mxu1 %v1750_v40  ;;  %1156 = vmatprep.subr.bf16.mxu0 %v1751_v41  ;;  %v1844_v40 = vld [vmem:[%s1967_s28 + $0x30c] ss:$16 sps:$4 sm:$0xff]   ;;  %v1839_v41 = vld [vmem:[%s1967_s28 + $0x108] ss:$16 sps:$4 sm:$0xff]  }
  0x40   : > { %1197 = vmatprep.subr.bf16.mxu1 %v1753_v42  ;;  %v1842_v42 = vld [vmem:[%s1967_s28 + $0x308] ss:$16 sps:$4 sm:$0xff]  }
  0x42   : > { %1157 = vmatpush1.bf16.msra.mxu0 %v1755_v43  ;;  %v1847_v43 = vld [vmem:[%s1967_s28 + $0x12c] ss:$16 sps:$4 sm:$0xff]  }
  0x43   : > { %1198 = vmatpush1.bf16.msra.mxu1 %v1756_v44  ;;  %1158 = vmatprep.subr.bf16.mxu0 %v1757_v45  ;;  %v1850_v44 = vld [vmem:[%s1967_s28 + $0x32c] ss:$16 sps:$4 sm:$0xff]   ;;  %v1845_v45 = vld [vmem:[%s1967_s28 + $0x128] ss:$16 sps:$4 sm:$0xff]  }
  0x44   : > { %1199 = vmatprep.subr.bf16.mxu1 %v1759_v46  ;;  %v1848_v46 = vld [vmem:[%s1967_s28 + $0x328] ss:$16 sps:$4 sm:$0xff]  }
  0x46   : > { %1159 = vmatpush1.bf16.msra.mxu0 %v1761_v50  ;;  %v1854_v50 = vld [vmem:[%s1967_s28 + $0x348] ss:$16 sps:$4 sm:$0xff]  }
  0x47   : > { %1200 = vmatpush1.bf16.msra.mxu1 %v1762_v51  ;;  %1160 = vmatprep.subr.bf16.mxu0 %v1763_v53  ;;  %v1859_v51 = vld [vmem:[%s1967_s28 + $0x16c] ss:$16 sps:$4 sm:$0xff]   ;;  %v1857_v53 = vld [vmem:[%s1967_s28 + $0x168] ss:$16 sps:$4 sm:$0xff]  }
  0x48   : > { %1201 = vmatprep.subr.bf16.mxu1 %v1765_v54  ;;  %v1860_v54 = vld [vmem:[%s1967_s28 + $0x368] ss:$16 sps:$4 sm:$0xff]  }
  0x4a   : > { %1161 = vmatpush1.bf16.msra.mxu0 %v1767_v55  ;;  %v1865_v55 = vld [vmem:[%s1967_s28 + $0x18c] ss:$16 sps:$4 sm:$0xff]  }
  0x4b   : > { %1202 = vmatpush1.bf16.msra.mxu1 %v1768_v56  ;;  %1162 = vmatprep.subr.bf16.mxu0 %v1769_v57  ;;  %v1868_v56 = vld [vmem:[%s1967_s28 + $0x38c] ss:$16 sps:$4 sm:$0xff]   ;;  %v1863_v57 = vld [vmem:[%s1967_s28 + $0x188] ss:$16 sps:$4 sm:$0xff]  }
  0x4c   : > { %1203 = vmatprep.subr.bf16.mxu1 %v1771_v58  ;;  %v1866_v58 = vld [vmem:[%s1967_s28 + $0x388] ss:$16 sps:$4 sm:$0xff]  }
  0x4e   : > { %1163 = vmatpush1.bf16.msra.mxu0 %v1773_v59  ;;  %v1871_v59 = vld [vmem:[%s1967_s28 + $0x1ac] ss:$16 sps:$4 sm:$0xff]  }
  0x4f   : > { %1204 = vmatpush1.bf16.msra.mxu1 %v1774_v60  ;;  %1164 = vmatprep.subr.bf16.mxu0 %v1775_v61  ;;  %v1874_v60 = vld [vmem:[%s1967_s28 + $0x3ac] ss:$16 sps:$4 sm:$0xff]   ;;  %v1869_v61 = vld [vmem:[%s1967_s28 + $0x1a8] ss:$16 sps:$4 sm:$0xff]  }
  0x50   : > { %1205 = vmatprep.subr.bf16.mxu1 %v1777_v62  ;;  %v1872_v62 = vld [vmem:[%s1967_s28 + $0x3a8] ss:$16 sps:$4 sm:$0xff]  }
  0x52   : > { %1165 = vmatpush1.bf16.msra.mxu0 %v1779_v63  ;;  %v1877_v63 = vld [vmem:[%s1967_s28 + $0x1cc] ss:$16 sps:$4 sm:$0xff]  }
  0x53   : > { %1206 = vmatpush1.bf16.msra.mxu1 %v1780_v0  ;;  %1166 = vmatprep.subr.bf16.mxu0 %v1781_v1  ;;  %v1880_v0 = vld [vmem:[%s1967_s28 + $0x3cc] ss:$16 sps:$4 sm:$0xff]   ;;  %v1875_v1 = vld [vmem:[%s1967_s28 + $0x1c8] ss:$16 sps:$4 sm:$0xff]  }
  0x54   : > { %1207 = vmatprep.subr.bf16.mxu1 %v1783_v2  ;;  %v1878_v2 = vld [vmem:[%s1967_s28 + $0x3c8] ss:$16 sps:$4 sm:$0xff]  }
  0x56   : > { %1167 = vmatpush1.bf16.msra.mxu0 %v1785_v3  ;;  %v1883_v3 = vld [vmem:[%s1967_s28 + $0x1ec] ss:$16 sps:$4 sm:$0xff]  }
  0x57   : > { %1208 = vmatpush1.bf16.msra.mxu1 %v1786_v4  ;;  %1218 = vmatprep.subr.bf16.mxu0 %v1793_v5  ;;  %v1886_v4 = vld [vmem:[%s1967_s28 + $0x3ec] ss:$16 sps:$4 sm:$0xff]   ;;  %v1881_v5 = vld [vmem:[%s1967_s28 + $0x1e8] ss:$16 sps:$4 sm:$0xff]  }
  0x58   : > { %1259 = vmatprep.subr.bf16.mxu1 %v1796_v6  ;;  %v1884_v6 = vld [vmem:[%s1967_s28 + $0x3e8] ss:$16 sps:$4 sm:$0xff]  }
  0x59   : > { %1169 = vmatmul.mubr.bf16.vlgmr.msra.gmra.mrb[0].mxu0 %v2041_v7 }
  0x5a   : > { %1210 = vmatmul.mubr.bf16.vlgmr.msra.gmra.mrb[0].mxu1 %v2043_v8  ;;  %1219 = vmatpush1.bf16.msra.mxu0 %v1791_v9 }
  0x5b   : > { %1260 = vmatpush1.bf16.msra.mxu1 %v1794_v10  ;;  %1220 = vmatprep.subr.bf16.mxu0 %v1799_v11  ;;  %v348_v10 = vld [vmem:[#allocation2] sm:$0xff] }
  0x5c   : > { %1261 = vmatprep.subr.bf16.mxu1 %v1802_v12  ;;  %1250 = vmatprep.mubr.bf16.mxu0 %v2017_v48  ;;  %v1856_v48 = vld [vmem:[%s1967_s28 + $0x34c] ss:$16 sps:$4 sm:$0xff]  }
  0x5d   : > { %1291 = vmatprep.mubr.bf16.mxu1 %v1527_v52  ;;  %v1862_v52 = vld [vmem:[%s1967_s28 + $0x36c] ss:$16 sps:$4 sm:$0xff]  }
  0x5e   : > { %1221 = vmatpush1.bf16.msra.mxu0 %v1797_v13 }
  0x5f   : > { %1262 = vmatpush1.bf16.msra.mxu1 %v1800_v14  ;;  %1222 = vmatprep.subr.bf16.mxu0 %v1805_v15  ;;  %v349_v14 = vld [vmem:[#allocation2 + $0x8] sm:$0xff] }
  0x60   : > { %1263 = vmatprep.subr.bf16.mxu1 %v1808_v16 }
  0x62   : > { %1223 = vmatpush1.bf16.msra.mxu0 %v1803_v17 }
  0x63   : > { %1264 = vmatpush1.bf16.msra.mxu1 %v1806_v18  ;;  %1224 = vmatprep.subr.bf16.mxu0 %v1811_v19 }
  0x64   : > { %1265 = vmatprep.subr.bf16.mxu1 %v1814_v20 }
  0x66   : > { %1225 = vmatpush1.bf16.msra.mxu0 %v1809_v21 }
  0x67   : > { %1266 = vmatpush1.bf16.msra.mxu1 %v1812_v22  ;;  %1226 = vmatprep.subr.bf16.mxu0 %v1817_v23 }
  0x68   : > { %1267 = vmatprep.subr.bf16.mxu1 %v1820_v24 }
  0x6a   : > { %1227 = vmatpush1.bf16.msra.mxu0 %v1815_v25 }
  0x6b   : > { %1268 = vmatpush1.bf16.msra.mxu1 %v1818_v26  ;;  %1228 = vmatprep.subr.bf16.mxu0 %v1823_v27  ;;  %v351_v26 = vld [vmem:[#allocation2 + $0x18] sm:$0xff] }
  0x6c   : > { %1269 = vmatprep.subr.bf16.mxu1 %v1826_v28 }
  0x6e   : > { %1229 = vmatpush1.bf16.msra.mxu0 %v1821_v29 }
  0x6f   : > { %1270 = vmatpush1.bf16.msra.mxu1 %v1824_v30  ;;  %1230 = vmatprep.subr.bf16.mxu0 %v1829_v31 }
  0x70   : > { %1271 = vmatprep.subr.bf16.mxu1 %v1832_v32 }
  0x72   : > { %1231 = vmatpush1.bf16.msra.mxu0 %v1827_v33 }
  0x73   : > { %1272 = vmatpush1.bf16.msra.mxu1 %v1830_v34  ;;  %1232 = vmatprep.subr.bf16.mxu0 %v1835_v35  ;;  %v1318_v35 = vlaneseq (!%p1656_p7) }
  0x74   : > { %1273 = vmatprep.subr.bf16.mxu1 %v1838_v36 }
  0x75   : > { %v1319_v36 = vshrl.u32 (!%p1656_p7), %v1318_v35, 7 }
  0x76   : > { %1233 = vmatpush1.bf16.msra.mxu0 %v1833_v37  ;;  %v1342_v37 = vld [vmem:[%s2140_s3] sm:$0xff] (!%p1656_p7) }
  0x77   : > { %1274 = vmatpush1.bf16.msra.mxu1 %v1836_v38  ;;  %1234 = vmatprep.subr.bf16.mxu0 %v1841_v39  ;;  %v1343_v38 = vld [vmem:[%s2140_s3 + $0x8] sm:$0xff] (!%p1656_p7)  ;;  %v1316_v39 = vld [vmem:[%s2139_s2] sm:$0xf] (!%p1656_p7) }
  0x78   : > { %1275 = vmatprep.subr.bf16.mxu1 %v1844_v40 }
  0x7a   : > { %1235 = vmatpush1.bf16.msra.mxu0 %v1839_v41  ;;  %v1320_v41 = vsub.s32 (!%p1656_p7), 0, %v1319_v36 }
  0x7b   : > { %1276 = vmatpush1.bf16.msra.mxu1 %v1842_v42  ;;  %1236 = vmatprep.subr.bf16.mxu0 %v1847_v43  ;;  %v1324_v42 = vsub.s32 (!%p1656_p7), 1, %v1319_v36  ;;  %v1328_v43 = vsub.s32 (!%p1656_p7), 2, %v1319_v36 }
  0x7c   : > { %1277 = vmatprep.subr.bf16.mxu1 %v1850_v44  ;;  %v1332_v44 = vsub.s32 (!%p1656_p7), 3, %v1319_v36 }
  0x7e   : > { %1237 = vmatpush1.bf16.msra.mxu0 %v1845_v45 }
  0x7f   : > { %1278 = vmatpush1.bf16.msra.mxu1 %v1848_v46  ;;  %1238 = vmatprep.subr.bf16.mxu0 %v1853_v47  ;;  %v1344_v46 = vunpack.c.l.bf16 (!%p1656_p7), %v1342_v37  ;;  %v1345_v47 = vunpack.c.h.bf16 (!%p1656_p7), %v1342_v37 }
  0x80   : > { %1279 = vmatprep.subr.bf16.mxu1 %v1856_v48 }
  0x82   : > { %1239 = vmatpush1.bf16.msra.mxu0 %v1851_v49 }
  0x83   : > { %1280 = vmatpush1.bf16.msra.mxu1 %v1854_v50  ;;  %1240 = vmatprep.subr.bf16.mxu0 %v1859_v51  ;;  %v1346_v50 = vunpack.c.l.bf16 (!%p1656_p7), %v1343_v38  ;;  %v1347_v51 = vunpack.c.h.bf16 (!%p1656_p7), %v1343_v38 }
  0x84   : > { %1281 = vmatprep.subr.bf16.mxu1 %v1862_v52  ;;  %v1321_v52 = vrot.slane (!%p1656_p7), %v1316_v39, %v1320_v41 }
  0x86   : > { %1241 = vmatpush1.bf16.msra.mxu0 %v1857_v53  ;;  %v1325_v53 = vrot.slane (!%p1656_p7), %v1316_v39, %v1324_v42 }
  0x87   : > { %1282 = vmatpush1.bf16.msra.mxu1 %v1860_v54  ;;  %1242 = vmatprep.subr.bf16.mxu0 %v1865_v55  ;;  %v1329_v54 = vrot.slane (!%p1656_p7), %v1316_v39, %v1328_v43  ;;  %v1333_v55 = vrot.slane (!%p1656_p7), %v1316_v39, %v1332_v44 }
  0x88   : > { %1283 = vmatprep.subr.bf16.mxu1 %v1868_v56 }
  0x8a   : > { %1243 = vmatpush1.bf16.msra.mxu0 %v1863_v57 }
  0x8b   : > { %1284 = vmatpush1.bf16.msra.mxu1 %v1866_v58  ;;  %1244 = vmatprep.subr.bf16.mxu0 %v1871_v59 }
  0x8c   : > { %1285 = vmatprep.subr.bf16.mxu1 %v1874_v60 }
  0x8e   : > { %1245 = vmatpush1.bf16.msra.mxu0 %v1869_v61 }
  0x8f   : > { %1286 = vmatpush1.bf16.msra.mxu1 %v1872_v62  ;;  %1246 = vmatprep.subr.bf16.mxu0 %v1877_v63 }
  0x90   : > { %1287 = vmatprep.subr.bf16.mxu1 %v1880_v0 }
  0x92   : > { %1247 = vmatpush1.bf16.msra.mxu0 %v1875_v1 }
  0x93   : > { %1288 = vmatpush1.bf16.msra.mxu1 %v1878_v2  ;;  %1248 = vmatprep.subr.bf16.mxu0 %v1883_v3 }
  0x94   : > { %1289 = vmatprep.subr.bf16.mxu1 %v1886_v4 }
  0x96   : > { %1249 = vmatpush1.bf16.msra.mxu0 %v1881_v5 }
  0x97   : > { %1290 = vmatpush1.bf16.msra.mxu1 %v1884_v6 }
  0x99   : > { %1251 = vmatmul.mubr.bf16.vlgmr.msra.gmra.mrb[4].mxu0 %v2041_v7  ;;  %v350_v7 = vld [vmem:[#allocation2 + $0x10] sm:$0xff] }
  0x9a   : > { %1292 = vmatmul.mubr.bf16.vlgmr.msra.gmra.mrb[4].mxu1 %v2043_v8 }
 0x12c   : > { %v1170_v9 = vpop.f32.mrb[0].mxu0 }
 0x12d   : > { %v1211_v11 = vpop.f32.mrb[0].mxu1  ;;  %v1172_v13 = vpop.f32.mrb[1].mxu0 }
 0x12e   : > { %v1212_v12 = vadd.f32 %v1211_v11, %v1170_v9  ;;  %v1213_v15 = vpop.f32.mrb[1].mxu1  ;;  %v1174_v17 = vpop.f32.mrb[2].mxu0 }
 0x12f   : > { %v1214_v16 = vadd.f32 %v1213_v15, %v1172_v13  ;;  %v1215_v18 = vpop.f32.mrb[2].mxu1  ;;  %v1175_v20 = vpop.f32.mrb[3].mxu0 }
 0x130   : > { %v1300_v19 = vadd.f32 %v1212_v12, %v348_v10  ;;  %v1216_v21 = vpop.f32.mrb[3].mxu1 }
 0x131   : > { %v1301_v22 = vadd.f32 %v1214_v16, %v349_v14 }
 0x132   : > { %1304 = vst [vmem:[#allocation2] sm:$0xff] %v1300_v19 }
 0x133   : > { %1305 = vst [vmem:[#allocation2 + $0x8] sm:$0xff] %v1301_v22 }
 0x139   : > { %v1312_v40 = vld [vmem:[#allocation2] sm:$0xff] (!%p1656_p7) }
 0x13a   : > { %v1313_v45 = vld [vmem:[#allocation2 + $0x8] sm:$0xff] (!%p1656_p7)  ;;  %v1338_v56 = vadd.f32 (!%p1656_p7), %v1321_v52, %v1312_v40 }
 0x13b   : > { %v1339_v57 = vadd.f32 (!%p1656_p7), %v1325_v53, %v1313_v45 }
 0x13c   : > { %v1348_v60 = vadd.f32 (!%p1656_p7), %v1344_v46, %v1338_v56 }
 0x13d   : > { %v1349_v61 = vadd.f32 (!%p1656_p7), %v1345_v47, %v1339_v57 }
 0x13e   : > { %v1352_v0 = vmax.f32 (!%p1656_p7), %v1348_v60, 0.0 }
 0x13f   : > { %v1353_v1 = vmax.f32 (!%p1656_p7), %v1349_v61, 0.0 }
 0x141   : > { %v1664_v4 = vpack.c.bf16 (!%p1656_p7), %v1353_v1, %v1352_v0 }
 0x143   : > { %1372 = vst [vmem:[%s2141_s4] sm:$0xff] (!%p1656_p7), %v1664_v4 }
 0x16c   : > { %v1252_v23 = vpop.f32.mrb[4].mxu0 }
 0x16d   : > { %v1293_v24 = vpop.f32.mrb[4].mxu1  ;;  %v1254_v25 = vpop.f32.mrb[5].mxu0  ;;  %1311 = sbr.rel (%p1656_p7) target bundleno = 388 (0x184), region = 44 }
 0x16e   : > { %v1294_v8 = vadd.f32 %v1293_v24, %v1252_v23  ;;  %v1295_v27 = vpop.f32.mrb[5].mxu1  ;;  %v1256_v29 = vpop.f32.mrb[6].mxu0 }
 0x16f   : > { %v1296_v28 = vadd.f32 %v1295_v27, %v1254_v25  ;;  %v1297_v30 = vpop.f32.mrb[6].mxu1  ;;  %v1257_v32 = vpop.f32.mrb[7].mxu0 }
 0x170   : > { %v1302_v31 = vadd.f32 %v1294_v8, %v350_v7  ;;  %v1298_v33 = vpop.f32.mrb[7].mxu1 }
 0x171   : > { %v1303_v34 = vadd.f32 %v1296_v28, %v351_v26 }
 0x172   : > { %1306 = vst [vmem:[#allocation2 + $0x10] sm:$0xff] %v1302_v31 }
 0x173   : > { %1307 = vst [vmem:[#allocation2 + $0x18] sm:$0xff] %v1303_v34 }
 0x179   : > { %v1314_v48 = vld [vmem:[#allocation2 + $0x10] sm:$0xff] }
 0x17a   : > { %v1315_v49 = vld [vmem:[#allocation2 + $0x18] sm:$0xff]  ;;  %v1340_v58 = vadd.f32 %v1329_v54, %v1314_v48 }
 0x17b   : > { %v1341_v59 = vadd.f32 %v1333_v55, %v1315_v49 }
 0x17c   : > { %v1350_v62 = vadd.f32 %v1346_v50, %v1340_v58 }
 0x17d   : > { %v1351_v63 = vadd.f32 %v1347_v51, %v1341_v59 }
 0x17e   : > { %v1354_v2 = vmax.f32 %v1350_v62, 0.0 }
 0x17f   : > { %v1355_v3 = vmax.f32 %v1351_v63, 0.0 }
 0x181   : > { %v1665_v5 = vpack.c.bf16 %v1355_v3, %v1354_v2 }
 0x183   : > { %1373 = vst [vmem:[%s2141_s4 + $0x8] sm:$0xff] %v1665_v5 }
 0x184 PF: > { %s14_s17 = sadd.s32 1, %s1909_s17   ;;  %s2142_s15 = smov %s1905_s16 }
 0x185   : > { %p11_p8 = scmp.ge.s32.totalorder %s14_s17, 11   ;;  %s2143_s16 = smov %s2145_s18 }
 0x187   :  { %13 = sbr.rel (!%p11_p8) target bundleno = 2 (0x2), region = 83 }

// kernel: _lambda_.28
= control target key start
LH: loop header
LB: loop body
LE: loop exit
PB: predicated region body
PF: predicated region fallthrough
CT: control target
= control target key end

     0   :  { %vm21_vm0 = vcmask 1041409   ;;  %vm23_vm1 = vcmask 1043459   ;;  %vm25_vm2 = vcmask 1045509   ;;  %vm27_vm3 = vcmask 1047559   ;;  %s55_s0 = inlined_call_operand.vmem [shape: bf16[2,1,512], index: 0, kind: input, shape index: {}]   ;;  %s56_s1 = inlined_call_operand.vmem [shape: f32[2,512], index: 1, kind: output, shape index: {}]  }
   0x1   :  { %v36_v0 = vld [vmem:[%s55_s0] sm:$0xff]  }
   0x2   :  { %v37_v1 = vunpack.c.l.bf16 %v36_v0  ;;  %v38_v2 = vunpack.c.h.bf16 %v36_v0 }
   0x4   :  { %v20_v3 = vrot.slane %v38_v2, 7 }
   0x6   :  { %v22_v4 = vsel %vm21_vm0, %v20_v3, %v37_v1 }
   0x7   :  { %v24_v5 = vsel %vm23_vm1, %v20_v3, %v22_v4 }
   0x8   :  { %v26_v6 = vsel %vm25_vm2, %v20_v3, %v24_v5 }
   0x9   :  { %v28_v7 = vsel %vm27_vm3, %v20_v3, %v26_v6 }
   0xa   :  { %30 = vst [vmem:[%s56_s1] sm:$0xff] %v28_v7 }

// kernel: _lambda_.29
= control target key start
LH: loop header
LB: loop body
LE: loop exit
PB: predicated region body
PF: predicated region fallthrough
CT: control target
= control target key end

     0   :  { %s637_s1 = inlined_call_operand.vmem [shape: bf16[512,128], index: 1, kind: input, shape index: {}]   ;;  %s638_s0 = inlined_call_operand.vmem [shape: bf16[8,512], index: 0, kind: input, shape index: {}]   ;;  %s639_s2 = inlined_call_operand.vmem [shape: f32[1,128], index: 2, kind: input, shape index: {}]   ;;  %s640_s3 = inlined_call_operand.vmem [shape: f32[8,128], index: 3, kind: output, shape index: {}]  }
   0x1   :  { %v473_v0 = vld [vmem:[%s637_s1 + $0x40] sm:$0xff]   ;;  %v477_v4 = vld [vmem:[%s637_s1 + $0x48] sm:$0xff]   ;;  %v481_v8 = vld [vmem:[%s637_s1 + $0x50] sm:$0xff]  }
   0x2   :  { %v474_v1 = vld [vmem:[%s637_s1 + $0xc0] sm:$0xff]   ;;  %429 = vmatprep.subr.bf16.mxu0 %v473_v0  ;;  %v478_v5 = vld [vmem:[%s637_s1 + $0xc8] sm:$0xff]   ;;  %v482_v9 = vld [vmem:[%s637_s1 + $0xd0] sm:$0xff]  }
   0x3   :  { %v475_v2 = vld [vmem:[%s637_s1] sm:$0xff]   ;;  %451 = vmatprep.subr.bf16.mxu1 %v474_v1  ;;  %v479_v6 = vld [vmem:[%s637_s1 + $0x8] sm:$0xff]   ;;  %v483_v10 = vld [vmem:[%s637_s1 + $0x10] sm:$0xff]  }
   0x4   :  { %v476_v3 = vld [vmem:[%s637_s1 + $0x80] sm:$0xff]   ;;  %430 = vmatpush3.bf16.msra.mxu0 %v475_v2  ;;  %v480_v7 = vld [vmem:[%s637_s1 + $0x88] sm:$0xff]   ;;  %v484_v11 = vld [vmem:[%s637_s1 + $0x90] sm:$0xff]  }
   0x5   :  { %452 = vmatpush3.bf16.msra.mxu1 %v476_v3  ;;  %431 = vmatprep.subr.bf16.mxu0 %v477_v4  ;;  %v485_v12 = vld [vmem:[%s637_s1 + $0x58] sm:$0xff]   ;;  %v489_v16 = vld [vmem:[%s637_s1 + $0x60] sm:$0xff]   ;;  %v493_v20 = vld [vmem:[%s637_s1 + $0x68] sm:$0xff]  }
   0x6   :  { %453 = vmatprep.subr.bf16.mxu1 %v478_v5  ;;  %v486_v13 = vld [vmem:[%s637_s1 + $0xd8] sm:$0xff]   ;;  %v490_v17 = vld [vmem:[%s637_s1 + $0xe0] sm:$0xff]   ;;  %v494_v21 = vld [vmem:[%s637_s1 + $0xe8] sm:$0xff]  }
   0x7   :  { %v487_v14 = vld [vmem:[%s637_s1 + $0x18] sm:$0xff]   ;;  %v491_v18 = vld [vmem:[%s637_s1 + $0x20] sm:$0xff]   ;;  %v495_v22 = vld [vmem:[%s637_s1 + $0x28] sm:$0xff]  }
   0x8   :  { %432 = vmatpush3.bf16.msra.mxu0 %v479_v6  ;;  %v488_v15 = vld [vmem:[%s637_s1 + $0x98] sm:$0xff]   ;;  %v492_v19 = vld [vmem:[%s637_s1 + $0xa0] sm:$0xff]   ;;  %v496_v23 = vld [vmem:[%s637_s1 + $0xa8] sm:$0xff]  }
   0x9   :  { %454 = vmatpush3.bf16.msra.mxu1 %v480_v7  ;;  %433 = vmatprep.subr.bf16.mxu0 %v481_v8  ;;  %v497_v24 = vld [vmem:[%s637_s1 + $0x70] sm:$0xff]   ;;  %v501_v28 = vld [vmem:[%s637_s1 + $0x78] sm:$0xff]   ;;  %v21_v32 = vld [vmem:[%s638_s0] sm:$0xff] }
   0xa   :  { %455 = vmatprep.subr.bf16.mxu1 %v482_v9  ;;  %v498_v25 = vld [vmem:[%s637_s1 + $0xf0] sm:$0xff]   ;;  %v502_v29 = vld [vmem:[%s637_s1 + $0xf8] sm:$0xff]   ;;  %v22_v33 = vld [vmem:[%s638_s0 + $0x8] sm:$0xff]  ;;  %v392_v34 = vcombine.low %v21_v32, %v21_v32  ;;  %v393_v35 = vcombine.high %v21_v32, %v21_v32 }
   0xb   :  { %v499_v26 = vld [vmem:[%s637_s1 + $0x30] sm:$0xff]   ;;  %v503_v30 = vld [vmem:[%s637_s1 + $0x38] sm:$0xff]   ;;  %v394_v36 = vcombine.low %v22_v33, %v22_v33  ;;  %v395_v37 = vcombine.high %v22_v33, %v22_v33  ;;  %v428_v46 = vld [vmem:[%s639_s2] ss:$0 sm:$0xff] }
   0xc   :  { %434 = vmatpush3.bf16.msra.mxu0 %v483_v10  ;;  %v500_v27 = vld [vmem:[%s637_s1 + $0xb0] sm:$0xff]   ;;  %v504_v31 = vld [vmem:[%s637_s1 + $0xb8] sm:$0xff]   ;;  %325 = vmatprep.mubr.bf16.mxu0 %v393_v35 }
   0xd   :  { %456 = vmatpush3.bf16.msra.mxu1 %v484_v11  ;;  %435 = vmatprep.subr.bf16.mxu0 %v485_v12 }
   0xe   :  { %457 = vmatprep.subr.bf16.mxu1 %v486_v13  ;;  %365 = vmatprep.mubr.bf16.mxu1 %v395_v37 }
  0x10   :  { %436 = vmatpush3.bf16.msra.mxu0 %v487_v14 }
  0x11   :  { %458 = vmatpush3.bf16.msra.mxu1 %v488_v15  ;;  %437 = vmatprep.subr.bf16.mxu0 %v489_v16 }
  0x12   :  { %459 = vmatprep.subr.bf16.mxu1 %v490_v17 }
  0x14   :  { %438 = vmatpush3.bf16.msra.mxu0 %v491_v18 }
  0x15   :  { %460 = vmatpush3.bf16.msra.mxu1 %v492_v19  ;;  %439 = vmatprep.subr.bf16.mxu0 %v493_v20 }
  0x16   :  { %461 = vmatprep.subr.bf16.mxu1 %v494_v21 }
  0x18   :  { %440 = vmatpush3.bf16.msra.mxu0 %v495_v22 }
  0x19   :  { %462 = vmatpush3.bf16.msra.mxu1 %v496_v23  ;;  %441 = vmatprep.subr.bf16.mxu0 %v497_v24 }
  0x1a   :  { %463 = vmatprep.subr.bf16.mxu1 %v498_v25 }
  0x1c   :  { %442 = vmatpush3.bf16.msra.mxu0 %v499_v26 }
  0x1d   :  { %464 = vmatpush3.bf16.msra.mxu1 %v500_v27  ;;  %443 = vmatprep.subr.bf16.mxu0 %v501_v28 }
  0x1e   :  { %465 = vmatprep.subr.bf16.mxu1 %v502_v29 }
  0x20   :  { %444 = vmatpush3.bf16.msra.mxu0 %v503_v30 }
  0x21   :  { %466 = vmatpush3.bf16.msra.mxu1 %v504_v31 }
  0x23   :  { %326 = vmatmul.mubr.bf16.vlgmr.msra.gmra.mrb[0].mxu0 %v392_v34 }
  0x24   :  { %366 = vmatmul.mubr.bf16.vlgmr.msra.gmra.mrb[0].mxu1 %v394_v36 }
  0xf6   :  { %v445_v38 = vpop.f32.mrb[0].mxu0 }
  0xf7   :  { %v467_v39 = vpop.f32.mrb[0].mxu1  ;;  %v446_v40 = vpop.f32.mrb[1].mxu0 }
  0xf8   :  { %v468_v41 = vpop.f32.mrb[1].mxu1  ;;  %v447_v42 = vadd.f32 %v446_v40, %v445_v38  ;;  %v448_v44 = vpop.f32.mrb[2].mxu0 }
  0xf9   :  { %v469_v43 = vadd.f32 %v468_v41, %v467_v39  ;;  %v470_v45 = vpop.f32.mrb[2].mxu1  ;;  %v449_v47 = vpop.f32.mrb[3].mxu0 }
  0xfa   :  { %v471_v48 = vpop.f32.mrb[3].mxu1 }
  0xfb   :  { %v368_v49 = vadd.f32 %v469_v43, %v447_v42 }
  0xfd   :  { %v386_v50 = vadd.f32 %v428_v46, %v368_v49 }
  0xff   :  { %387 = vst [vmem:[%s640_s3] sm:$0xff] %v386_v50 }

</bundles_post_ra>
